<compile_context>
chip_gen: v7x
topology: tpu7x:2x2x1
jax: 0.10.0
libtpu: 0.0.40
codegen_flags: <defaults>
</compile_context>

<pallas_src>
import functools

import numpy as np
import jax
import jax.numpy as jnp
from jax.experimental import pallas as pl
from jax.experimental.pallas import tpu as pltpu

EPS = 1e-5        # nn.GroupNorm default eps
GROUPS = 16       # nn.GroupNorm(16, ...)


# ----------------------------------------------------------------------------
# Kernel
# ----------------------------------------------------------------------------
def bottleneck_kernel(x_ref, w1_ref, w2_ref, w3d_ref, a2_ref, gbp_ref, gbe_ref,
                      m_ref, o_ref, tap_ref, *, NB, H, W, P, E):
    """One grid step processes NB samples: M = NB*H*W rows, all matmuls 2-D."""
    HW = H * W
    M = NB * HW
    inv_hw = 1.0 / float(HW)

    def channel_norm(y2d, gamma, beta):
        # GroupNorm(GROUPS, C) with C == GROUPS -> group size 1: per-sample,
        # per-channel normalization over HW.  Pure VPU/XLU, no MXU.
        C = y2d.shape[-1]
        y3 = y2d.reshape(NB, HW, C)
        mean = jnp.sum(y3, axis=1, keepdims=True) * inv_hw
        d = y3 - mean
        var = jnp.sum(d * d, axis=1, keepdims=True) * inv_hw
        out = d * jax.lax.rsqrt(var + EPS) * gamma + beta
        return out.reshape(M, C)

    # ---- conv1 (1x1) -> GN(16, P) -> ReLU ---------------------------------
    y = jnp.dot(x_ref[...].astype(jnp.float32), w1_ref[...],
                preferred_element_type=jnp.float32)                     # (M, P)
    y = channel_norm(y, gbp_ref[0:1, :], gbp_ref[1:2, :])
    y = jnp.maximum(y, 0.0)

    # ---- conv2 (3x3, stride=1, pad=1) -> GN(16, P) -> ReLU ----------------
    # Nine taps: XLU rolls over the flattened (NB*HW) axis, boundary-zeroed by
    # pre-broadcast masks, staged one at a time into VMEM scratch (only one
    # tap is ever live in vregs), then one fused (M, 9P) x (9P, P) matmul.
    for t in range(9):                                   # static unroll
        kh, kw = t // 3 - 1, t % 3 - 1
        off = kh * W + kw
        if off == 0:
            tap_ref[:, t * P:(t + 1) * P] = y            # center tap: no shift/mask
        else:
            r = pltpu.roll(y, shift=(-off) % M, axis=0)  # r[p] = y[(p+off) mod M]
            tap_ref[:, t * P:(t + 1) * P] = r * m_ref[t]
    y = jnp.dot(tap_ref[...], w2_ref[...],
                preferred_element_type=jnp.float32)                     # (M, P)
    y = channel_norm(y, gbp_ref[2:3, :], gbp_ref[3:4, :])
    y = jnp.maximum(y, 0.0)

    # ---- conv3 (1x1) + downsample conv (1x1): one block-diagonal matmul ---
    # [y | x] @ [[w3, 0], [0, wd]] -> z with the conv3 branch in lanes [0, E)
    # and the identity branch in lanes [E, 2E): one lane-dense 128-wide slab.
    u = jnp.concatenate([y, x_ref[...].astype(jnp.float32)], axis=1)    # (M, P+Cin)
    z = jnp.dot(u, w3d_ref[...], preferred_element_type=jnp.float32)    # (M, 2E)

    # ---- GroupNorm(16, E) on both branches at once ------------------------
    z = z.reshape(NB, HW, 2 * E)
    s = jnp.sum(z, axis=1)                                              # (NB, 2E)
    mean = jnp.dot(s, a2_ref[...], preferred_element_type=jnp.float32)  # (NB, 2E)
    d = z - mean[:, None, :]
    var = jnp.dot(jnp.sum(d * d, axis=1), a2_ref[...],
                  preferred_element_type=jnp.float32)                   # (NB, 2E)
    zn = (d * jax.lax.rsqrt(var[:, None, :] + EPS)
          * gbe_ref[0:1, :] + gbe_ref[1:2, :])                          # (NB, HW, 2E)

    # ---- residual add + ReLU, lane-dense store ----------------------------
    # Roll by E lanes so lanes [0, E) (and, duplicated, [E, 2E)) hold
    # conv3 + identity; the full 128-lane store avoids masked vst.
    res = jnp.maximum(zn + pltpu.roll(zn, shift=E, axis=2), 0.0)
    o_ref[...] = res.astype(o_ref.dtype)


# ----------------------------------------------------------------------------
# Host-side glue (constants cached, params packed once)
# ----------------------------------------------------------------------------
@functools.lru_cache(maxsize=None)
def _tap_masks(H, W, NB, P):
    """masks[t, p, :] = 1 if the (kh, kw) tap source of flat position p lies
    inside the image; tiled over NB samples and pre-broadcast to P lanes so
    the kernel does a single vmul per tap (no lane broadcast)."""
    HW = H * W
    base = np.zeros((9, HW, P), np.float32)
    for t in range(9):
        kh, kw = t // 3 - 1, t % 3 - 1
        for h in range(H):
            if not (0 <= h + kh < H):
                continue
            for w in range(W):
                if 0 <= w + kw < W:
                    base[t, h * W + w, :] = 1.0
    return jnp.asarray(np.tile(base, (1, NB, 1)))        # (9, NB*HW, P)


@functools.lru_cache(maxsize=None)
def _dual_group_avg(E, groups, HW):
    """Block-diagonal (2E, 2E) averaging matrix: (row_sums @ A) gives every
    channel its per-group mean, for both E-channel branches at once."""
    cs = E // groups
    gid = np.arange(E) // cs
    Ae = (gid[:, None] == gid[None, :]).astype(np.float32) / float(HW * cs)
    A2 = np.zeros((2 * E, 2 * E), np.float32)
    A2[:E, :E] = Ae
    A2[E:, E:] = Ae
    return jnp.asarray(A2)


def prepare_params(params):
    """One-time packing of module parameters into 5 kernel operands."""
    Cin, P = params["w1"].shape
    E = params["w3"].shape[1]
    w2f = params["w2"].reshape(9 * P, P)                 # fused (9P, P) conv2 weight
    w3d = jnp.zeros((P + Cin, 2 * E), jnp.float32)       # [[w3, 0], [0, wd]]
    w3d = w3d.at[:P, :E].set(params["w3"])
    w3d = w3d.at[P:, E:].set(params["wd"])
    gbp = jnp.stack([params["g1"], params["b1"], params["g2"], params["b2"]])  # (4, P)
    gbe = jnp.stack([jnp.concatenate([params["g3"], params["gd"]]),
                     jnp.concatenate([params["b3"], params["bd"]])])           # (2, 2E)
    return dict(w1=params["w1"], w2f=w2f, w3d=w3d, gbp=gbp, gbe=gbe,
                Cin=Cin, P=P, E=E)


def bottleneck_forward(x_nchw, prep, H, W, samples_per_block=None):
    N, Cin = x_nchw.shape[0], x_nchw.shape[1]
    P, E = prep["P"], prep["E"]
    assert Cin == prep["Cin"]
    assert P == GROUPS, "per-channel GN specialization assumes planes == GROUPS"
    HW = H * W
    NB = N if samples_per_block is None else samples_per_block
    assert N % NB == 0
    M = NB * HW

    x = jnp.transpose(x_nchw, (0, 2, 3, 1)).reshape(N * HW, Cin)
    masks = _tap_masks(H, W, NB, P)
    A2 = _dual_group_avg(E, GROUPS, HW)

    kernel = functools.partial(bottleneck_kernel, NB=NB, H=H, W=W, P=P, E=E)

    def fixed(shape):            # operand resident across all grid steps
        nd = len(shape)
        return pl.BlockSpec(shape, lambda i: (0,) * nd)

    out = pl.pallas_call(
        kernel,
        out_shape=jax.ShapeDtypeStruct((N, HW, 2 * E), x.dtype),
        grid_spec=pltpu.PrefetchScalarGridSpec(
            num_scalar_prefetch=0,
            grid=(N // NB,),                      # default: whole batch, one step
            in_specs=[
                pl.BlockSpec((M, Cin), lambda i: (i, 0)),     # x rows for chunk i
                fixed((Cin, P)),                              # w1
                fixed((9 * P, P)),                            # fused conv2 weight
                fixed((P + Cin, 2 * E)),                      # [[w3, 0], [0, wd]]
                fixed((2 * E, 2 * E)),                        # group-avg matrix
                fixed((4, P)),                                # g1, b1, g2, b2
                fixed((2, 2 * E)),                            # [g3|gd], [b3|bd]
                fixed((9, M, P)),                             # boundary masks
            ],
            out_specs=pl.BlockSpec((NB, HW, 2 * E), lambda i: (i, 0, 0)),
            scratch_shapes=[pltpu.VMEM((M, 9 * P), jnp.float32)],
        ),
        compiler_params=pltpu.CompilerParams(
            dimension_semantics=("parallel",)),   # chunks independent (v7x megacore)
    )(x, prep["w1"], prep["w2f"], prep["w3d"], A2, prep["gbp"], prep["gbe"], masks)

    out = out[:, :, :E]                           # drop duplicated upper lane half
    return jnp.transpose(out.reshape(N, H, W, E), (0, 3, 1, 2))       # back to NCHW


# ----------------------------------------------------------------------------
# Pure-JAX reference (for correctness check)
# ----------------------------------------------------------------------------
def ref_forward(x, params, H, W):
    P = params["w1"].shape[1]

    def conv1x1(x, w):                       # w: (Cin, Cout)
        return jnp.einsum("nchw,cd->ndhw", x, w)

    def gn(x, gamma, beta):
        N, C, Hh, Ww = x.shape
        cs = C // GROUPS
        xg = x.reshape(N, GROUPS, cs, Hh, Ww)
        mean = xg.mean(axis=(2, 3, 4), keepdims=True)
        var = jnp.mean((xg - mean) ** 2, axis=(2, 3, 4), keepdims=True)
        xn = ((xg - mean) / jnp.sqrt(var + EPS)).reshape(N, C, Hh, Ww)
        return xn * gamma[None, :, None, None] + beta[None, :, None, None]

    out = jax.nn.relu(gn(conv1x1(x, params["w1"]), params["g1"], params["b1"]))
    wconv = jnp.transpose(params["w2"].reshape(3, 3, P, P), (3, 2, 0, 1))  # OIHW
    out = jax.lax.conv_general_dilated(
        out, wconv, window_strides=(1, 1), padding=((1, 1), (1, 1)),
        dimension_numbers=("NCHW", "OIHW", "NCHW"))
    out = jax.nn.relu(gn(out, params["g2"], params["b2"]))
    out = gn(conv1x1(out, params["w3"]), params["g3"], params["b3"])
    identity = gn(conv1x1(x, params["wd"]), params["gd"], params["bd"])
    return jax.nn.relu(out + identity)


# ----------------------------------------------------------------------------
if __name__ == "__main__":
    # Bottleneck(inplanes=32, planes=16, stride=1, dilation=1) -> expansion 4 -> 64
    N, Cin, H, W = 2, 32, 8, 8
    P = 16
    E = P * 4

    key = jax.random.PRNGKey(0)
    ks = jax.random.split(key, 14)
    params = {
        "w1": jax.random.normal(ks[0], (Cin, P), jnp.float32) * 0.1,
        "w2": jax.random.normal(ks[1], (9, P, P), jnp.float32) * 0.1,   # (kh,kw) taps
        "w3": jax.random.normal(ks[2], (P, E), jnp.float32) * 0.1,
        "wd": jax.random.normal(ks[3], (Cin, E), jnp.float32) * 0.1,
        "g1": 1.0 + 0.1 * jax.random.normal(ks[4], (P,), jnp.float32),
        "b1": 0.1 * jax.random.normal(ks[5], (P,), jnp.float32),
        "g2": 1.0 + 0.1 * jax.random.normal(ks[6], (P,), jnp.float32),
        "b2": 0.1 * jax.random.normal(ks[7], (P,), jnp.float32),
        "g3": 1.0 + 0.1 * jax.random.normal(ks[8], (E,), jnp.float32),
        "b3": 0.1 * jax.random.normal(ks[9], (E,), jnp.float32),
        "gd": 1.0 + 0.1 * jax.random.normal(ks[10], (E,), jnp.float32),
        "bd": 0.1 * jax.random.normal(ks[11], (E,), jnp.float32),
    }
    x = jax.random.normal(ks[12], (N, Cin, H, W), jnp.float32)

    prep = prepare_params(params)            # one-time host-side packing
    out = bottleneck_forward(x, prep, H, W)
    out = jax.block_until_ready(out)

    ref = jax.block_until_ready(ref_forward(x, params, H, W))
    if not bool(jnp.allclose(out, ref, atol=1e-3, rtol=1e-3)):
        raise AssertionError("Pallas Bottleneck output mismatch vs JAX reference")

    print("KERNEL_OK")
</pallas_src>

<mosaic_0001>
module attributes {stable_mosaic.version = 11 : i64} {
  func.func @bottleneck_kernel(%arg0: i32, %arg1: memref<128x32xf32, #tpu.memory_space<vmem>>, %arg2: memref<32x16xf32, #tpu.memory_space<vmem>>, %arg3: memref<144x16xf32, #tpu.memory_space<vmem>>, %arg4: memref<48x128xf32, #tpu.memory_space<vmem>>, %arg5: memref<128x128xf32, #tpu.memory_space<vmem>>, %arg6: memref<4x16xf32, #tpu.memory_space<vmem>>, %arg7: memref<2x128xf32, #tpu.memory_space<vmem>>, %arg8: memref<9x128x16xf32, #tpu.memory_space<vmem>>, %arg9: memref<2x64x128xf32, #tpu.memory_space<vmem>>, %arg10: memref<128x144xf32, #tpu.memory_space<vmem>>) attributes {dimension_semantics = [#tpu.dimension_semantics<parallel>], iteration_bounds = array<i64: 1>, scalar_prefetch = 0 : i64, scratch_operands = 1 : i64, tpu.core_type = #tpu.core_type<tc>, window_params = [{transform_indices = @transform_0, window_bounds = array<i64: 128, 32>}, {pipeline_mode = #tpu.pipeline_mode<synchronous>, transform_indices = @transform_1, window_bounds = array<i64: 32, 16>}, {pipeline_mode = #tpu.pipeline_mode<synchronous>, transform_indices = @transform_2, window_bounds = array<i64: 144, 16>}, {pipeline_mode = #tpu.pipeline_mode<synchronous>, transform_indices = @transform_3, window_bounds = array<i64: 48, 128>}, {pipeline_mode = #tpu.pipeline_mode<synchronous>, transform_indices = @transform_4, window_bounds = array<i64: 128, 128>}, {pipeline_mode = #tpu.pipeline_mode<synchronous>, transform_indices = @transform_5, window_bounds = array<i64: 4, 16>}, {pipeline_mode = #tpu.pipeline_mode<synchronous>, transform_indices = @transform_6, window_bounds = array<i64: 2, 128>}, {pipeline_mode = #tpu.pipeline_mode<synchronous>, transform_indices = @transform_7, window_bounds = array<i64: 9, 128, 16>}, {transform_indices = @transform_8, window_bounds = array<i64: 2, 64, 128>}]} {
    %c0 = arith.constant 0 : index
    %c0_0 = arith.constant 0 : index
    %0 = vector.load %arg1[%c0, %c0_0] : memref<128x32xf32, #tpu.memory_space<vmem>>, vector<128x32xf32>
    %c0_1 = arith.constant 0 : index
    %c0_2 = arith.constant 0 : index
    %1 = vector.load %arg2[%c0_1, %c0_2] : memref<32x16xf32, #tpu.memory_space<vmem>>, vector<32x16xf32>
    %cst = arith.constant dense<0.000000e+00> : vector<128x16xf32>
    %2 = tpu.matmul %0, %1, %cst {dimension_numbers = #tpu.dot_dimension_numbers<[1], [0], [0], [1], [0, 0, 1, 1], [], []>} : vector<128x32xf32>, vector<32x16xf32>, vector<128x16xf32> -> vector<128x16xf32>
    %c0_3 = arith.constant 0 : index
    %c0_4 = arith.constant 0 : index
    %3 = vector.load %arg6[%c0_3, %c0_4] : memref<4x16xf32, #tpu.memory_space<vmem>>, vector<1x16xf32>
    %c1 = arith.constant 1 : index
    %c0_5 = arith.constant 0 : index
    %4 = vector.load %arg6[%c1, %c0_5] : memref<4x16xf32, #tpu.memory_space<vmem>>, vector<1x16xf32>
    %5 = vector.shape_cast %2 : vector<128x16xf32> to vector<2x64x16xf32>
    %cst_6 = arith.constant dense<0.000000e+00> : vector<2x16xf32>
    %6 = vector.multi_reduction <add>, %5, %cst_6 [1] : vector<2x64x16xf32> to vector<2x16xf32>
    %7 = vector.shape_cast %6 : vector<2x16xf32> to vector<2x1x16xf32>
    %cst_7 = arith.constant 1.562500e-02 : f32
    %8 = vector.broadcast %cst_7 : f32 to vector<2x1x16xf32>
    %9 = arith.mulf %7, %8 : vector<2x1x16xf32>
    %10 = vector.broadcast %9 : vector<2x1x16xf32> to vector<2x64x16xf32>
    %11 = arith.subf %5, %10 : vector<2x64x16xf32>
    %12 = arith.mulf %11, %11 : vector<2x64x16xf32>
    %cst_8 = arith.constant dense<0.000000e+00> : vector<2x16xf32>
    %13 = vector.multi_reduction <add>, %12, %cst_8 [1] : vector<2x64x16xf32> to vector<2x16xf32>
    %14 = vector.shape_cast %13 : vector<2x16xf32> to vector<2x1x16xf32>
    %cst_9 = arith.constant 1.562500e-02 : f32
    %15 = vector.broadcast %cst_9 : f32 to vector<2x1x16xf32>
    %16 = arith.mulf %14, %15 : vector<2x1x16xf32>
    %cst_10 = arith.constant 9.99999974E-6 : f32
    %17 = vector.broadcast %cst_10 : f32 to vector<2x1x16xf32>
    %18 = arith.addf %16, %17 : vector<2x1x16xf32>
    %19 = math.rsqrt %18 : vector<2x1x16xf32>
    %20 = vector.broadcast %19 : vector<2x1x16xf32> to vector<2x64x16xf32>
    %21 = arith.mulf %11, %20 : vector<2x64x16xf32>
    %22 = vector.shape_cast %3 : vector<1x16xf32> to vector<1x1x16xf32>
    %23 = vector.broadcast %22 : vector<1x1x16xf32> to vector<2x64x16xf32>
    %24 = arith.mulf %21, %23 : vector<2x64x16xf32>
    %25 = vector.shape_cast %4 : vector<1x16xf32> to vector<1x1x16xf32>
    %26 = vector.broadcast %25 : vector<1x1x16xf32> to vector<2x64x16xf32>
    %27 = arith.addf %24, %26 : vector<2x64x16xf32>
    %28 = vector.shape_cast %27 : vector<2x64x16xf32> to vector<128x16xf32>
    %cst_11 = arith.constant 0.000000e+00 : f32
    %29 = vector.broadcast %cst_11 : f32 to vector<128x16xf32>
    %30 = arith.maximumf %28, %29 : vector<128x16xf32>
    %c9_i32 = arith.constant 9 : i32
    %31 = tpu.dynamic_rotate %30 by %c9_i32 dim 0 : vector<128x16xf32>, i32 -> vector<128x16xf32>
    %c0_12 = arith.constant 0 : index
    %c0_13 = arith.constant 0 : index
    %c0_14 = arith.constant 0 : index
    %32 = vector.load %arg8[%c0_12, %c0_13, %c0_14] : memref<9x128x16xf32, #tpu.memory_space<vmem>>, vector<1x128x16xf32>
    %33 = vector.shape_cast %32 : vector<1x128x16xf32> to vector<128x16xf32>
    %34 = arith.mulf %31, %33 : vector<128x16xf32>
    %c0_15 = arith.constant 0 : index
    %c0_16 = arith.constant 0 : index
    %35 = vector.load %arg10[%c0_15, %c0_16] : memref<128x144xf32, #tpu.memory_space<vmem>>, vector<128x16xf32>
    tpu.vector_store %arg10[%c0_15, %c0_16], %34 {strides = array<i32>} : memref<128x144xf32, #tpu.memory_space<vmem>>, vector<128x16xf32>,
    %c8_i32 = arith.constant 8 : i32
    %36 = tpu.dynamic_rotate %30 by %c8_i32 dim 0 : vector<128x16xf32>, i32 -> vector<128x16xf32>
    %c1_17 = arith.constant 1 : index
    %c0_18 = arith.constant 0 : index
    %c0_19 = arith.constant 0 : index
    %37 = vector.load %arg8[%c1_17, %c0_18, %c0_19] : memref<9x128x16xf32, #tpu.memory_space<vmem>>, vector<1x128x16xf32>
    %38 = vector.shape_cast %37 : vector<1x128x16xf32> to vector<128x16xf32>
    %39 = arith.mulf %36, %38 : vector<128x16xf32>
    %c0_20 = arith.constant 0 : index
    %c16 = arith.constant 16 : index
    %40 = vector.load %arg10[%c0_20, %c16] : memref<128x144xf32, #tpu.memory_space<vmem>>, vector<128x16xf32>
    tpu.vector_store %arg10[%c0_20, %c16], %39 {strides = array<i32>} : memref<128x144xf32, #tpu.memory_space<vmem>>, vector<128x16xf32>,
    %c7_i32 = arith.constant 7 : i32
    %41 = tpu.dynamic_rotate %30 by %c7_i32 dim 0 : vector<128x16xf32>, i32 -> vector<128x16xf32>
    %c2 = arith.constant 2 : index
    %c0_21 = arith.constant 0 : index
    %c0_22 = arith.constant 0 : index
    %42 = vector.load %arg8[%c2, %c0_21, %c0_22] : memref<9x128x16xf32, #tpu.memory_space<vmem>>, vector<1x128x16xf32>
    %43 = vector.shape_cast %42 : vector<1x128x16xf32> to vector<128x16xf32>
    %44 = arith.mulf %41, %43 : vector<128x16xf32>
    %c0_23 = arith.constant 0 : index
    %c32 = arith.constant 32 : index
    %45 = vector.load %arg10[%c0_23, %c32] : memref<128x144xf32, #tpu.memory_space<vmem>>, vector<128x16xf32>
    tpu.vector_store %arg10[%c0_23, %c32], %44 {strides = array<i32>} : memref<128x144xf32, #tpu.memory_space<vmem>>, vector<128x16xf32>,
    %c1_i32 = arith.constant 1 : i32
    %46 = tpu.dynamic_rotate %30 by %c1_i32 dim 0 : vector<128x16xf32>, i32 -> vector<128x16xf32>
    %c3 = arith.constant 3 : index
    %c0_24 = arith.constant 0 : index
    %c0_25 = arith.constant 0 : index
    %47 = vector.load %arg8[%c3, %c0_24, %c0_25] : memref<9x128x16xf32, #tpu.memory_space<vmem>>, vector<1x128x16xf32>
    %48 = vector.shape_cast %47 : vector<1x128x16xf32> to vector<128x16xf32>
    %49 = arith.mulf %46, %48 : vector<128x16xf32>
    %c0_26 = arith.constant 0 : index
    %c48 = arith.constant 48 : index
    %50 = vector.load %arg10[%c0_26, %c48] : memref<128x144xf32, #tpu.memory_space<vmem>>, vector<128x16xf32>
    tpu.vector_store %arg10[%c0_26, %c48], %49 {strides = array<i32>} : memref<128x144xf32, #tpu.memory_space<vmem>>, vector<128x16xf32>,
    %c0_27 = arith.constant 0 : index
    %c64 = arith.constant 64 : index
    %51 = vector.load %arg10[%c0_27, %c64] : memref<128x144xf32, #tpu.memory_space<vmem>>, vector<128x16xf32>
    tpu.vector_store %arg10[%c0_27, %c64], %30 {strides = array<i32>} : memref<128x144xf32, #tpu.memory_space<vmem>>, vector<128x16xf32>,
    %c127_i32 = arith.constant 127 : i32
    %52 = tpu.dynamic_rotate %30 by %c127_i32 dim 0 : vector<128x16xf32>, i32 -> vector<128x16xf32>
    %c5 = arith.constant 5 : index
    %c0_28 = arith.constant 0 : index
    %c0_29 = arith.constant 0 : index
    %53 = vector.load %arg8[%c5, %c0_28, %c0_29] : memref<9x128x16xf32, #tpu.memory_space<vmem>>, vector<1x128x16xf32>
    %54 = vector.shape_cast %53 : vector<1x128x16xf32> to vector<128x16xf32>
    %55 = arith.mulf %52, %54 : vector<128x16xf32>
    %c0_30 = arith.constant 0 : index
    %c80 = arith.constant 80 : index
    %56 = vector.load %arg10[%c0_30, %c80] : memref<128x144xf32, #tpu.memory_space<vmem>>, vector<128x16xf32>
    tpu.vector_store %arg10[%c0_30, %c80], %55 {strides = array<i32>} : memref<128x144xf32, #tpu.memory_space<vmem>>, vector<128x16xf32>,
    %c121_i32 = arith.constant 121 : i32
    %57 = tpu.dynamic_rotate %30 by %c121_i32 dim 0 : vector<128x16xf32>, i32 -> vector<128x16xf32>
    %c6 = arith.constant 6 : index
    %c0_31 = arith.constant 0 : index
    %c0_32 = arith.constant 0 : index
    %58 = vector.load %arg8[%c6, %c0_31, %c0_32] : memref<9x128x16xf32, #tpu.memory_space<vmem>>, vector<1x128x16xf32>
    %59 = vector.shape_cast %58 : vector<1x128x16xf32> to vector<128x16xf32>
    %60 = arith.mulf %57, %59 : vector<128x16xf32>
    %c0_33 = arith.constant 0 : index
    %c96 = arith.constant 96 : index
    %61 = vector.load %arg10[%c0_33, %c96] : memref<128x144xf32, #tpu.memory_space<vmem>>, vector<128x16xf32>
    tpu.vector_store %arg10[%c0_33, %c96], %60 {strides = array<i32>} : memref<128x144xf32, #tpu.memory_space<vmem>>, vector<128x16xf32>,
    %c120_i32 = arith.constant 120 : i32
    %62 = tpu.dynamic_rotate %30 by %c120_i32 dim 0 : vector<128x16xf32>, i32 -> vector<128x16xf32>
    %c7 = arith.constant 7 : index
    %c0_34 = arith.constant 0 : index
    %c0_35 = arith.constant 0 : index
    %63 = vector.load %arg8[%c7, %c0_34, %c0_35] : memref<9x128x16xf32, #tpu.memory_space<vmem>>, vector<1x128x16xf32>
    %64 = vector.shape_cast %63 : vector<1x128x16xf32> to vector<128x16xf32>
    %65 = arith.mulf %62, %64 : vector<128x16xf32>
    %c0_36 = arith.constant 0 : index
    %c112 = arith.constant 112 : index
    %66 = vector.load %arg10[%c0_36, %c112] : memref<128x144xf32, #tpu.memory_space<vmem>>, vector<128x16xf32>
    tpu.vector_store %arg10[%c0_36, %c112], %65 {strides = array<i32>} : memref<128x144xf32, #tpu.memory_space<vmem>>, vector<128x16xf32>,
    %c119_i32 = arith.constant 119 : i32
    %67 = tpu.dynamic_rotate %30 by %c119_i32 dim 0 : vector<128x16xf32>, i32 -> vector<128x16xf32>
    %c8 = arith.constant 8 : index
    %c0_37 = arith.constant 0 : index
    %c0_38 = arith.constant 0 : index
    %68 = vector.load %arg8[%c8, %c0_37, %c0_38] : memref<9x128x16xf32, #tpu.memory_space<vmem>>, vector<1x128x16xf32>
    %69 = vector.shape_cast %68 : vector<1x128x16xf32> to vector<128x16xf32>
    %70 = arith.mulf %67, %69 : vector<128x16xf32>
    %c0_39 = arith.constant 0 : index
    %c128 = arith.constant 128 : index
    %71 = vector.load %arg10[%c0_39, %c128] : memref<128x144xf32, #tpu.memory_space<vmem>>, vector<128x16xf32>
    tpu.vector_store %arg10[%c0_39, %c128], %70 {strides = array<i32>} : memref<128x144xf32, #tpu.memory_space<vmem>>, vector<128x16xf32>,
    %c0_40 = arith.constant 0 : index
    %c0_41 = arith.constant 0 : index
    %72 = vector.load %arg10[%c0_40, %c0_41] : memref<128x144xf32, #tpu.memory_space<vmem>>, vector<128x144xf32>
    %c0_42 = arith.constant 0 : index
    %c0_43 = arith.constant 0 : index
    %73 = vector.load %arg3[%c0_42, %c0_43] : memref<144x16xf32, #tpu.memory_space<vmem>>, vector<144x16xf32>
    %cst_44 = arith.constant dense<0.000000e+00> : vector<128x16xf32>
    %74 = tpu.matmul %72, %73, %cst_44 {dimension_numbers = #tpu.dot_dimension_numbers<[1], [0], [0], [1], [0, 0, 1, 1], [], []>} : vector<128x144xf32>, vector<144x16xf32>, vector<128x16xf32> -> vector<128x16xf32>
    %c2_45 = arith.constant 2 : index
    %c0_46 = arith.constant 0 : index
    %75 = vector.load %arg6[%c2_45, %c0_46] : memref<4x16xf32, #tpu.memory_space<vmem>>, vector<1x16xf32>
    %c3_47 = arith.constant 3 : index
    %c0_48 = arith.constant 0 : index
    %76 = vector.load %arg6[%c3_47, %c0_48] : memref<4x16xf32, #tpu.memory_space<vmem>>, vector<1x16xf32>
    %77 = vector.shape_cast %74 : vector<128x16xf32> to vector<2x64x16xf32>
    %cst_49 = arith.constant dense<0.000000e+00> : vector<2x16xf32>
    %78 = vector.multi_reduction <add>, %77, %cst_49 [1] : vector<2x64x16xf32> to vector<2x16xf32>
    %79 = vector.shape_cast %78 : vector<2x16xf32> to vector<2x1x16xf32>
    %cst_50 = arith.constant 1.562500e-02 : f32
    %80 = vector.broadcast %cst_50 : f32 to vector<2x1x16xf32>
    %81 = arith.mulf %79, %80 : vector<2x1x16xf32>
    %82 = vector.broadcast %81 : vector<2x1x16xf32> to vector<2x64x16xf32>
    %83 = arith.subf %77, %82 : vector<2x64x16xf32>
    %84 = arith.mulf %83, %83 : vector<2x64x16xf32>
    %cst_51 = arith.constant dense<0.000000e+00> : vector<2x16xf32>
    %85 = vector.multi_reduction <add>, %84, %cst_51 [1] : vector<2x64x16xf32> to vector<2x16xf32>
    %86 = vector.shape_cast %85 : vector<2x16xf32> to vector<2x1x16xf32>
    %cst_52 = arith.constant 1.562500e-02 : f32
    %87 = vector.broadcast %cst_52 : f32 to vector<2x1x16xf32>
    %88 = arith.mulf %86, %87 : vector<2x1x16xf32>
    %cst_53 = arith.constant 9.99999974E-6 : f32
    %89 = vector.broadcast %cst_53 : f32 to vector<2x1x16xf32>
    %90 = arith.addf %88, %89 : vector<2x1x16xf32>
    %91 = math.rsqrt %90 : vector<2x1x16xf32>
    %92 = vector.broadcast %91 : vector<2x1x16xf32> to vector<2x64x16xf32>
    %93 = arith.mulf %83, %92 : vector<2x64x16xf32>
    %94 = vector.shape_cast %75 : vector<1x16xf32> to vector<1x1x16xf32>
    %95 = vector.broadcast %94 : vector<1x1x16xf32> to vector<2x64x16xf32>
    %96 = arith.mulf %93, %95 : vector<2x64x16xf32>
    %97 = vector.shape_cast %76 : vector<1x16xf32> to vector<1x1x16xf32>
    %98 = vector.broadcast %97 : vector<1x1x16xf32> to vector<2x64x16xf32>
    %99 = arith.addf %96, %98 : vector<2x64x16xf32>
    %100 = vector.shape_cast %99 : vector<2x64x16xf32> to vector<128x16xf32>
    %cst_54 = arith.constant 0.000000e+00 : f32
    %101 = vector.broadcast %cst_54 : f32 to vector<128x16xf32>
    %102 = arith.maximumf %100, %101 : vector<128x16xf32>
    %c0_55 = arith.constant 0 : index
    %c0_56 = arith.constant 0 : index
    %103 = vector.load %arg1[%c0_55, %c0_56] : memref<128x32xf32, #tpu.memory_space<vmem>>, vector<128x32xf32>
    %104 = tpu.concatenate %102, %103 in 1 : vector<128x16xf32>, vector<128x32xf32> -> vector<128x48xf32>
    %c0_57 = arith.constant 0 : index
    %c0_58 = arith.constant 0 : index
    %105 = vector.load %arg4[%c0_57, %c0_58] : memref<48x128xf32, #tpu.memory_space<vmem>>, vector<48x128xf32>
    %cst_59 = arith.constant dense<0.000000e+00> : vector<128x128xf32>
    %106 = tpu.matmul %104, %105, %cst_59 {dimension_numbers = #tpu.dot_dimension_numbers<[1], [0], [0], [1], [0, 0, 1, 1], [], []>} : vector<128x48xf32>, vector<48x128xf32>, vector<128x128xf32> -> vector<128x128xf32>
    %107 = vector.shape_cast %106 : vector<128x128xf32> to vector<2x64x128xf32>
    %cst_60 = arith.constant dense<0.000000e+00> : vector<2x128xf32>
    %108 = vector.multi_reduction <add>, %107, %cst_60 [1] : vector<2x64x128xf32> to vector<2x128xf32>
    %c0_61 = arith.constant 0 : index
    %c0_62 = arith.constant 0 : index
    %109 = vector.load %arg5[%c0_61, %c0_62] : memref<128x128xf32, #tpu.memory_space<vmem>>, vector<128x128xf32>
    %cst_63 = arith.constant dense<0.000000e+00> : vector<2x128xf32>
    %110 = tpu.matmul %108, %109, %cst_63 {dimension_numbers = #tpu.dot_dimension_numbers<[1], [0], [0], [1], [0, 0, 1, 1], [], []>} : vector<2x128xf32>, vector<128x128xf32>, vector<2x128xf32> -> vector<2x128xf32>
    %111 = vector.shape_cast %110 : vector<2x128xf32> to vector<2x1x128xf32>
    %112 = vector.broadcast %111 : vector<2x1x128xf32> to vector<2x64x128xf32>
    %113 = arith.subf %107, %112 : vector<2x64x128xf32>
    %114 = arith.mulf %113, %113 : vector<2x64x128xf32>
    %cst_64 = arith.constant dense<0.000000e+00> : vector<2x128xf32>
    %115 = vector.multi_reduction <add>, %114, %cst_64 [1] : vector<2x64x128xf32> to vector<2x128xf32>
    %c0_65 = arith.constant 0 : index
    %c0_66 = arith.constant 0 : index
    %116 = vector.load %arg5[%c0_65, %c0_66] : memref<128x128xf32, #tpu.memory_space<vmem>>, vector<128x128xf32>
    %cst_67 = arith.constant dense<0.000000e+00> : vector<2x128xf32>
    %117 = tpu.matmul %115, %116, %cst_67 {dimension_numbers = #tpu.dot_dimension_numbers<[1], [0], [0], [1], [0, 0, 1, 1], [], []>} : vector<2x128xf32>, vector<128x128xf32>, vector<2x128xf32> -> vector<2x128xf32>
    %118 = vector.shape_cast %117 : vector<2x128xf32> to vector<2x1x128xf32>
    %cst_68 = arith.constant 9.99999974E-6 : f32
    %119 = vector.broadcast %cst_68 : f32 to vector<2x1x128xf32>
    %120 = arith.addf %118, %119 : vector<2x1x128xf32>
    %121 = math.rsqrt %120 : vector<2x1x128xf32>
    %122 = vector.broadcast %121 : vector<2x1x128xf32> to vector<2x64x128xf32>
    %123 = arith.mulf %113, %122 : vector<2x64x128xf32>
    %c0_69 = arith.constant 0 : index
    %c0_70 = arith.constant 0 : index
    %124 = vector.load %arg7[%c0_69, %c0_70] : memref<2x128xf32, #tpu.memory_space<vmem>>, vector<1x128xf32>
    %125 = vector.shape_cast %124 : vector<1x128xf32> to vector<1x1x128xf32>
    %126 = vector.broadcast %125 : vector<1x1x128xf32> to vector<2x64x128xf32>
    %127 = arith.mulf %123, %126 : vector<2x64x128xf32>
    %c1_71 = arith.constant 1 : index
    %c0_72 = arith.constant 0 : index
    %128 = vector.load %arg7[%c1_71, %c0_72] : memref<2x128xf32, #tpu.memory_space<vmem>>, vector<1x128xf32>
    %129 = vector.shape_cast %128 : vector<1x128xf32> to vector<1x1x128xf32>
    %130 = vector.broadcast %129 : vector<1x1x128xf32> to vector<2x64x128xf32>
    %131 = arith.addf %127, %130 : vector<2x64x128xf32>
    %c64_i32 = arith.constant 64 : i32
    %132 = tpu.dynamic_rotate %131 by %c64_i32 dim 2 : vector<2x64x128xf32>, i32 -> vector<2x64x128xf32>
    %133 = arith.addf %131, %132 : vector<2x64x128xf32>
    %cst_73 = arith.constant 0.000000e+00 : f32
    %134 = vector.broadcast %cst_73 : f32 to vector<2x64x128xf32>
    %135 = arith.maximumf %133, %134 : vector<2x64x128xf32>
    %c0_74 = arith.constant 0 : index
    %c0_75 = arith.constant 0 : index
    %c0_76 = arith.constant 0 : index
    %136 = vector.load %arg9[%c0_74, %c0_75, %c0_76] : memref<2x64x128xf32, #tpu.memory_space<vmem>>, vector<2x64x128xf32>
    tpu.vector_store %arg9[%c0_74, %c0_75, %c0_76], %135 {strides = array<i32>} : memref<2x64x128xf32, #tpu.memory_space<vmem>>, vector<2x64x128xf32>,
    return
  }
  func.func @transform_0(%arg0: i32) -> (i32, i32) {
    %c0_i32 = arith.constant 0 : i32
    %c0_i32_0 = arith.constant 0 : i32
    return %arg0, %c0_i32 : i32, i32
  }
  func.func @transform_1(%arg0: i32) -> (i32, i32) {
    %c0_i32 = arith.constant 0 : i32
    %c0_i32_0 = arith.constant 0 : i32
    %c0_i32_1 = arith.constant 0 : i32
    return %c0_i32, %c0_i32_0 : i32, i32
  }
  func.func @transform_2(%arg0: i32) -> (i32, i32) {
    %c0_i32 = arith.constant 0 : i32
    %c0_i32_0 = arith.constant 0 : i32
    %c0_i32_1 = arith.constant 0 : i32
    return %c0_i32, %c0_i32_0 : i32, i32
  }
  func.func @transform_3(%arg0: i32) -> (i32, i32) {
    %c0_i32 = arith.constant 0 : i32
    %c0_i32_0 = arith.constant 0 : i32
    %c0_i32_1 = arith.constant 0 : i32
    return %c0_i32, %c0_i32_0 : i32, i32
  }
  func.func @transform_4(%arg0: i32) -> (i32, i32) {
    %c0_i32 = arith.constant 0 : i32
    %c0_i32_0 = arith.constant 0 : i32
    %c0_i32_1 = arith.constant 0 : i32
    return %c0_i32, %c0_i32_0 : i32, i32
  }
  func.func @transform_5(%arg0: i32) -> (i32, i32) {
    %c0_i32 = arith.constant 0 : i32
    %c0_i32_0 = arith.constant 0 : i32
    %c0_i32_1 = arith.constant 0 : i32
    return %c0_i32, %c0_i32_0 : i32, i32
  }
  func.func @transform_6(%arg0: i32) -> (i32, i32) {
    %c0_i32 = arith.constant 0 : i32
    %c0_i32_0 = arith.constant 0 : i32
    %c0_i32_1 = arith.constant 0 : i32
    return %c0_i32, %c0_i32_0 : i32, i32
  }
  func.func @transform_7(%arg0: i32) -> (i32, i32, i32) {
    %c0_i32 = arith.constant 0 : i32
    %c0_i32_0 = arith.constant 0 : i32
    %c0_i32_1 = arith.constant 0 : i32
    %c0_i32_2 = arith.constant 0 : i32
    return %c0_i32, %c0_i32_0, %c0_i32_1 : i32, i32, i32
  }
  func.func @transform_8(%arg0: i32) -> (i32, i32, i32) {
    %c0_i32 = arith.constant 0 : i32
    %c0_i32_0 = arith.constant 0 : i32
    %c0_i32_1 = arith.constant 0 : i32
    return %arg0, %c0_i32, %c0_i32_0 : i32, i32, i32
  }
}

</mosaic_0001>

<bundles_post_ra>
// kernel: tpu_custom_call.1
= control target key start
LH: loop header
LB: loop body
LE: loop exit
PB: predicated region body
PF: predicated region fallthrough
CT: control target
= control target key end

     0   :  { %vm50_vm0 = vcmask 261120   ;;  %s5179_s0 = inlined_call_operand.vmem [shape: f32[128,32], index: 0, kind: input, shape index: {}]   ;;  %s5180_s1 = inlined_call_operand.vmem [shape: f32[32,16], index: 1, kind: input, shape index: {}]   ;;  %s5181_s2 = inlined_call_operand.vmem [shape: f32[144,16], index: 2, kind: input, shape index: {}]   ;;  %s5182_s3 = inlined_call_operand.vmem [shape: f32[48,128], index: 3, kind: input, shape index: {}]   ;;  %s5183_s4 = inlined_call_operand.vmem [shape: f32[128,128], index: 4, kind: input, shape index: {}]   ;;  %s5184_s5 = inlined_call_operand.vmem [shape: f32[4,16], index: 5, kind: input, shape index: {}]   ;;  %s5185_s6 = inlined_call_operand.vmem [shape: f32[2,128], index: 6, kind: input, shape index: {}]   ;;  %s5186_s7 = inlined_call_operand.vmem [shape: f32[9,128,16], index: 7, kind: input, shape index: {}]   ;;  %s5187_s8 = inlined_call_operand.hbm [shape: f32[2,64,128], index: 8, kind: output, shape index: {}]  }
   0x1   :  { %v46_v0 = vld [vmem:[%s5180_s1] sm:$0xff]  ;;  %v47_v1 = vld [vmem:[%s5180_s1 + $0x8] sm:$0xff]  ;;  %v48_v2 = vld [vmem:[%s5180_s1 + $0x10] sm:$0xff] }
   0x2   :  { %v2967_v3 = vpack.c.bf16 %v47_v1, %v46_v0  ;;  %v49_v4 = vld [vmem:[%s5180_s1 + $0x18] sm:$0xff]  ;;  %v30_v5 = vld [vmem:[%s5179_s0] sm:$0xff] }
   0x3   :  { %v2971_v6 = vpack.c.bf16 %v49_v4, %v48_v2  ;;  %2837 = vmatprep.mubr.msk.f32.mxu0 %vm50_vm0, %v30_v5 }
   0x4   :  { %2968 = vmatprep.subr.bf16.mxu0 %v2967_v3 }
   0x5   :  { %2970 = vmatpush3.bf16.msra.mxu0 %v2967_v3 }
   0x6   :  { %2972 = vmatprep.subr.bf16.mxu0 %v2971_v6 }
   0x7   :  { %13 = vsyncpa [#allocation4], 0  ;;  %v31_v7 = vld [vmem:[%s5179_s0 + $0x8] sm:$0xff]  ;;  %v32_v8 = vld [vmem:[%s5179_s0 + $0x10] sm:$0xff]  ;;  %vm246_vm1 = vcmask 130048   ;;  %s3130_s25 = smov 64  }
   0x8   :  { %v33_v9 = vld [vmem:[%s5179_s0 + $0x18] sm:$0xff]  ;;  %v34_v10 = vld [vmem:[%s5179_s0 + $0x20] sm:$0xff]  ;;  %v35_v11 = vld [vmem:[%s5179_s0 + $0x28] sm:$0xff]  ;;  %s3131_s16 = smov 16   ;;  %s3132_s29 = smov 112   ;;  %vm623_vm4 = vcmask 261248  }
   0x9   :  { %2974 = vmatpush3.bf16.msra.mxu0 %v2971_v6  ;;  %v36_v12 = vld [vmem:[%s5179_s0 + $0x30] sm:$0xff]  ;;  %v37_v13 = vld [vmem:[%s5179_s0 + $0x38] sm:$0xff]  ;;  %v38_v14 = vld [vmem:[%s5179_s0 + $0x40] sm:$0xff]  ;;  %s3134_s12 = smov 32   ;;  %s3135_s9 = smov 48   ;;  %vm770_vm5 = vcmask 392448  }
   0xa   :  { %v39_v15 = vld [vmem:[%s5179_s0 + $0x48] sm:$0xff]  ;;  %v40_v16 = vld [vmem:[%s5179_s0 + $0x50] sm:$0xff]  ;;  %v41_v17 = vld [vmem:[%s5179_s0 + $0x58] sm:$0xff]  ;;  %s3136_s23 = smov 80   ;;  %s3137_s20 = smov 96   ;;  %vm884_vm6 = vcmask 523648  }
   0xb   :  { %v42_v18 = vld [vmem:[%s5179_s0 + $0x60] sm:$0xff]  ;;  %v43_v19 = vld [vmem:[%s5179_s0 + $0x68] sm:$0xff]  ;;  %v44_v20 = vld [vmem:[%s5179_s0 + $0x70] sm:$0xff]  ;;  %vm965_vm7 = vcmask 654848   ;;  %vm1079_vm8 = vcmask 786048   ;;  %vm1193_vm9 = vcmask 917248  }
   0xc   :  { %2838 = vmatmul.mubr.msk.f32.vlgmr.msra.gmra.mrb[0].mxu0 %vm50_vm0, %v31_v7  ;;  %v45_v21 = vld [vmem:[%s5179_s0 + $0x78] sm:$0xff]  ;;  %vm1307_vm10 = vcmask 1048448   ;;  %vm1916_vm11 = vcmask 392192   ;;  %vm3138_vm12 = vmmov 0   ;;  %vm2154_vm13 = vcmask 1041409  }
   0xd   :  { %2840 = vmatprep.mubr.msk.f32.mxu0 %vm50_vm0, %v32_v8 }
  0x10   :  { %2841 = vmatmul.mubr.msk.f32.gmra.mrb[2].mxu0 %vm50_vm0, %v33_v9 }
  0x11   :  { %2843 = vmatprep.mubr.msk.f32.mxu0 %vm50_vm0, %v34_v10 }
  0x14   :  { %2844 = vmatmul.mubr.msk.f32.gmra.mrb[4].mxu0 %vm50_vm0, %v35_v11 }
  0x15   :  { %2846 = vmatprep.mubr.msk.f32.mxu0 %vm50_vm0, %v36_v12 }
  0x18   :  { %2847 = vmatmul.mubr.msk.f32.gmra.mrb[6].mxu0 %vm50_vm0, %v37_v13 }
  0x19   :  { %2849 = vmatprep.mubr.msk.f32.mxu0 %vm50_vm0, %v38_v14 }
  0x1c   :  { %2850 = vmatmul.mubr.msk.f32.gmra.mrb[8].mxu0 %vm50_vm0, %v39_v15 }
  0x1d   :  { %2852 = vmatprep.mubr.msk.f32.mxu0 %vm50_vm0, %v40_v16 }
  0x20   :  { %2853 = vmatmul.mubr.msk.f32.gmra.mrb[10].mxu0 %vm50_vm0, %v41_v17 }
  0x21   :  { %2855 = vmatprep.mubr.msk.f32.mxu0 %vm50_vm0, %v42_v18 }
  0x24   :  { %2856 = vmatmul.mubr.msk.f32.gmra.mrb[12].mxu0 %vm50_vm0, %v43_v19 }
  0x25   :  { %2858 = vmatprep.mubr.msk.f32.mxu0 %vm50_vm0, %v44_v20 }
  0x28   :  { %2859 = vmatmul.mubr.msk.f32.gmra.mrb[14].mxu0 %vm50_vm0, %v45_v21 }
  0xdf   :  { %v2839_v22 = vpop.f32.mrb[0].mxu0 }
  0xe0   :  { %v248_v23 = vsel %vm246_vm1, %v2839_v22, 0.0  ;;  %v165_v24 = vpop.f32.mrb[1].mxu0 }
  0xe1   :  { %v247_v25 = vsel %vm246_vm1, %v165_v24, 0.0 }
  0xe2   :  { %v249_v26 = vadd.f32 %v248_v23, %v247_v25 }
  0xe3   :  { %v2842_v27 = vpop.f32.mrb[2].mxu0 }
  0xe4   :  { %v175_v28 = vpop.f32.mrb[3].mxu0  ;;  %v252_v31 = vsel %vm246_vm1, %v2842_v27, 0.0 }
  0xe5   :  { %v250_v29 = vsel %vm246_vm1, %v175_v28, 0.0 }
  0xe6   :  { %v251_v30 = vadd.f32 %v250_v29, %v249_v26 }
  0xe7   :  { %v2845_v32 = vpop.f32.mrb[4].mxu0 }
  0xe8   :  { %v185_v33 = vpop.f32.mrb[5].mxu0  ;;  %v253_v34 = vadd.f32 %v252_v31, %v251_v30  ;;  %v256_v37 = vsel %vm246_vm1, %v2845_v32, 0.0 }
  0xe9   :  { %v254_v35 = vsel %vm246_vm1, %v185_v33, 0.0 }
  0xea   :  { %v255_v36 = vadd.f32 %v254_v35, %v253_v34 }
  0xeb   :  { %v2848_v38 = vpop.f32.mrb[6].mxu0 }
  0xec   :  { %v195_v39 = vpop.f32.mrb[7].mxu0  ;;  %v257_v40 = vadd.f32 %v256_v37, %v255_v36  ;;  %v260_v43 = vsel %vm246_vm1, %v2848_v38, 0.0 }
  0xed   :  { %v258_v41 = vsel %vm246_vm1, %v195_v39, 0.0 }
  0xee   :  { %v259_v42 = vadd.f32 %v258_v41, %v257_v40 }
  0xef   :  { %v3273_v44 = vpop.f32.mrb[8].mxu0 }
  0xf0   :  { %v261_v45 = vadd.f32 %v260_v43, %v259_v42  ;;  %v269_v46 = vsel %vm246_vm1, %v3273_v44, 0.0  ;;  %v3277_v47 = vpop.f32.mrb[9].mxu0 }
  0xf1   :  { %v268_v48 = vsel %vm246_vm1, %v3277_v47, 0.0 }
  0xf2   :  { %v262_v49 = vrot.slane %v261_v45, 4  ;;  %v270_v50 = vadd.f32 %v269_v46, %v268_v48 }
  0xf3   :  { %v3281_v51 = vpop.f32.mrb[10].mxu0 }
  0xf4   :  { %v263_v52 = vadd.f32 %v262_v49, %v261_v45  ;;  %v3283_v53 = vpop.f32.mrb[11].mxu0  ;;  %v273_v54 = vsel %vm246_vm1, %v3281_v51, 0.0 }
  0xf5   :  { %v271_v55 = vsel %vm246_vm1, %v3283_v53, 0.0 }
  0xf6   :  { %v264_v56 = vrot.slane %v263_v52, 2  ;;  %v272_v57 = vadd.f32 %v271_v55, %v270_v50 }
  0xf7   :  { %v3289_v58 = vpop.f32.mrb[12].mxu0 }
  0xf8   :  { %v265_v59 = vadd.f32 %v264_v56, %v263_v52  ;;  %v225_v60 = vpop.f32.mrb[13].mxu0  ;;  %v274_v61 = vadd.f32 %v273_v54, %v272_v57  ;;  %v277_v62 = vsel %vm246_vm1, %v3289_v58, 0.0 }
  0xf9   :  { %v275_v63 = vsel %vm246_vm1, %v225_v60, 0.0 }
  0xfa   :  { %v266_v0 = vrot.slane %v265_v59, 1  ;;  %v276_v1 = vadd.f32 %v275_v63, %v274_v61 }
  0xfb   :  { %v2860_v2 = vpop.f32.mrb[14].mxu0 }
  0xfc   :  { %v267_v3 = vadd.f32 %v266_v0, %v265_v59  ;;  %v235_v4 = vpop.f32.mrb[15].mxu0  ;;  %v278_v5 = vadd.f32 %v277_v62, %v276_v1  ;;  %v281_v20 = vsel %vm246_vm1, %v2860_v2, 0.0 }
  0xfd   :  { %v279_v6 = vsel %vm246_vm1, %v235_v4, 0.0 }
  0xfe   :  { %v289_v7 = vmul.f32 0.015625, %v267_v3  ;;  %v280_v8 = vadd.f32 %v279_v6, %v278_v5 }
 0x100   :  { %v3295_v9 = vsub.f32 %v165_v24, %v289_v7  ;;  %v3297_v10 = vsub.f32 %v2839_v22, %v289_v7  ;;  %v3299_v11 = vsub.f32 %v175_v28, %v289_v7  ;;  %v3301_v12 = vsub.f32 %v2842_v27, %v289_v7 }
 0x101   :  { %v3303_v13 = vsub.f32 %v185_v33, %v289_v7  ;;  %v3305_v14 = vsub.f32 %v2845_v32, %v289_v7  ;;  %v3307_v15 = vsub.f32 %v195_v39, %v289_v7  ;;  %v3309_v16 = vsub.f32 %v2848_v38, %v289_v7 }
 0x102   :  { %v307_v17 = vmul.f32 %v3295_v9, %v3295_v9  ;;  %v308_v18 = vmul.f32 %v3297_v10, %v3297_v10  ;;  %v309_v19 = vmul.f32 %v3299_v11, %v3299_v11  ;;  %v310_v21 = vmul.f32 %v3301_v12, %v3301_v12 }
 0x103   :  { %v311_v25 = vmul.f32 %v3303_v13, %v3303_v13  ;;  %v282_v27 = vadd.f32 %v281_v20, %v280_v8  ;;  %v312_v29 = vmul.f32 %v3305_v14, %v3305_v14  ;;  %v313_v33 = vmul.f32 %v3307_v15, %v3307_v15 }
 0x104   :  { %v323_v22 = vsel %vm246_vm1, %v307_v17, 0.0  ;;  %v324_v23 = vsel %vm246_vm1, %v308_v18, 0.0  ;;  %v326_v26 = vsel %vm246_vm1, %v309_v19, 0.0  ;;  %v328_v30 = vsel %vm246_vm1, %v310_v21, 0.0 }
 0x105   :  { %v325_v24 = vadd.f32 %v324_v23, %v323_v22  ;;  %v283_v31 = vrot.slane %v282_v27, 4  ;;  %v330_v34 = vsel %vm246_vm1, %v311_v25, 0.0  ;;  %v314_v37 = vmul.f32 %v3309_v16, %v3309_v16 }
 0x106   :  { %v332_v38 = vsel %vm246_vm1, %v312_v29, 0.0  ;;  %v334_v41 = vsel %vm246_vm1, %v313_v33, 0.0 }
 0x107   :  { %v327_v28 = vadd.f32 %v326_v26, %v325_v24  ;;  %v284_v35 = vadd.f32 %v283_v31, %v282_v27  ;;  %v336_v45 = vsel %vm246_vm1, %v314_v37, 0.0 }
 0x109   :  { %v329_v32 = vadd.f32 %v328_v30, %v327_v28  ;;  %v285_v39 = vrot.slane %v284_v35, 2 }
 0x10b   :  { %v331_v36 = vadd.f32 %v330_v34, %v329_v32  ;;  %v286_v42 = vadd.f32 %v285_v39, %v284_v35  ;;  %v459_v34 = vlaneseq }
 0x10d   :  { %v333_v40 = vadd.f32 %v332_v38, %v331_v36  ;;  %v287_v46 = vrot.slane %v286_v42, 1  ;;  %v3384_v36 = vld [vmem:[%s5184_s5] ss:$0 sm:$0xff] }
 0x10f   :  { %v335_v43 = vadd.f32 %v334_v41, %v333_v40  ;;  %v288_v49 = vadd.f32 %v287_v46, %v286_v42  ;;  %v3393_v42 = vld [vmem:[%s5184_s5 + $0x1] ss:$0 sm:$0xff] }
 0x111   :  { %v337_v48 = vadd.f32 %v336_v45, %v335_v43  ;;  %v290_v52 = vmul.f32 0.015625, %v288_v49  ;;  %v3401_v49 = vshrl.u32 %v459_v34, 7 }
 0x113   :  { %v338_v50 = vrot.slane %v337_v48, 4  ;;  %v3337_v55 = vsub.f32 %v3277_v47, %v290_v52  ;;  %v3340_v56 = vsub.f32 %v3273_v44, %v290_v52  ;;  %v3343_v57 = vsub.f32 %v3283_v53, %v290_v52 }
 0x114   :  { %v3346_v59 = vsub.f32 %v3281_v51, %v290_v52  ;;  %v3348_v62 = vsub.f32 %v225_v60, %v290_v52  ;;  %v3351_v63 = vsub.f32 %v3289_v58, %v290_v52  ;;  %v3353_v0 = vsub.f32 %v235_v4, %v290_v52 }
 0x115   :  { %v339_v54 = vadd.f32 %v338_v50, %v337_v48  ;;  %v3355_v1 = vsub.f32 %v2860_v2, %v290_v52  ;;  %v315_v44 = vmul.f32 %v3337_v55, %v3337_v55  ;;  %v316_v47 = vmul.f32 %v3340_v56, %v3340_v56 }
 0x116   :  { %v317_v51 = vmul.f32 %v3343_v57, %v3343_v57  ;;  %v318_v60 = vmul.f32 %v3346_v59, %v3346_v59  ;;  %v319_v58 = vmul.f32 %v3348_v62, %v3348_v62  ;;  %v320_v7 = vmul.f32 %v3351_v63, %v3351_v63 }
 0x117   :  { %v340_v61 = vrot.slane %v339_v54, 2  ;;  %v344_v3 = vsel %vm246_vm1, %v315_v44, 0.0  ;;  %v345_v2 = vsel %vm246_vm1, %v316_v47, 0.0  ;;  %v321_v19 = vmul.f32 %v3353_v0, %v3353_v0 }
 0x118   :  { %v346_v5 = vadd.f32 %v345_v2, %v344_v3  ;;  %v347_v6 = vsel %vm246_vm1, %v317_v51, 0.0  ;;  %v349_v8 = vsel %vm246_vm1, %v318_v60, 0.0  ;;  %v351_v20 = vsel %vm246_vm1, %v319_v58, 0.0 }
 0x119   :  { %v341_v53 = vadd.f32 %v340_v61, %v339_v54  ;;  %v322_v23 = vmul.f32 %v3355_v1, %v3355_v1  ;;  %v353_v24 = vsel %vm246_vm1, %v320_v7, 0.0  ;;  %v355_v27 = vsel %vm246_vm1, %v321_v19, 0.0 }
 0x11a   :  { %v348_v18 = vadd.f32 %v347_v6, %v346_v5  ;;  %vm656_vm2 = vcmp.lt.s32.totalorder %v3401_v49, 7  ;;  %v2704_v6 = vld [vmem:[%s5186_s7 + $0x418] sm:$0xff]  ;;  %vm461_vm3 = vcmp.lt.s32.totalorder %v3401_v49, 1 }
 0x11b   :  { %v342_v4 = vrot.slane %v341_v53, 1  ;;  %v357_v29 = vsel %vm246_vm1, %v322_v23, 0.0 }
 0x11c   :  { %v350_v22 = vadd.f32 %v349_v8, %v348_v18 }
 0x11d   :  { %v343_v17 = vadd.f32 %v342_v4, %v341_v53 }
 0x11e   :  { %v352_v26 = vadd.f32 %v351_v20, %v350_v22 }
 0x11f   :  { %v365_v21 = vmul.f32 0.015625, %v343_v17 }
 0x120   :  { %v354_v28 = vadd.f32 %v353_v24, %v352_v26 }
 0x121   :  { %v367_v25 = vadd.f32 1e-05, %v365_v21 }
 0x122   :  { %v356_v30 = vadd.f32 %v355_v27, %v354_v28  ;;  %v2702_v27 = vld [vmem:[%s5186_s7 + $0x408] sm:$0xff]  ;;  %v2703_v28 = vld [vmem:[%s5186_s7 + $0x410] sm:$0xff] }
 0x123   :  { %3094 = vrsqrt.f32 %v367_v25 }
 0x124   :  { %v358_v31 = vadd.f32 %v357_v29, %v356_v30 }
 0x126   :  { %v359_v32 = vrot.slane %v358_v31, 4 }
 0x128   :  { %v360_v33 = vadd.f32 %v359_v32, %v358_v31 }
 0x12a   :  { %v361_v37 = vrot.slane %v360_v33, 2 }
 0x12c   :  { %v362_v43 = vadd.f32 %v361_v37, %v360_v33  ;;  %v2608_v33 = vld [vmem:[%s5186_s7 + $0x98] sm:$0xff] }
 0x12d   :  { %v3095_v35 = vpop.eup %3094 }
 0x12e   :  { %v376_v38 = vmul.f32 %v3095_v35, %v3305_v14  ;;  %v377_v39 = vmul.f32 %v3095_v35, %v3307_v15  ;;  %v378_v40 = vmul.f32 %v3095_v35, %v3309_v16  ;;  %v375_v41 = vmul.f32 %v3095_v35, %v3303_v13 }
 0x12f   :  { %v374_v45 = vmul.f32 %v3095_v35, %v3301_v12  ;;  %v371_v46 = vmul.f32 %v3095_v35, %v3295_v9  ;;  %v373_v48 = vmul.f32 %v3095_v35, %v3299_v11  ;;  %v363_v13 = vrot.slane %v362_v43, 1 }
 0x130   :  { %v397_v14 = vmul.f32 %v3384_v36, %v377_v39  ;;  %v395_v15 = vmul.f32 %v3384_v36, %v375_v41  ;;  %v396_v16 = vmul.f32 %v3384_v36, %v376_v38  ;;  %v398_v61 = vmul.f32 %v3384_v36, %v378_v40  ;;  %v2701_v39 = vld [vmem:[%s5186_s7 + $0x400] sm:$0xff] }
 0x131   :  { %v394_v50 = vmul.f32 %v3384_v36, %v374_v45  ;;  %v393_v52 = vmul.f32 %v3384_v36, %v373_v48  ;;  %v364_v9 = vadd.f32 %v363_v13, %v362_v43  ;;  %v391_v3 = vmul.f32 %v3384_v36, %v371_v46  ;;  %v2609_v48 = vld [vmem:[%s5186_s7 + $0xa0] sm:$0xff] }
 0x132   :  { %v415_v54 = vadd.f32 %v3393_v42, %v395_v15  ;;  %v416_v12 = vadd.f32 %v3393_v42, %v396_v16  ;;  %v417_v47 = vadd.f32 %v3393_v42, %v397_v14  ;;  %v372_v7 = vmul.f32 %v3095_v35, %v3297_v10 }
 0x133   :  { %v414_v11 = vadd.f32 %v3393_v42, %v394_v50  ;;  %v413_v44 = vadd.f32 %v3393_v42, %v393_v52  ;;  %v366_v60 = vmul.f32 0.015625, %v364_v9  ;;  %v418_v17 = vadd.f32 %v3393_v42, %v398_v61  ;;  %v2705_v52 = vld [vmem:[%s5186_s7 + $0x420] sm:$0xff] }
 0x134   :  { %v3411_v51 = vmax.f32 %v415_v54, 0.0  ;;  %v3413_v53 = vmax.f32 %v416_v12, 0.0  ;;  %v3432_v18 = vmax.f32 %v417_v47, 0.0  ;;  %v392_v20 = vmul.f32 %v3384_v36, %v372_v7 }
 0x135   :  { %v3416_v58 = vmax.f32 %v414_v11, 0.0  ;;  %v3419_v2 = vmax.f32 %v413_v44, 0.0  ;;  %v368_v8 = vadd.f32 1e-05, %v366_v60  ;;  %v411_v10 = vadd.f32 %v3393_v42, %v391_v3  ;;  %v2706_v11 = vld [vmem:[%s5186_s7 + $0x428] sm:$0xff] }
 0x136   :  { %925 = vrot.lane.b32.xlu0 %v3411_v51, %s3130_s25  ;;  %v644_v4 = vrot.slane %v3411_v51, 1  ;;  %v645_v5 = vrot.slane %v3413_v53, 1  ;;  %v412_v23 = vadd.f32 %v3393_v42, %v392_v20  ;;  %v3450_v24 = vmax.f32 %v418_v17, 0.0 }
 0x137   :  { %923 = vrot.lane.b32.xlu1 %v3416_v58, %s3130_s25  ;;  %3096 = vrsqrt.f32 %v368_v8  ;;  %v642_v22 = vrot.slane %v3419_v2, 1  ;;  %v643_v25 = vrot.slane %v3416_v58, 1  ;;  %v445_v29 = vrot.slane %v3419_v2, 7 }
 0x138   :  { %v3438_v19 = vsel %vm656_vm2, %v644_v4, %v645_v5  ;;  %v3454_v26 = vmax.f32 %v412_v23, 0.0  ;;  %v446_v30 = vrot.slane %v3416_v58, 7  ;;  %v447_v31 = vrot.slane %v3411_v51, 7 }
 0x139   :  { %v1344_v21 = vmul.f32 %v2704_v6, %v3438_v19  ;;  %v3465_v32 = vmax.f32 %v411_v10, 0.0  ;;  %v3472_v34 = vsel %vm656_vm2, %v642_v22, %v643_v25  ;;  %v3476_v35 = vsel %vm656_vm2, %v643_v25, %v644_v4  ;;  %v2689_v6 = vld [vmem:[%s5186_s7 + $0x3a0] sm:$0xff]  ;;  %v2716_v10 = vld [vmem:[%s5186_s7 + $0x478] sm:$0xff] }
 0x13a   :  { %929 = vrot.lane.b32.xlu0 %v3432_v18, %s3130_s25  ;;  %v448_v37 = vrot.slane %v3413_v53, 7  ;;  %v641_v38 = vrot.slane %v3454_v26, 1  ;;  %v1342_v40 = vmul.f32 %v2702_v27, %v3472_v34  ;;  %v1343_v41 = vmul.f32 %v2703_v28, %v3476_v35 }
 0x13b   :  { %927 = vrot.lane.b32.xlu1 %v3413_v53, %s3130_s25  ;;  %1360 = vst.msk [vmem:[#allocation2 + $0x38] sm:$0xff] %vm246_vm1, %v1344_v21  ;;  %v3493_v43 = vsel %vm461_vm3, %v445_v29, %v446_v30  ;;  %v546_v45 = vmul.f32 %v2608_v33, %v3419_v2  ;;  %v3505_v14 = vsel %vm461_vm3, %v446_v30, %v447_v31  ;;  %v646_v50 = vrot.slane %v3432_v18, 1 }
 0x13c   :  { %v3498_v46 = vsel %vm656_vm2, %v641_v38, %v642_v22  ;;  %1358 = vst.msk [vmem:[#allocation2 + $0x18] sm:$0xff] %vm246_vm1, %v1342_v40  ;;  %1359 = vst.msk [vmem:[#allocation2 + $0x28] sm:$0xff] %vm246_vm1, %v1343_v41  ;;  %v3512_v16 = vsel %vm461_vm3, %v447_v31, %v448_v37  ;;  %v547_v12 = vmul.f32 %v2609_v48, %v3416_v58  ;;  %v647_v9 = vrot.slane %v3450_v24, 1  ;;  %v2611_v22 = vld [vmem:[%s5186_s7 + $0xb0] sm:$0xff]  ;;  %v2610_v31 = vld [vmem:[%s5186_s7 + $0xa8] sm:$0xff] }
 0x13d   :  { %v1341_v15 = vmul.f32 %v2701_v39, %v3498_v46  ;;  %v449_v61 = vrot.slane %v3432_v18, 7  ;;  %v450_v44 = vrot.slane %v3450_v24, 7  ;;  %v3546_v4 = vsel %vm656_vm2, %v645_v5, %v646_v50 }
 0x13e   :  { %931 = vrot.lane.b32.xlu0 %v3450_v24, %s3130_s25  ;;  %v1231_v17 = vmul.f32 %v2689_v6, %v3413_v53  ;;  %v640_v21 = vrot.slane %v3465_v32, 1  ;;  %v443_v27 = vrot.slane %v3465_v32, 7  ;;  %v444_v28 = vrot.slane %v3454_v26, 7  ;;  %v483_v6 = vld [vmem:[%s5186_s7 + $0x28] sm:$0xff] }
 0x13f   :  { %917 = vrot.lane.b32.xlu1 %v3465_v32, %s3130_s25  ;;  %1357 = vst.msk [vmem:[#allocation2 + $0x8] sm:$0xff] %vm246_vm1, %v1341_v15  ;;  %v3567_v7 = vsel %vm461_vm3, %v449_v61, %v450_v44  ;;  %v3574_v8 = vsel %vm461_vm3, %v448_v37, %v449_v61  ;;  %v549_v37 = vmul.f32 %v2611_v22, %v3413_v53  ;;  %v2612_v53 = vld [vmem:[%s5186_s7 + $0xb8] sm:$0xff] }
 0x140   :  { %v548_v40 = vmul.f32 %v2610_v31, %v3411_v51 }
 0x141   :  { %v3519_v54 = vpop.eup %3096 }
 0x142   :  { %581 = vrot.lane.b32.xlu0 %v546_v45, %s3131_s16  ;;  %v1380_v13 = vld [vmem:[#allocation2 + $0x38] sm:$0xff]  ;;  %v3534_v47 = vmul.f32 %v3519_v54, %v3351_v63  ;;  %v3538_v60 = vmul.f32 %v3519_v54, %v3353_v0  ;;  %v386_v3 = vmul.f32 %v3519_v54, %v3355_v1  ;;  %v1345_v0 = vmul.f32 %v2705_v52, %v3546_v4 }
 0x143   :  { %919 = vrot.lane.b32.xlu1 %v3454_v26, %s3130_s25  ;;  %2720 = vmatprep.mubr.msk.f32.mxu1 %vm246_vm1, %v1380_v13  ;;  %v2688_v63 = vld [vmem:[%s5186_s7 + $0x398] sm:$0xff]  ;;  %v3559_v1 = vsel %vm656_vm2, %v646_v50, %v647_v9  ;;  %v379_v23 = vmul.f32 %v3519_v54, %v3337_v55  ;;  %v380_v25 = vmul.f32 %v3519_v54, %v3340_v56  ;;  %v482_v50 = vld [vmem:[%s5186_s7 + $0x20] sm:$0xff] }
 0x144   :  { %v1346_v5 = vmul.f32 %v2706_v11, %v3559_v1  ;;  %1361 = vst.msk [vmem:[#allocation2 + $0x48] sm:$0xff] %vm246_vm1, %v1345_v0  ;;  %v1230_v20 = vmul.f32 %v2688_v63, %v3411_v51  ;;  %v3600_v55 = vsel %vm656_vm2, %v640_v21, %v641_v38  ;;  %v3604_v56 = vmul.f32 %v3519_v54, %v3346_v59  ;;  %v2690_v59 = vld [vmem:[%s5186_s7 + $0x3a8] sm:$0xff]  ;;  %v481_v13 = vld [vmem:[%s5186_s7 + $0x18] sm:$0xff] }
 0x145   :  { %v1356_v33 = vmul.f32 %v2716_v10, %v3600_v55  ;;  %v399_v39 = vmul.f32 %v3384_v36, %v379_v23  ;;  %v3615_v38 = vsel %vm461_vm3, %v443_v27, %v444_v28  ;;  %v406_v41 = vmul.f32 %v3384_v36, %v386_v3  ;;  %v1406_v10 = vld [vmem:[%s5181_s2 + $0x8] sm:$0xff]  ;;  %v2613_v23 = vld [vmem:[%s5186_s7 + $0xc0] sm:$0xff] }
 0x146   :  { %583 = vrot.lane.b32.xlu0 %v547_v12, %s3131_s16  ;;  %1362 = vst.msk [vmem:[#allocation2 + $0x58] sm:$0xff] %vm246_vm1, %v1346_v5  ;;  %v1374_v30 = vld [vmem:[#allocation2 + $0x8] sm:$0xff]  ;;  %v3632_v51 = vsel %vm461_vm3, %v444_v28, %v445_v29  ;;  %v1232_v45 = vmul.f32 %v2690_v59, %v3432_v18  ;;  %v550_v52 = vmul.f32 %v2612_v53, %v3432_v18  ;;  %v2691_v29 = vld [vmem:[%s5186_s7 + $0x3b0] sm:$0xff] }
 0x147   :  { %921 = vrot.lane.b32.xlu1 %v3419_v2, %s3130_s25  ;;  %2717 = vmatprep.mubr.msk.f32.mxu0 %vm246_vm1, %v1374_v30  ;;  %1372 = vst.msk [vmem:[#allocation2 + $0xf8] sm:$0xff] %vm246_vm1, %v1356_v33  ;;  %v419_v48 = vadd.f32 %v3393_v42, %v399_v39  ;;  %v426_v15 = vadd.f32 %v3393_v42, %v406_v41  ;;  %v2606_v12 = vld [vmem:[%s5186_s7 + $0x88] sm:$0xff]  ;;  %v484_v18 = vld [vmem:[%s5186_s7 + $0x30] sm:$0xff]  ;;  %v1408_v39 = vld [vmem:[%s5181_s2 + $0x18] sm:$0xff]  ;;  %v3133_v41 = vmov 0.0|0.0  }
 0x148   :  { %v400_v11 = vmul.f32 %v3384_v36, %v380_v25  ;;  %v381_v61 = vmul.f32 %v3519_v54, %v3343_v57  ;;  %v383_v3 = vmul.f32 %v3519_v54, %v3348_v62  ;;  %v497_v0 = vmul.f32 %v481_v13, %v3632_v51  ;;  %v485_v57 = vld [vmem:[%s5186_s7 + $0x38] sm:$0xff]  ;;  %v2685_v25 = vld [vmem:[%s5186_s7 + $0x380] sm:$0xff]  ;;  %v2687_v59 = vld [vmem:[%s5186_s7 + $0x390] sm:$0xff]  ;;  %3062 = vmatprep.subr.bf16.mxu1 %v3133_v41 }
 0x149   :  { %v3663_v63 = vmax.f32 %v426_v15, 0.0  ;;  %v498_v5 = vmul.f32 %v482_v50, %v3493_v43  ;;  %v1233_v62 = vmul.f32 %v2691_v29, %v3450_v24  ;;  %v3671_v54 = vmax.f32 %v419_v48, 0.0  ;;  %2975 = vmatprep.subr.bf16.mxu0 %v3133_v41 }
 0x14a   :  { %1267 = vrot.lane.b32.xlu0 %v1231_v17, %s3132_s29  ;;  %v401_v17 = vmul.f32 %v3384_v36, %v381_v61  ;;  %v544_v22 = vmul.f32 %v2606_v12, %v3465_v32  ;;  %513 = vst.msk [vmem:[#allocation2 + $0x30] sm:$0xff] %vm246_vm1, %v497_v0  ;;  %v500_v28 = vmul.f32 %v484_v18, %v3512_v16  ;;  %v2607_v12 = vld [vmem:[%s5186_s7 + $0x90] sm:$0xff] }
 0x14b   :  { %1265 = vrot.lane.b32.xlu1 %v1230_v20, %s3132_s29  ;;  %v1405_v20 = vld [vmem:[%s5181_s2] sm:$0xff]  ;;  %514 = vst.msk [vmem:[#allocation2 + $0x40] sm:$0xff] %vm246_vm1, %v498_v5  ;;  %v499_v30 = vmul.f32 %v483_v6, %v3505_v14  ;;  %v420_v31 = vadd.f32 %v3393_v42, %v400_v11  ;;  %v501_v33 = vmul.f32 %v485_v57, %v3574_v8  ;;  %v648_v29 = vrot.slane %v3671_v54, 1  ;;  %v2707_v61 = vld [vmem:[%s5186_s7 + $0x430] sm:$0xff] }
 0x14c   :  { %v421_v53 = vadd.f32 %v3393_v42, %v401_v17  ;;  %516 = vst.msk [vmem:[#allocation2 + $0x60] sm:$0xff] %vm246_vm1, %v500_v28  ;;  %v2976_v48 = vpack.c.bf16 %v1406_v10, %v1405_v20  ;;  %v551_v15 = vmul.f32 %v2613_v23, %v3450_v24  ;;  %v1227_v13 = vmul.f32 %v2685_v25, %v3454_v26  ;;  %v1409_v57 = vld [vmem:[%s5181_s2 + $0x20] sm:$0xff]  ;;  %v2715_v10 = vld [vmem:[%s5186_s7 + $0x470] sm:$0xff] }
 0x14d   :  { %515 = vst.msk [vmem:[#allocation2 + $0x50] sm:$0xff] %vm246_vm1, %v499_v30  ;;  %v402_v50 = vmul.f32 %v3384_v36, %v3604_v56  ;;  %517 = vst.msk [vmem:[#allocation2 + $0x70] sm:$0xff] %vm246_vm1, %v501_v33  ;;  %v403_v11 = vmul.f32 %v3384_v36, %v383_v3  ;;  %v480_v3 = vld [vmem:[%s5186_s7 + $0x10] sm:$0xff]  ;;  %v1229_v0 = vmul.f32 %v2687_v59, %v3416_v58  ;;  %v3743_v5 = vmax.f32 %v420_v31, 0.0  ;;  %v2686_v30 = vld [vmem:[%s5186_s7 + $0x388] sm:$0xff] }
 0x14e   :  { %587 = vrot.lane.b32.xlu0 %v549_v37, %s3131_s16  ;;  %v1407_v37 = vld [vmem:[%s5181_s2 + $0x10] sm:$0xff]  ;;  %3071 = vmatpush1.bf16.msra.mxu1 %v2976_v48  ;;  %v3754_v17 = vmax.f32 %v421_v53, 0.0  ;;  %v3764_v58 = vsel %vm656_vm2, %v647_v9, %v648_v29  ;;  %v496_v28 = vmul.f32 %v480_v3, %v3615_v38  ;;  %v2624_v9 = vld [vmem:[%s5186_s7 + $0x118] sm:$0xff] }
 0x14f   :  { %585 = vrot.lane.b32.xlu1 %v548_v40, %s3131_s16  ;;  %v486_v40 = vld [vmem:[%s5186_s7 + $0x40] sm:$0xff]  ;;  %v2979_v18 = vpack.c.bf16 %v1408_v39, %v1407_v37  ;;  %3063 = vmatprep.subr.bf16.mxu1 %v3133_v41  ;;  %v422_v23 = vadd.f32 %v3393_v42, %v402_v50  ;;  %v1347_v25 = vmul.f32 %v2707_v61, %v3764_v58  ;;  %v451_v37 = vrot.slane %v3671_v54, 7  ;;  %v1412_v59 = vld [vmem:[%s5181_s2 + $0x38] sm:$0xff] }
 0x150   :  { %v502_v6 = vmul.f32 %v486_v40, %v3567_v7  ;;  %2977 = vmatpush1.bf16.msra.mxu0 %v2976_v48  ;;  %v423_v31 = vadd.f32 %v3393_v42, %v403_v11  ;;  %v405_v39 = vmul.f32 %v3384_v36, %v3538_v60  ;;  %512 = vst.msk [vmem:[#allocation2 + $0x20] sm:$0xff] %vm246_vm1, %v496_v28  ;;  %v649_v48 = vrot.slane %v3743_v5, 1  ;;  %v2625_v11 = vld [vmem:[%s5186_s7 + $0x120] sm:$0xff]  ;;  %v2710_v28 = vld [vmem:[%s5186_s7 + $0x448] sm:$0xff] }
 0x151   :  { %2978 = vmatprep.subr.bf16.mxu0 %v3133_v41  ;;  %1363 = vst.msk [vmem:[#allocation2 + $0x68] sm:$0xff] %vm246_vm1, %v1347_v25  ;;  %v3813_v53 = vsel %vm461_vm3, %v450_v44, %v451_v37  ;;  %v693_v50 = vmul.f32 %v2624_v9, %v3472_v34  ;;  %v2709_v44 = vld [vmem:[%s5186_s7 + $0x440] sm:$0xff] }
 0x152   :  { %1269 = vrot.lane.b32.xlu0 %v1232_v45, %s3132_s29  ;;  %v458_v45 = vrot.slane %v3663_v63, 7  ;;  %518 = vst.msk [vmem:[#allocation2 + $0x80] sm:$0xff] %vm246_vm1, %v502_v6  ;;  %3072 = vmatpush1.bf16.msra.mxu1 %v2979_v18  ;;  %v3843_v6 = vsel %vm656_vm2, %v648_v29, %v649_v48  ;;  %v1413_v29 = vld [vmem:[%s5181_s2 + $0x40] sm:$0xff] }
 0x153   :  { %589 = vrot.lane.b32.xlu1 %v550_v52, %s3131_s16  ;;  %v479_v52 = vld [vmem:[%s5186_s7 + $0x8] sm:$0xff]  ;;  %3064 = vmatprep.subr.bf16.mxu1 %v3133_v41 }
 0x154   :  { %v3732_v56 = vsel %vm461_vm3, %v458_v45, %v443_v27  ;;  %v404_v27 = vmul.f32 %v3384_v36, %v3534_v47  ;;  %v655_v47 = vrot.slane %v3663_v63, 1  ;;  %v452_v36 = vrot.slane %v3743_v5, 7  ;;  %2980 = vmatpush1.bf16.msra.mxu0 %v2979_v18 }
 0x155   :  { %v495_v20 = vmul.f32 %v479_v52, %v3732_v56  ;;  %v1228_v52 = vmul.f32 %v2686_v30, %v3419_v2  ;;  %v3837_v2 = vmax.f32 %v423_v31, 0.0  ;;  %2981 = vmatprep.subr.bf16.mxu0 %v3133_v41  ;;  %v425_v18 = vadd.f32 %v3393_v42, %v405_v39  ;;  %v2656_v31 = vld [vmem:[%s5186_s7 + $0x298] sm:$0xff] }
 0x156   :  { %1271 = vrot.lane.b32.xlu0 %v1233_v62, %s3132_s29  ;;  %v1410_v62 = vld [vmem:[%s5181_s2 + $0x28] sm:$0xff]  ;;  %v3789_v33 = vsel %vm656_vm2, %v655_v47, %v640_v21  ;;  %v1411_v21 = vld [vmem:[%s5181_s2 + $0x30] sm:$0xff]  ;;  %v424_v60 = vadd.f32 %v3393_v42, %v404_v27  ;;  %v3829_v24 = vsel %vm461_vm3, %v451_v37, %v452_v36  ;;  %v1416_v37 = vld [vmem:[%s5181_s2 + $0x58] sm:$0xff] }
 0x157   :  { %577 = vrot.lane.b32.xlu1 %v544_v22, %s3131_s16  ;;  %v545_v22 = vmul.f32 %v2607_v12, %v3454_v26  ;;  %511 = vst.msk [vmem:[#allocation2 + $0x10] sm:$0xff] %vm246_vm1, %v495_v20  ;;  %v2982_v26 = vpack.c.bf16 %v1410_v62, %v1409_v57  ;;  %v1355_v40 = vmul.f32 %v2715_v10, %v3789_v33  ;;  %v3822_v12 = vmax.f32 %v422_v23, 0.0  ;;  %v1414_v27 = vld [vmem:[%s5181_s2 + $0x48] sm:$0xff] }
 0x158   :  { %v2985_v61 = vpack.c.bf16 %v1412_v59, %v1411_v21  ;;  %v3864_v42 = vmax.f32 %v424_v60, 0.0  ;;  %v694_v20 = vmul.f32 %v2625_v11, %v3476_v35  ;;  %v2988_v23 = vpack.c.bf16 %v1414_v27, %v1413_v29  ;;  %v2657_v60 = vld [vmem:[%s5186_s7 + $0x2a0] sm:$0xff] }
 0x159   :  { %1371 = vst.msk [vmem:[#allocation2 + $0xe8] sm:$0xff] %vm246_vm1, %v1355_v40  ;;  %3073 = vmatpush1.bf16.msra.mxu1 %v2982_v26  ;;  %2983 = vmatpush1.bf16.msra.mxu0 %v2982_v26  ;;  %v651_v25 = vrot.slane %v3822_v12, 1  ;;  %v652_v9 = vrot.slane %v3837_v2, 1  ;;  %v3880_v30 = vmax.f32 %v425_v18, 0.0  ;;  %v1415_v26 = vld [vmem:[%s5181_s2 + $0x50] sm:$0xff]  ;;  %v1417_v11 = vld [vmem:[%s5181_s2 + $0x60] sm:$0xff] }
 0x15a   :  { %591 = vrot.lane.b32.xlu0 %v551_v15, %s3131_s16  ;;  %v2708_v15 = vld [vmem:[%s5186_s7 + $0x438] sm:$0xff]  ;;  %3065 = vmatprep.subr.bf16.mxu1 %v3133_v41  ;;  %v2711_v40 = vld [vmem:[%s5186_s7 + $0x450] sm:$0xff]  ;;  %v653_v21 = vrot.slane %v3864_v42, 1  ;;  %v453_v27 = vrot.slane %v3754_v17, 7 }
 0x15b   :  { %1259 = vrot.lane.b32.xlu1 %v1227_v13, %s3132_s29  ;;  %v650_v13 = vrot.slane %v3754_v17, 1  ;;  %v1348_v57 = vmul.f32 %v2708_v15, %v3843_v6  ;;  %2984 = vmatprep.subr.bf16.mxu0 %v3133_v41  ;;  %v654_v18 = vrot.slane %v3880_v30, 1 }
 0x15d   :  { %v3847_v3 = vsel %vm656_vm2, %v649_v48, %v650_v13  ;;  %1364 = vst.msk [vmem:[#allocation2 + $0x78] sm:$0xff] %vm246_vm1, %v1348_v57  ;;  %3074 = vmatpush1.bf16.msra.mxu1 %v2985_v61  ;;  %v3896_v39 = vsel %vm656_vm2, %v650_v13, %v651_v25  ;;  %v2672_v48 = vld [vmem:[%s5186_s7 + $0x318] sm:$0xff]  ;;  %2986 = vmatpush1.bf16.msra.mxu0 %v2985_v61 }
 0x15e   :  { %1263 = vrot.lane.b32.xlu0 %v1229_v0, %s3132_s29  ;;  %v2640_v0 = vld [vmem:[%s5186_s7 + $0x198] sm:$0xff]  ;;  %v1349_v62 = vmul.f32 %v2709_v44, %v3847_v3  ;;  %3066 = vmatprep.subr.bf16.mxu1 %v3133_v41  ;;  %v1350_v15 = vmul.f32 %v2710_v28, %v3896_v39  ;;  %v1002_v13 = vmul.f32 %v2656_v31, %v3476_v35  ;;  %v1418_v35 = vld [vmem:[%s5181_s2 + $0x68] sm:$0xff] }
 0x15f   :  { %579 = vrot.lane.b32.xlu1 %v545_v22, %s3131_s16  ;;  %v807_v10 = vmul.f32 %v2640_v0, %v3493_v43  ;;  %v2641_v22 = vld [vmem:[%s5186_s7 + $0x1a0] sm:$0xff]  ;;  %v2712_v44 = vld [vmem:[%s5186_s7 + $0x458] sm:$0xff]  ;;  %v1003_v0 = vmul.f32 %v2657_v60, %v3438_v19  ;;  %v1116_v29 = vmul.f32 %v2672_v48, %v3505_v14  ;;  %v3937_v57 = vsel %vm656_vm2, %v652_v9, %v653_v21  ;;  %v2714_v28 = vld [vmem:[%s5186_s7 + $0x468] sm:$0xff] }
 0x160   :  { %1365 = vst.msk [vmem:[#allocation2 + $0x88] sm:$0xff] %vm246_vm1, %v1349_v62  ;;  %v808_v59 = vmul.f32 %v2641_v22, %v3505_v14  ;;  %1366 = vst.msk [vmem:[#allocation2 + $0x98] sm:$0xff] %vm246_vm1, %v1350_v15  ;;  %v2713_v62 = vld [vmem:[%s5186_s7 + $0x460] sm:$0xff]  ;;  %v455_v14 = vrot.slane %v3837_v2, 7  ;;  %v1352_v22 = vmul.f32 %v2712_v44, %v3937_v57  ;;  %2987 = vmatprep.subr.bf16.mxu0 %v3133_v41  ;;  %v488_v44 = vld [vmem:[%s5186_s7 + $0x50] sm:$0xff] }
 0x161   :  { %3075 = vmatpush1.bf16.msra.mxu1 %v2988_v23  ;;  %v3958_v31 = vpack.c.bf16 %v1418_v35, %v1417_v11  ;;  %2989 = vmatpush1.bf16.msra.mxu0 %v2988_v23  ;;  %v3990_v48 = vsel %vm461_vm3, %v452_v36, %v453_v27  ;;  %v489_v11 = vld [vmem:[%s5186_s7 + $0x58] sm:$0xff] }
 0x162   :  { %728 = vrot.lane.b32.xlu0 %v693_v50, %s3134_s12  ;;  %v3911_v50 = vpack.c.bf16 %v1416_v37, %v1415_v26  ;;  %3067 = vmatprep.subr.bf16.mxu1 %v3133_v41  ;;  %v3962_v26 = vsel %vm656_vm2, %v653_v21, %v654_v18  ;;  %v457_v37 = vrot.slane %v3880_v30, 7  ;;  %v1420_v21 = vld [vmem:[%s5181_s2 + $0x78] sm:$0xff]  ;;  %1368 = vst.msk [vmem:[#allocation2 + $0xb8] sm:$0xff] %vm246_vm1, %v1352_v22 }
 0x163   :  { %1261 = vrot.lane.b32.xlu1 %v1228_v52, %s3132_s29  ;;  %v3915_v52 = vsel %vm656_vm2, %v651_v25, %v652_v9  ;;  %v456_v25 = vrot.slane %v3864_v42, 7  ;;  %v2626_v9 = vld [vmem:[%s5186_s7 + $0x128] sm:$0xff]  ;;  %v1353_v60 = vmul.f32 %v2713_v62, %v3962_v26  ;;  %2990 = vmatprep.subr.bf16.mxu0 %v3133_v41 }
 0x164   :  { %v1351_v61 = vmul.f32 %v2711_v40, %v3915_v52  ;;  %v3969_v40 = vsel %vm656_vm2, %v654_v18, %v655_v47  ;;  %v478_v47 = vld [vmem:[%s5186_s7] sm:$0xff]  ;;  %v4019_v18 = vsel %vm461_vm3, %v457_v37, %v458_v45  ;;  %v695_v62 = vmul.f32 %v2626_v9, %v3438_v19  ;;  %v2627_v45 = vld [vmem:[%s5186_s7 + $0x130] sm:$0xff]  ;;  %v2642_v19 = vld [vmem:[%s5186_s7 + $0x1a8] sm:$0xff] }
 0x165   :  { %3076 = vmatpush1.bf16.msra.mxu1 %v3911_v50  ;;  %v1354_v15 = vmul.f32 %v2714_v28, %v3969_v40  ;;  %1369 = vst.msk [vmem:[#allocation2 + $0xc8] sm:$0xff] %vm246_vm1, %v1353_v60  ;;  %v494_v22 = vmul.f32 %v478_v47, %v4019_v18  ;;  %v492_v28 = vld [vmem:[%s5186_s7 + $0x70] sm:$0xff]  ;;  %2992 = vmatpush1.bf16.msra.mxu0 %v3911_v50 }
 0x166   :  { %730 = vrot.lane.b32.xlu0 %v694_v20, %s3134_s12  ;;  %v2673_v20 = vld [vmem:[%s5186_s7 + $0x320] sm:$0xff]  ;;  %1367 = vst.msk [vmem:[#allocation2 + $0xa8] sm:$0xff] %vm246_vm1, %v1351_v61  ;;  %3068 = vmatprep.subr.bf16.mxu1 %v3133_v41  ;;  %v4013_v61 = vsel %vm461_vm3, %v456_v25, %v457_v37  ;;  %v504_v37 = vmul.f32 %v488_v44, %v3829_v24  ;;  %v2628_v44 = vld [vmem:[%s5186_s7 + $0x138] sm:$0xff] }
 0x167   :  { %842 = vrot.lane.b32.xlu1 %v807_v10, %s3135_s9  ;;  %v454_v10 = vrot.slane %v3822_v12, 7  ;;  %v1117_v23 = vmul.f32 %v2673_v20, %v3512_v16  ;;  %1370 = vst.msk [vmem:[#allocation2 + $0xd8] sm:$0xff] %vm246_vm1, %v1354_v15  ;;  %510 = vst.msk [vmem:[#allocation2] sm:$0xff] %vm246_vm1, %v494_v22  ;;  %2993 = vmatprep.subr.bf16.mxu0 %v3133_v41  ;;  %v697_v50 = vmul.f32 %v2628_v44, %v3559_v1  ;;  %v2670_v44 = vld [vmem:[%s5186_s7 + $0x308] sm:$0xff] }
 0x168   :  { %520 = vst.msk [vmem:[#allocation2 + $0xa0] sm:$0xff] %vm246_vm1, %v504_v37 }
 0x169   :  { %v4004_v35 = vsel %vm461_vm3, %v453_v27, %v454_v10  ;;  %v4008_v36 = vsel %vm461_vm3, %v454_v10, %v455_v14  ;;  %v493_v27 = vld [vmem:[%s5186_s7 + $0x78] sm:$0xff]  ;;  %3077 = vmatpush1.bf16.msra.mxu1 %v3958_v31  ;;  %v4038_v10 = vsel %vm461_vm3, %v455_v14, %v456_v25  ;;  %v1421_v14 = vld [vmem:[%s5181_s2 + $0x80] sm:$0xff]  ;;  %v1422_v25 = vld [vmem:[%s5181_s2 + $0x88] sm:$0xff]  ;;  %2995 = vmatpush1.bf16.msra.mxu0 %v3958_v31 }
 0x16a   :  { %844 = vrot.lane.b32.xlu0 %v808_v59, %s3135_s9  ;;  %v1419_v59 = vld [vmem:[%s5181_s2 + $0x70] sm:$0xff]  ;;  %3069 = vmatprep.subr.bf16.mxu1 %v3133_v41  ;;  %v509_v47 = vmul.f32 %v493_v27, %v4013_v61  ;;  %v508_v15 = vmul.f32 %v492_v28, %v4038_v10  ;;  %v2674_v27 = vld [vmem:[%s5186_s7 + $0x328] sm:$0xff] }
 0x16b   :  { %1037 = vrot.lane.b32.xlu1 %v1002_v13, %s3136_s23  ;;  %v487_v13 = vld [vmem:[%s5186_s7 + $0x48] sm:$0xff]  ;;  %v2997_v20 = vpack.c.bf16 %v1420_v21, %v1419_v59  ;;  %v505_v59 = vmul.f32 %v489_v11, %v3990_v48  ;;  %v3000_v11 = vpack.c.bf16 %v1422_v25, %v1421_v14  ;;  %2996 = vmatprep.subr.bf16.mxu0 %v3133_v41  ;;  %v2655_v28 = vld [vmem:[%s5186_s7 + $0x290] sm:$0xff] }
 0x16c   :  { %v503_v9 = vmul.f32 %v487_v13, %v3813_v53  ;;  %v809_v13 = vmul.f32 %v2642_v19, %v3512_v16  ;;  %525 = vst.msk [vmem:[#allocation2 + $0xf0] sm:$0xff] %vm246_vm1, %v509_v47  ;;  %v2658_v16 = vld [vmem:[%s5186_s7 + $0x2a8] sm:$0xff]  ;;  %524 = vst.msk [vmem:[#allocation2 + $0xe0] sm:$0xff] %vm246_vm1, %v508_v15  ;;  %v2659_v19 = vld [vmem:[%s5186_s7 + $0x2b0] sm:$0xff]  ;;  %v1001_v14 = vmul.f32 %v2655_v28, %v3472_v34 }
 0x16d   :  { %3078 = vmatpush1.bf16.msra.mxu1 %v2997_v20  ;;  %521 = vst.msk [vmem:[#allocation2 + $0xb0] sm:$0xff] %vm246_vm1, %v505_v59  ;;  %2998 = vmatpush1.bf16.msra.mxu0 %v2997_v20  ;;  %v1005_v25 = vmul.f32 %v2659_v19, %v3559_v1  ;;  %v2669_v1 = vld [vmem:[%s5186_s7 + $0x300] sm:$0xff]  ;;  %v2638_v59 = vld [vmem:[%s5186_s7 + $0x188] sm:$0xff]  ;;  %v2616_v19 = vld [vmem:[%s5186_s7 + $0xd8] sm:$0xff] }
 0x16e   :  { %1039 = vrot.lane.b32.xlu0 %v1003_v0, %s3136_s23  ;;  %v491_v0 = vld [vmem:[%s5186_s7 + $0x68] sm:$0xff]  ;;  %519 = vst.msk [vmem:[#allocation2 + $0x90] sm:$0xff] %vm246_vm1, %v503_v9  ;;  %3070 = vmatprep.subr.bf16.mxu1 %v3133_v41  ;;  %v1113_v37 = vmul.f32 %v2669_v1, %v3615_v38  ;;  %v2605_v47 = vld [vmem:[%s5186_s7 + $0x80] sm:$0xff] }
 0x16f   :  { %1151 = vrot.lane.b32.xlu1 %v1116_v29, %s3137_s20  ;;  %v490_v29 = vld [vmem:[%s5186_s7 + $0x60] sm:$0xff]  ;;  %v507_v21 = vmul.f32 %v491_v0, %v4008_v36  ;;  %v1004_v0 = vmul.f32 %v2658_v16, %v3546_v4  ;;  %2999 = vmatprep.subr.bf16.mxu0 %v3133_v41  ;;  %v2622_v9 = vld [vmem:[%s5186_s7 + $0x108] sm:$0xff]  ;;  %v1114_v16 = vmul.f32 %v2670_v44, %v3632_v51 }
 0x170   :  { %v506_v60 = vmul.f32 %v490_v29, %v4004_v35  ;;  %v2675_v29 = vld [vmem:[%s5186_s7 + $0x330] sm:$0xff]  ;;  %v691_v34 = vmul.f32 %v2622_v9, %v3600_v55  ;;  %v2693_v1 = vld [vmem:[%s5186_s7 + $0x3c0] sm:$0xff] }
 0x171   :  { %523 = vst.msk [vmem:[#allocation2 + $0xd0] sm:$0xff] %vm246_vm1, %v507_v21  ;;  %3079 = vmatpush1.bf16.msra.mxu1 %v3000_v11  ;;  %v1119_v31 = vmul.f32 %v2675_v29, %v3567_v7  ;;  %3001 = vmatpush1.bf16.msra.mxu0 %v3000_v11  ;;  %v2654_v21 = vld [vmem:[%s5186_s7 + $0x288] sm:$0xff] }
 0x172   :  { %1153 = vrot.lane.b32.xlu0 %v1117_v23, %s3137_s20  ;;  %v696_v23 = vmul.f32 %v2627_v45, %v3546_v4  ;;  %522 = vst.msk [vmem:[#allocation2 + $0xc0] sm:$0xff] %vm246_vm1, %v506_v60  ;;  %3038 = vmatprep.subr.bf16.mxu1 %v3133_v41  ;;  %v1118_v4 = vmul.f32 %v2674_v27, %v3574_v8  ;;  %v2643_v45 = vld [vmem:[%s5186_s7 + $0x1b0] sm:$0xff] }
 0x173   :  { %732 = vrot.lane.b32.xlu1 %v695_v62, %s3134_s12  ;;  %v2644_v62 = vld [vmem:[%s5186_s7 + $0x1b8] sm:$0xff]  ;;  %v810_v20 = vmul.f32 %v2643_v45, %v3574_v8  ;;  %v1000_v60 = vmul.f32 %v2654_v21, %v3498_v46  ;;  %v2615_v27 = vld [vmem:[%s5186_s7 + $0xd0] sm:$0xff]  ;;  %v1235_v21 = vmul.f32 %v2693_v1, %v3743_v5 }
 0x174   :  { %v811_v22 = vmul.f32 %v2644_v62, %v3567_v7  ;;  %v2653_v7 = vld [vmem:[%s5186_s7 + $0x280] sm:$0xff]  ;;  %v553_v62 = vmul.f32 %v2615_v27, %v3743_v5  ;;  %v2676_v1 = vld [vmem:[%s5186_s7 + $0x338] sm:$0xff] }
 0x175   :  { %v999_v8 = vmul.f32 %v2653_v7, %v3600_v55  ;;  %v805_v55 = vmul.f32 %v2638_v59, %v3615_v38  ;;  %v2623_v38 = vld [vmem:[%s5186_s7 + $0x110] sm:$0xff]  ;;  %v2696_v7 = vld [vmem:[%s5186_s7 + $0x3d8] sm:$0xff] }
 0x176   :  { %734 = vrot.lane.b32.xlu0 %v696_v23, %s3134_s12  ;;  %v543_v23 = vmul.f32 %v2605_v47, %v3663_v63  ;;  %v692_v15 = vmul.f32 %v2623_v38, %v3498_v46  ;;  %v2614_v46 = vld [vmem:[%s5186_s7 + $0xc8] sm:$0xff]  ;;  %v1238_v9 = vmul.f32 %v2696_v7, %v3837_v2  ;;  %v2695_v47 = vld [vmem:[%s5186_s7 + $0x3d0] sm:$0xff] }
 0x177   :  { %846 = vrot.lane.b32.xlu1 %v809_v13, %s3135_s9  ;;  %v2692_v13 = vld [vmem:[%s5186_s7 + $0x3b8] sm:$0xff]  ;;  %v2699_v7 = vld [vmem:[%s5186_s7 + $0x3f0] sm:$0xff] }
 0x178   :  { %v1234_v11 = vmul.f32 %v2692_v13, %v3671_v54  ;;  %v2617_v13 = vld [vmem:[%s5186_s7 + $0xe0] sm:$0xff] }
 0x17a   :  { %736 = vrot.lane.b32.xlu0 %v697_v50, %s3134_s12  ;;  %v2639_v50 = vld [vmem:[%s5186_s7 + $0x190] sm:$0xff] }
 0x17b   :  { %1041 = vrot.lane.b32.xlu1 %v1004_v0, %s3136_s23  ;;  %v552_v0 = vmul.f32 %v2614_v46, %v3671_v54  ;;  %v806_v29 = vmul.f32 %v2639_v50, %v3632_v51  ;;  %v555_v46 = vmul.f32 %v2617_v13, %v3822_v12  ;;  %v2637_v50 = vld [vmem:[%s5186_s7 + $0x180] sm:$0xff] }
 0x17e   :  { %1157 = vrot.lane.b32.xlu0 %v1119_v31, %s3137_s20  ;;  %v2671_v31 = vld [vmem:[%s5186_s7 + $0x310] sm:$0xff] }
 0x17f   :  { %1155 = vrot.lane.b32.xlu1 %v1118_v4, %s3137_s20  ;;  %v1115_v51 = vmul.f32 %v2671_v31, %v3493_v43  ;;  %v2660_v31 = vld [vmem:[%s5186_s7 + $0x2b8] sm:$0xff] }
 0x182   :  { %850 = vrot.lane.b32.xlu0 %v811_v22, %s3135_s9 }
 0x183   :  { %848 = vrot.lane.b32.xlu1 %v810_v20, %s3135_s9 }
 0x186   :  { %1035 = vrot.lane.b32.xlu0 %v1001_v14, %s3136_s23  ;;  %v554_v14 = vmul.f32 %v2616_v19, %v3754_v17 }
 0x187   :  { %1043 = vrot.lane.b32.xlu1 %v1005_v25, %s3136_s23 }
 0x18a   :  { %933 = vrot.lane.b32.xlu0 %v3671_v54, %s3130_s25  ;;  %v2694_v54 = vld [vmem:[%s5186_s7 + $0x3c8] sm:$0xff] }
 0x18b   :  { %1031 = vrot.lane.b32.xlu1 %v999_v8, %s3136_s23  ;;  %v1236_v20 = vmul.f32 %v2694_v54, %v3754_v17  ;;  %v1006_v54 = vmul.f32 %v2660_v31, %v3764_v58 }
 0x18e   :  { %935 = vrot.lane.b32.xlu0 %v3743_v5, %s3130_s25  ;;  %v1237_v5 = vmul.f32 %v2695_v47, %v3822_v12  ;;  %v2646_v47 = vld [vmem:[%s5186_s7 + $0x1c8] sm:$0xff] }
 0x18f   :  { %724 = vrot.lane.b32.xlu1 %v691_v34, %s3134_s12  ;;  %v813_v13 = vmul.f32 %v2646_v47, %v3829_v24 }
 0x192   :  { %939 = vrot.lane.b32.xlu0 %v3822_v12, %s3130_s25 }
 0x193   :  { %1145 = vrot.lane.b32.xlu1 %v1113_v37, %s3137_s20 }
 0x196   :  { %943 = vrot.lane.b32.xlu0 %v3864_v42, %s3130_s25 }
 0x197   :  { %838 = vrot.lane.b32.xlu1 %v805_v55, %s3135_s9 }
 0x19a   :  { %947 = vrot.lane.b32.xlu0 %v3663_v63, %s3130_s25 }
 0x19b   :  { %1033 = vrot.lane.b32.xlu1 %v1000_v60, %s3136_s23  ;;  %v2698_v60 = vld [vmem:[%s5186_s7 + $0x3e8] sm:$0xff] }
 0x19e   :  { %575 = vrot.lane.b32.xlu0 %v543_v23, %s3131_s16 }
 0x19f   :  { %726 = vrot.lane.b32.xlu1 %v692_v15, %s3134_s12  ;;  %v2620_v15 = vld [vmem:[%s5186_s7 + $0xf8] sm:$0xff] }
 0x1a2   :  { %1273 = vrot.lane.b32.xlu0 %v1234_v11, %s3132_s29  ;;  %v558_v11 = vmul.f32 %v2620_v15, %v3880_v30 }
 0x1a3   :  { %1147 = vrot.lane.b32.xlu1 %v1114_v16, %s3137_s20 }
 0x1a6   :  { %593 = vrot.lane.b32.xlu0 %v552_v0, %s3131_s16  ;;  %v2697_v0 = vld [vmem:[%s5186_s7 + $0x3e0] sm:$0xff] }
 0x1a7   :  { %840 = vrot.lane.b32.xlu1 %v806_v29, %s3135_s9  ;;  %v804_v29 = vmul.f32 %v2637_v50, %v3732_v56  ;;  %v1239_v12 = vmul.f32 %v2697_v0, %v3864_v42  ;;  %v2630_v0 = vld [vmem:[%s5186_s7 + $0x148] sm:$0xff] }
 0x1a8   :  { %v4194_v4 = vpop.permute.xlu0 %925 }
 0x1a9   :  { %v4197_v45 = vpop.permute.xlu1 %923 }
 0x1aa   :  { %595 = vrot.lane.b32.xlu0 %v553_v62, %s3131_s16  ;;  %v2619_v62 = vld [vmem:[%s5186_s7 + $0xf0] sm:$0xff] }
 0x1ab   :  { %1149 = vrot.lane.b32.xlu1 %v1115_v51, %s3137_s20  ;;  %v557_v19 = vmul.f32 %v2619_v62, %v3864_v42 }
 0x1ac   :  { %v4205_v22 = vpop.permute.xlu0 %929 }
 0x1ad   :  { %v4208_v28 = vpop.permute.xlu1 %927 }
 0x1ae   :  { %1277 = vrot.lane.b32.xlu0 %v1236_v20, %s3132_s29 }
 0x1af   :  { %937 = vrot.lane.b32.xlu1 %v3754_v17, %s3130_s25  ;;  %v2618_v17 = vld [vmem:[%s5186_s7 + $0xe8] sm:$0xff] }
 0x1b0   :  { %v4216_v43 = vpop.permute.xlu0 %931  ;;  %v556_v59 = vmul.f32 %v2618_v17, %v3837_v2  ;;  %v1241_v17 = vmul.f32 %v2699_v7, %v3663_v63  ;;  %v2645_v63 = vld [vmem:[%s5186_s7 + $0x1c0] sm:$0xff] }
 0x1b1   :  { %v4219_v25 = vpop.permute.xlu1 %917 }
 0x1b2   :  { %597 = vrot.lane.b32.xlu0 %v554_v14, %s3131_s16  ;;  %v2629_v14 = vld [vmem:[%s5186_s7 + $0x140] sm:$0xff] }
 0x1b3   :  { %941 = vrot.lane.b32.xlu1 %v3837_v2, %s3130_s25  ;;  %v1240_v2 = vmul.f32 %v2698_v60, %v3880_v30 }
 0x1b4   :  { %v582_v8 = vpop.permute.xlu0 %581 }
 0x1b5   :  { %627 = vst.msk [vmem:[#allocation2 + $0x30] sm:$0xff] %vm623_vm4, %v582_v8  ;;  %v4229_v34 = vpop.permute.xlu1 %919 }
 0x1b6   :  { %1281 = vrot.lane.b32.xlu0 %v1238_v9, %s3132_s29  ;;  %v698_v9 = vmul.f32 %v2629_v14, %v3764_v58  ;;  %v1120_v58 = vmul.f32 %v2676_v1, %v3813_v53  ;;  %v2663_v14 = vld [vmem:[%s5186_s7 + $0x2d0] sm:$0xff] }
 0x1b7   :  { %945 = vrot.lane.b32.xlu1 %v3880_v30, %s3130_s25 }
 0x1b8   :  { %v584_v37 = vpop.permute.xlu0 %583 }
 0x1b9   :  { %628 = vst.msk [vmem:[#allocation2 + $0x40] sm:$0xff] %vm623_vm4, %v584_v37  ;;  %v4242_v55 = vpop.permute.xlu1 %921  ;;  %v2621_v37 = vld [vmem:[%s5186_s7 + $0x100] sm:$0xff] }
 0x1ba   :  { %601 = vrot.lane.b32.xlu0 %v556_v59, %s3131_s16  ;;  %v690_v60 = vmul.f32 %v2621_v37, %v3789_v33 }
 0x1bb   :  { %1275 = vrot.lane.b32.xlu1 %v1235_v21, %s3132_s29 }
 0x1bc   :  { %v4253_v38 = vpop.permute.xlu0 %1267 }
 0x1bd   :  { %v4256_v23 = vpop.permute.xlu1 %1265 }
 0x1be   :  { %1285 = vrot.lane.b32.xlu0 %v1240_v2, %s3132_s29 }
 0x1bf   :  { %1279 = vrot.lane.b32.xlu1 %v1237_v5, %s3132_s29  ;;  %v812_v5 = vmul.f32 %v2645_v63, %v3813_v53 }
 0x1c0   :  { %v588_v44 = vpop.permute.xlu0 %587 }
 0x1c1   :  { %630 = vst.msk [vmem:[#allocation2 + $0x60] sm:$0xff] %vm623_vm4, %v588_v44  ;;  %v586_v16 = vpop.permute.xlu1 %585  ;;  %v2661_v44 = vld [vmem:[%s5186_s7 + $0x2c0] sm:$0xff] }
 0x1c2   :  { %629 = vst.msk [vmem:[#allocation2 + $0x50] sm:$0xff] %vm623_vm4, %v586_v16  ;;  %605 = vrot.lane.b32.xlu0 %v558_v11, %s3131_s16  ;;  %v2662_v11 = vld [vmem:[%s5186_s7 + $0x2c8] sm:$0xff]  ;;  %v1007_v16 = vmul.f32 %v2661_v44, %v3843_v6  ;;  %v2664_v44 = vld [vmem:[%s5186_s7 + $0x2d8] sm:$0xff] }
 0x1c3   :  { %599 = vrot.lane.b32.xlu1 %v555_v46, %s3131_s16  ;;  %v1008_v50 = vmul.f32 %v2662_v11, %v3847_v3 }
 0x1c4   :  { %v4279_v30 = vpop.permute.xlu0 %1269 }
 0x1c5   :  { %v590_v27 = vpop.permute.xlu1 %589 }
 0x1c6   :  { %631 = vst.msk [vmem:[#allocation2 + $0x70] sm:$0xff] %vm623_vm4, %v590_v27  ;;  %836 = vrot.lane.b32.xlu0 %v804_v29, %s3135_s9  ;;  %v2631_v29 = vld [vmem:[%s5186_s7 + $0x150] sm:$0xff] }
 0x1c7   :  { %1283 = vrot.lane.b32.xlu1 %v1239_v12, %s3132_s29  ;;  %v699_v12 = vmul.f32 %v2630_v0, %v3843_v6  ;;  %v700_v62 = vmul.f32 %v2631_v29, %v3847_v3  ;;  %v2647_v6 = vld [vmem:[%s5186_s7 + $0x1d0] sm:$0xff]  ;;  %v2665_v0 = vld [vmem:[%s5186_s7 + $0x2e0] sm:$0xff] }
 0x1c8   :  { %v4292_v51 = vpop.permute.xlu0 %1271 }
 0x1c9   :  { %v578_v20 = vpop.permute.xlu1 %577 }
 0x1ca   :  { %625 = vst.msk [vmem:[#allocation2 + $0x10] sm:$0xff] %vm623_vm4, %v578_v20  ;;  %1045 = vrot.lane.b32.xlu0 %v1006_v54, %s3136_s23  ;;  %v2677_v54 = vld [vmem:[%s5186_s7 + $0x340] sm:$0xff] }
 0x1cb   :  { %603 = vrot.lane.b32.xlu1 %v557_v19, %s3131_s16  ;;  %v1121_v3 = vmul.f32 %v2677_v54, %v3829_v24  ;;  %v814_v19 = vmul.f32 %v2647_v6, %v3990_v48  ;;  %v2650_v6 = vld [vmem:[%s5186_s7 + $0x1e8] sm:$0xff] }
 0x1cc   :  { %v592_v8 = vpop.permute.xlu0 %591 }
 0x1cd   :  { %632 = vst.msk [vmem:[#allocation2 + $0x80] sm:$0xff] %vm623_vm4, %v592_v8  ;;  %v4307_v42 = vpop.permute.xlu1 %1259 }
 0x1ce   :  { %738 = vrot.lane.b32.xlu0 %v698_v9, %s3134_s12  ;;  %v1009_v9 = vmul.f32 %v2663_v14, %v3896_v39  ;;  %v2666_v14 = vld [vmem:[%s5186_s7 + $0x2e8] sm:$0xff] }
 0x1cf   :  { %1287 = vrot.lane.b32.xlu1 %v1241_v17, %s3132_s29  ;;  %v2632_v17 = vld [vmem:[%s5186_s7 + $0x158] sm:$0xff] }
 0x1d0   :  { %v4318_v59 = vpop.permute.xlu0 %1263  ;;  %v701_v1 = vmul.f32 %v2632_v17, %v3896_v39  ;;  %v1382_v39 = vld [vmem:[#allocation2 + $0x48] sm:$0xff]  ;;  %v2667_v17 = vld [vmem:[%s5186_s7 + $0x2f0] sm:$0xff] }
 0x1d1   :  { %v580_v21 = vpop.permute.xlu1 %579 }
 0x1d2   :  { %626 = vst.msk [vmem:[#allocation2 + $0x20] sm:$0xff] %vm623_vm4, %v580_v21  ;;  %1159 = vrot.lane.b32.xlu0 %v1120_v58, %s3137_s20 }
 0x1d3   :  { %722 = vrot.lane.b32.xlu1 %v690_v60, %s3134_s12  ;;  %v2633_v60 = vld [vmem:[%s5186_s7 + $0x160] sm:$0xff] }
 0x1d4   :  { %v729_v2 = vpop.permute.xlu0 %728 }
 0x1d5   :  { %774 = vst.msk [vmem:[#allocation2 + $0x30] sm:$0xff] %vm770_vm5, %v729_v2  ;;  %v4333_v15 = vpop.permute.xlu1 %1261 }
 0x1d6   :  { %852 = vrot.lane.b32.xlu0 %v812_v5, %s3135_s9 }
 0x1d7   :  { %854 = vrot.lane.b32.xlu1 %v813_v13, %s3135_s9  ;;  %v702_v13 = vmul.f32 %v2633_v60, %v3915_v52 }
 0x1d8   :  { %v731_v53 = vpop.permute.xlu0 %730 }
 0x1d9   :  { %775 = vst.msk [vmem:[#allocation2 + $0x40] sm:$0xff] %vm770_vm5, %v731_v53  ;;  %v843_v46 = vpop.permute.xlu1 %842  ;;  %v1010_v53 = vmul.f32 %v2664_v44, %v3915_v52 }
 0x1da   :  { %888 = vst.msk [vmem:[#allocation2 + $0x30] sm:$0xff] %vm884_vm6, %v843_v46  ;;  %1047 = vrot.lane.b32.xlu0 %v1007_v16, %s3136_s23 }
 0x1db   :  { %1049 = vrot.lane.b32.xlu1 %v1008_v50, %s3136_s23  ;;  %969 = vst.msk [vmem:[#allocation2 + $0x30] sm:$0xff] %vm965_vm7, %v4197_v45  ;;  %v2680_v50 = vld [vmem:[%s5186_s7 + $0x358] sm:$0xff] }
 0x1dc   :  { %v845_v27 = vpop.permute.xlu0 %844  ;;  %v1124_v29 = vmul.f32 %v2680_v50, %v4008_v36 }
 0x1dd   :  { %889 = vst.msk [vmem:[#allocation2 + $0x40] sm:$0xff] %vm884_vm6, %v845_v27  ;;  %v1038_v31 = vpop.permute.xlu1 %1037 }
 0x1de   :  { %1083 = vst.msk [vmem:[#allocation2 + $0x30] sm:$0xff] %vm1079_vm8, %v1038_v31  ;;  %740 = vrot.lane.b32.xlu0 %v699_v12, %s3134_s12  ;;  %v1011_v12 = vmul.f32 %v2665_v0, %v3937_v57  ;;  %v2634_v31 = vld [vmem:[%s5186_s7 + $0x168] sm:$0xff] }
 0x1df   :  { %970 = vst.msk [vmem:[#allocation2 + $0x40] sm:$0xff] %vm965_vm7, %v4194_v4  ;;  %742 = vrot.lane.b32.xlu1 %v700_v62, %s3134_s12  ;;  %v2678_v4 = vld [vmem:[%s5186_s7 + $0x348] sm:$0xff]  ;;  %v703_v62 = vmul.f32 %v2634_v31, %v3937_v57 }
 0x1e0   :  { %v1040_v45 = vpop.permute.xlu0 %1039  ;;  %v1122_v7 = vmul.f32 %v2678_v4, %v3990_v48  ;;  %v2679_v48 = vld [vmem:[%s5186_s7 + $0x350] sm:$0xff]  ;;  %v1386_v57 = vld [vmem:[#allocation2 + $0x68] sm:$0xff] }
 0x1e1   :  { %1084 = vst.msk [vmem:[#allocation2 + $0x40] sm:$0xff] %vm1079_vm8, %v1040_v45  ;;  %v1152_v20 = vpop.permute.xlu1 %1151  ;;  %v1123_v58 = vmul.f32 %v2679_v48, %v4004_v35 }
 0x1e2   :  { %1197 = vst.msk [vmem:[#allocation2 + $0x30] sm:$0xff] %vm1193_vm9, %v1152_v20  ;;  %1161 = vrot.lane.b32.xlu0 %v1121_v3, %s3137_s20  ;;  %v817_v20 = vmul.f32 %v2650_v6, %v4038_v10 }
 0x1e3   :  { %1311 = vst.msk [vmem:[#allocation2 + $0x30] sm:$0xff] %vm1307_vm10, %v4256_v23  ;;  %856 = vrot.lane.b32.xlu1 %v814_v19, %s3135_s9 }
 0x1e4   :  { %v1154_v24 = vpop.permute.xlu0 %1153 }
 0x1e5   :  { %1198 = vst.msk [vmem:[#allocation2 + $0x40] sm:$0xff] %vm1193_vm9, %v1154_v24  ;;  %v733_v8 = vpop.permute.xlu1 %732 }
 0x1e6   :  { %1312 = vst.msk [vmem:[#allocation2 + $0x40] sm:$0xff] %vm1307_vm10, %v4253_v38  ;;  %1163 = vrot.lane.b32.xlu0 %v1122_v7, %s3137_s20  ;;  %v2648_v38 = vld [vmem:[%s5186_s7 + $0x1d8] sm:$0xff] }
 0x1e7   :  { %776 = vst.msk [vmem:[#allocation2 + $0x50] sm:$0xff] %vm770_vm5, %v733_v8  ;;  %1051 = vrot.lane.b32.xlu1 %v1009_v9, %s3136_s23  ;;  %v815_v47 = vmul.f32 %v2648_v38, %v4004_v35  ;;  %v1384_v35 = vld [vmem:[#allocation2 + $0x58] sm:$0xff]  ;;  %v2682_v9 = vld [vmem:[%s5186_s7 + $0x368] sm:$0xff] }
 0x1e8   :  { %v735_v23 = vpop.permute.xlu0 %734  ;;  %v2636_v38 = vld [vmem:[%s5186_s7 + $0x178] sm:$0xff] }
 0x1e9   :  { %777 = vst.msk [vmem:[#allocation2 + $0x60] sm:$0xff] %vm770_vm5, %v735_v23  ;;  %v847_v37 = vpop.permute.xlu1 %846  ;;  %v1388_v23 = vld [vmem:[#allocation2 + $0x78] sm:$0xff] }
 0x1ea   :  { %890 = vst.msk [vmem:[#allocation2 + $0x50] sm:$0xff] %vm884_vm6, %v847_v37  ;;  %v1379_v21 = vld [vmem:[#allocation2 + $0x30] sm:$0xff]  ;;  %744 = vrot.lane.b32.xlu0 %v701_v1, %s3134_s12  ;;  %v1126_v1 = vmul.f32 %v2682_v9, %v4013_v61 }
 0x1eb   :  { %971 = vst.msk [vmem:[#allocation2 + $0x50] sm:$0xff] %vm965_vm7, %v4208_v28  ;;  %1551 = vmatmul.mubr.f32.vlgmr.msra.gmra.mrb[0].mxu1 %v1379_v21  ;;  %1165 = vrot.lane.b32.xlu1 %v1123_v58, %s3137_s20  ;;  %v2649_v28 = vld [vmem:[%s5186_s7 + $0x1e0] sm:$0xff]  ;;  %v1013_v58 = vmul.f32 %v2667_v17, %v3969_v40  ;;  %v2683_v21 = vld [vmem:[%s5186_s7 + $0x370] sm:$0xff] }
 0x1ec   :  { %2721 = vmatprep.mubr.msk.f32.mxu1 %vm246_vm1, %v1382_v39  ;;  %v737_v63 = vpop.permute.xlu0 %736  ;;  %v816_v46 = vmul.f32 %v2649_v28, %v4008_v36  ;;  %v2681_v36 = vld [vmem:[%s5186_s7 + $0x360] sm:$0xff]  ;;  %v2684_v28 = vld [vmem:[%s5186_s7 + $0x378] sm:$0xff] }
 0x1ed   :  { %778 = vst.msk [vmem:[#allocation2 + $0x70] sm:$0xff] %vm770_vm5, %v737_v63  ;;  %v1042_v2 = vpop.permute.xlu1 %1041  ;;  %v1381_v5 = vld [vmem:[#allocation2 + $0x40] sm:$0xff]  ;;  %v1127_v63 = vmul.f32 %v2683_v21, %v4019_v18 }
 0x1ee   :  { %1085 = vst.msk [vmem:[#allocation2 + $0x50] sm:$0xff] %vm1079_vm8, %v1042_v2  ;;  %858 = vrot.lane.b32.xlu0 %v815_v47, %s3135_s9  ;;  %v2652_v47 = vld [vmem:[%s5186_s7 + $0x1f8] sm:$0xff] }
 0x1ef   :  { %1556 = vmatmul.mubr.f32.gmra.mrb[2].mxu1 %v1381_v5  ;;  %746 = vrot.lane.b32.xlu1 %v702_v13, %s3134_s12  ;;  %v2668_v2 = vld [vmem:[%s5186_s7 + $0x2f8] sm:$0xff]  ;;  %v819_v5 = vmul.f32 %v2652_v47, %v4019_v18  ;;  %v1128_v18 = vmul.f32 %v2684_v28, %v3732_v56 }
 0x1f0   :  { %2722 = vmatprep.mubr.msk.f32.mxu1 %vm246_vm1, %v1384_v35  ;;  %v1158_v11 = vpop.permute.xlu0 %1157  ;;  %v1014_v44 = vmul.f32 %v2668_v2, %v3789_v33 }
 0x1f1   :  { %v1156_v16 = vpop.permute.xlu1 %1155 }
 0x1f2   :  { %1199 = vst.msk [vmem:[#allocation2 + $0x50] sm:$0xff] %vm1193_vm9, %v1156_v16  ;;  %1053 = vrot.lane.b32.xlu0 %v1010_v53, %s3136_s23 }
 0x1f3   :  { %1313 = vst.msk [vmem:[#allocation2 + $0x50] sm:$0xff] %vm1307_vm10, %v4279_v30  ;;  %860 = vrot.lane.b32.xlu1 %v816_v46, %s3135_s9 }
 0x1f4   :  { %v851_v52 = vpop.permute.xlu0 %850 }
 0x1f5   :  { %892 = vst.msk [vmem:[#allocation2 + $0x70] sm:$0xff] %vm884_vm6, %v851_v52  ;;  %v849_v27 = vpop.permute.xlu1 %848 }
 0x1f6   :  { %973 = vst.msk [vmem:[#allocation2 + $0x70] sm:$0xff] %vm965_vm7, %v4216_v43  ;;  %1167 = vrot.lane.b32.xlu0 %v1124_v29, %s3137_s20  ;;  %v1125_v43 = vmul.f32 %v2681_v36, %v4038_v10  ;;  %v1012_v10 = vmul.f32 %v2666_v14, %v3962_v26 }
 0x1f7   :  { %891 = vst.msk [vmem:[#allocation2 + $0x60] sm:$0xff] %vm884_vm6, %v849_v27  ;;  %1055 = vrot.lane.b32.xlu1 %v1011_v12, %s3136_s23 }
 0x1f8   :  { %972 = vst.msk [vmem:[#allocation2 + $0x60] sm:$0xff] %vm965_vm7, %v4205_v22  ;;  %v4457_v30 = vpop.permute.xlu0 %1035  ;;  %v2635_v22 = vld [vmem:[%s5186_s7 + $0x170] sm:$0xff] }
 0x1f9   :  { %v1044_v54 = vpop.permute.xlu1 %1043  ;;  %v704_v4 = vmul.f32 %v2635_v22, %v3962_v26 }
 0x1fa   :  { %1086 = vst.msk [vmem:[#allocation2 + $0x60] sm:$0xff] %vm1079_vm8, %v1044_v54  ;;  %v1383_v45 = vld [vmem:[#allocation2 + $0x50] sm:$0xff]  ;;  %748 = vrot.lane.b32.xlu0 %v703_v62, %s3134_s12 }
 0x1fb   :  { %1200 = vst.msk [vmem:[#allocation2 + $0x60] sm:$0xff] %vm1193_vm9, %v1158_v11  ;;  %1561 = vmatmul.mubr.f32.gmra.mrb[4].mxu1 %v1383_v45  ;;  %1169 = vrot.lane.b32.xlu1 %v1125_v43, %s3137_s20 }
 0x1fc   :  { %1314 = vst.msk [vmem:[#allocation2 + $0x60] sm:$0xff] %vm1307_vm10, %v4292_v51  ;;  %2723 = vmatprep.mubr.msk.f32.mxu1 %vm246_vm1, %v1386_v57  ;;  %v4474_v3 = vpop.permute.xlu0 %933  ;;  %v2651_v51 = vld [vmem:[%s5186_s7 + $0x1f0] sm:$0xff] }
 0x1fd   :  { %v4477_v19 = vpop.permute.xlu1 %1031  ;;  %v818_v8 = vmul.f32 %v2651_v51, %v4013_v61  ;;  %v705_v61 = vmul.f32 %v2636_v38, %v3969_v40 }
 0x1fe   :  { %862 = vrot.lane.b32.xlu0 %v817_v20, %s3135_s9 }
 0x1ff   :  { %750 = vrot.lane.b32.xlu1 %v704_v4, %s3134_s12 }
 0x200   :  { %v4488_v24 = vpop.permute.xlu0 %935 }
 0x201   :  { %v725_v7 = vpop.permute.xlu1 %724 }
 0x202   :  { %772 = vst.msk [vmem:[#allocation2 + $0x10] sm:$0xff] %vm770_vm5, %v725_v7  ;;  %1057 = vrot.lane.b32.xlu0 %v1012_v10, %s3136_s23 }
 0x203   :  { %864 = vrot.lane.b32.xlu1 %v818_v8, %s3135_s9  ;;  %v1385_v48 = vld [vmem:[#allocation2 + $0x60] sm:$0xff]  ;;  %v1390_v8 = vld [vmem:[#allocation2 + $0x88] sm:$0xff] }
 0x204   :  { %1566 = vmatmul.mubr.f32.gmra.mrb[6].mxu1 %v1385_v48  ;;  %v4501_v26 = vpop.permute.xlu0 %939 }
 0x205   :  { %v4504_v37 = vpop.permute.xlu1 %1145  ;;  %2724 = vmatprep.mubr.msk.f32.mxu1 %vm246_vm1, %v1388_v23 }
 0x206   :  { %1171 = vrot.lane.b32.xlu0 %v1126_v1, %s3137_s20  ;;  %v1378_v1 = vld [vmem:[#allocation2 + $0x28] sm:$0xff] }
 0x207   :  { %1059 = vrot.lane.b32.xlu1 %v1013_v58, %s3136_s23  ;;  %v1815_v58 = vld [vmem:[%s5179_s0 + $0x8] sm:$0xff] }
 0x208   :  { %v4516_v60 = vpop.permute.xlu0 %943 }
 0x209   :  { %v839_v39 = vpop.permute.xlu1 %838 }
 0x20a   :  { %886 = vst.msk [vmem:[#allocation2 + $0x10] sm:$0xff] %vm884_vm6, %v839_v39  ;;  %752 = vrot.lane.b32.xlu0 %v705_v61, %s3134_s12  ;;  %v1816_v61 = vld [vmem:[%s5179_s0 + $0x10] sm:$0xff]  ;;  %v1817_v39 = vld [vmem:[%s5179_s0 + $0x18] sm:$0xff] }
 0x20b   :  { %967 = vst.msk [vmem:[#allocation2 + $0x10] sm:$0xff] %vm965_vm7, %v4229_v34  ;;  %1173 = vrot.lane.b32.xlu1 %v1127_v63, %s3137_s20  ;;  %v2700_v34 = vld [vmem:[%s5186_s7 + $0x3f8] sm:$0xff] }
 0x20c   :  { %v4531_v40 = vpop.permute.xlu0 %947  ;;  %v1242_v33 = vmul.f32 %v2700_v34, %v3465_v32 }
 0x20d   :  { %v1034_v13 = vpop.permute.xlu1 %1033 }
 0x20e   :  { %1081 = vst.msk [vmem:[#allocation2 + $0x10] sm:$0xff] %vm1079_vm8, %v1034_v13  ;;  %866 = vrot.lane.b32.xlu0 %v819_v5, %s3135_s9  ;;  %v1392_v5 = vld [vmem:[#allocation2 + $0x98] sm:$0xff]  ;;  %v1818_v13 = vld [vmem:[%s5179_s0 + $0x20] sm:$0xff] }
 0x20f   :  { %1061 = vrot.lane.b32.xlu1 %v1014_v44, %s3136_s23  ;;  %v1819_v44 = vld [vmem:[%s5179_s0 + $0x28] sm:$0xff] }
 0x210   :  { %v576_v35 = vpop.permute.xlu0 %575 }
 0x211   :  { %v727_v11 = vpop.permute.xlu1 %726  ;;  %624 = vst.msk [vmem:[#allocation2] sm:$0xff] %vm623_vm4, %v576_v35 }
 0x212   :  { %773 = vst.msk [vmem:[#allocation2 + $0x20] sm:$0xff] %vm770_vm5, %v727_v11  ;;  %1175 = vrot.lane.b32.xlu0 %v1128_v18, %s3137_s20  ;;  %v1394_v18 = vld [vmem:[#allocation2 + $0xa8] sm:$0xff]  ;;  %v1820_v11 = vld [vmem:[%s5179_s0 + $0x30] sm:$0xff] }
 0x213   :  { %1289 = vrot.lane.b32.xlu1 %v1242_v33, %s3132_s29  ;;  %v1821_v33 = vld [vmem:[%s5179_s0 + $0x38] sm:$0xff] }
 0x214   :  { %v1274_v53 = vpop.permute.xlu0 %1273 }
 0x215   :  { %v1148_v16 = vpop.permute.xlu1 %1147 }
 0x216   :  { %1195 = vst.msk [vmem:[#allocation2 + $0x10] sm:$0xff] %vm1193_vm9, %v1148_v16 }
 0x217   :  { %1309 = vst.msk [vmem:[#allocation2 + $0x10] sm:$0xff] %vm1307_vm10, %v4333_v15  ;;  %1848 = vrot.lane.b32.xlu1 %v1815_v58, %s3131_s16 }
 0x218   :  { %v594_v46 = vpop.permute.xlu0 %593 }
 0x219   :  { %v841_v56 = vpop.permute.xlu1 %840  ;;  %633 = vst.msk [vmem:[#allocation2 + $0x90] sm:$0xff] %vm623_vm4, %v594_v46  ;;  %v1396_v46 = vld [vmem:[#allocation2 + $0xb8] sm:$0xff] }
 0x21a   :  { %887 = vst.msk [vmem:[#allocation2 + $0x20] sm:$0xff] %vm884_vm6, %v841_v56 }
 0x21b   :  { %968 = vst.msk [vmem:[#allocation2 + $0x20] sm:$0xff] %vm965_vm7, %v4242_v55  ;;  %1852 = vrot.lane.b32.xlu1 %v1817_v39, %s3131_s16 }
 0x21c   :  { %1082 = vst.msk [vmem:[#allocation2 + $0x20] sm:$0xff] %vm1079_vm8, %v4457_v30  ;;  %v596_v32 = vpop.permute.xlu0 %595 }
 0x21d   :  { %v1150_v50 = vpop.permute.xlu1 %1149  ;;  %634 = vst.msk [vmem:[#allocation2 + $0xa0] sm:$0xff] %vm623_vm4, %v596_v32 }
 0x21e   :  { %1196 = vst.msk [vmem:[#allocation2 + $0x20] sm:$0xff] %vm1193_vm9, %v1150_v50  ;;  %v1375_v23 = vld [vmem:[#allocation2 + $0x10] sm:$0xff] }
 0x21f   :  { %1310 = vst.msk [vmem:[#allocation2 + $0x20] sm:$0xff] %vm1307_vm10, %v4318_v59  ;;  %1856 = vrot.lane.b32.xlu1 %v1819_v44, %s3131_s16 }
 0x220   :  { %v4563_v15 = vpop.permute.xlu0 %1277 }
 0x221   :  { %v938_v0 = vpop.permute.xlu1 %937 }
 0x223   :  { %1860 = vrot.lane.b32.xlu1 %v1821_v33, %s3131_s16 }
 0x224   :  { %v598_v52 = vpop.permute.xlu0 %597 }
 0x225   :  { %v4565_v29 = vpop.permute.xlu1 %941  ;;  %635 = vst.msk [vmem:[#allocation2 + $0xb0] sm:$0xff] %vm623_vm4, %v598_v52 }
 0x226   :  { %v1377_v21 = vld [vmem:[#allocation2 + $0x20] sm:$0xff] }
 0x228   :  { %v4568_v55 = vpop.permute.xlu0 %1281 }
 0x229   :  { %v4570_v27 = vpop.permute.xlu1 %945 }
 0x22c   :  { %v602_v12 = vpop.permute.xlu0 %601 }
 0x22d   :  { %v1276_v31 = vpop.permute.xlu1 %1275  ;;  %637 = vst.msk [vmem:[#allocation2 + $0xd0] sm:$0xff] %vm623_vm4, %v602_v12 }
 0x230   :  { %v4573_v36 = vpop.permute.xlu0 %1285 }
 0x231   :  { %v4575_v30 = vpop.permute.xlu1 %1279 }
 0x234   :  { %v606_v59 = vpop.permute.xlu0 %605 }
 0x235   :  { %v600_v62 = vpop.permute.xlu1 %599  ;;  %639 = vst.msk [vmem:[#allocation2 + $0xf0] sm:$0xff] %vm623_vm4, %v606_v59  ;;  %v1400_v59 = vld [vmem:[#allocation2 + $0xd8] sm:$0xff] }
 0x236   :  { %636 = vst.msk [vmem:[#allocation2 + $0xc0] sm:$0xff] %vm623_vm4, %v600_v62 }
 0x238   :  { %v837_v54 = vpop.permute.xlu0 %836 }
 0x239   :  { %v4579_v43 = vpop.permute.xlu1 %1283 }
 0x23c   :  { %v1046_v6 = vpop.permute.xlu0 %1045 }
 0x23d   :  { %v604_v45 = vpop.permute.xlu1 %603  ;;  %1087 = vst.msk [vmem:[#allocation2 + $0x70] sm:$0xff] %vm1079_vm8, %v1046_v6 }
 0x23e   :  { %638 = vst.msk [vmem:[#allocation2 + $0xe0] sm:$0xff] %vm623_vm4, %v604_v45 }
 0x240   :  { %v739_v22 = vpop.permute.xlu0 %738 }
 0x241   :  { %v4583_v57 = vpop.permute.xlu1 %1287  ;;  %779 = vst.msk [vmem:[#allocation2 + $0x80] sm:$0xff] %vm770_vm5, %v739_v22 }
 0x244   :  { %v1160_v20 = vpop.permute.xlu0 %1159 }
 0x245   :  { %v723_v4 = vpop.permute.xlu1 %722  ;;  %1201 = vst.msk [vmem:[#allocation2 + $0x70] sm:$0xff] %vm1193_vm9, %v1160_v20 }
 0x246   :  { %771 = vst.msk [vmem:[#allocation2] sm:$0xff] %vm770_vm5, %v723_v4  ;;  %v1404_v4 = vld [vmem:[#allocation2 + $0xf8] sm:$0xff] }
 0x247   :  { %1315 = vst.msk [vmem:[#allocation2 + $0x70] sm:$0xff] %vm1307_vm10, %v1274_v53 }
 0x248   :  { %885 = vst.msk [vmem:[#allocation2] sm:$0xff] %vm884_vm6, %v837_v54  ;;  %v853_v14 = vpop.permute.xlu0 %852 }
 0x249   :  { %966 = vst.msk [vmem:[#allocation2] sm:$0xff] %vm965_vm7, %v4219_v25  ;;  %v855_v51 = vpop.permute.xlu1 %854 }
 0x24a   :  { %1080 = vst.msk [vmem:[#allocation2] sm:$0xff] %vm1079_vm8, %v4477_v19 }
 0x24b   :  { %893 = vst.msk [vmem:[#allocation2 + $0x80] sm:$0xff] %vm884_vm6, %v853_v14 }
 0x24c   :  { %1194 = vst.msk [vmem:[#allocation2] sm:$0xff] %vm1193_vm9, %v4504_v37  ;;  %v1048_v10 = vpop.permute.xlu0 %1047  ;;  %v1814_v37 = vld [vmem:[%s5179_s0] sm:$0xff] }
 0x24d   :  { %974 = vst.msk [vmem:[#allocation2 + $0x80] sm:$0xff] %vm965_vm7, %v4474_v3  ;;  %v1050_v25 = vpop.permute.xlu1 %1049  ;;  %1846 = vrot.lane.b32.xlu0 %v1814_v37, %s3131_s16  ;;  %v1829_v37 = vld [vmem:[%s5179_s0 + $0x78] sm:$0xff] }
 0x24e   :  { %1308 = vst.msk [vmem:[#allocation2] sm:$0xff] %vm1307_vm10, %v4307_v42  ;;  %v1387_v7 = vld [vmem:[#allocation2 + $0x70] sm:$0xff]  ;;  %v1376_v42 = vld [vmem:[#allocation2 + $0x18] sm:$0xff] }
 0x24f   :  { %1088 = vst.msk [vmem:[#allocation2 + $0x80] sm:$0xff] %vm1079_vm8, %v1048_v10  ;;  %1571 = vmatmul.mubr.f32.gmra.mrb[8].mxu1 %v1387_v7 }
 0x250   :  { %2725 = vmatprep.mubr.msk.f32.mxu1 %vm246_vm1, %v1390_v8  ;;  %v741_v19 = vpop.permute.xlu0 %740 }
 0x251   :  { %780 = vst.msk [vmem:[#allocation2 + $0x90] sm:$0xff] %vm770_vm5, %v741_v19  ;;  %v743_v9 = vpop.permute.xlu1 %742  ;;  %1850 = vrot.lane.b32.xlu0 %v1816_v61, %s3131_s16  ;;  %v1911_v61 = vld [vmem:[%s5182_s3 + $0x8] sm:$0xff] }
 0x252   :  { %894 = vst.msk [vmem:[#allocation2 + $0x90] sm:$0xff] %vm884_vm6, %v855_v51  ;;  %v1823_v51 = vld [vmem:[%s5179_s0 + $0x48] sm:$0xff] }
 0x253   :  { %781 = vst.msk [vmem:[#allocation2 + $0xa0] sm:$0xff] %vm770_vm5, %v743_v9  ;;  %1864 = vrot.lane.b32.xlu1 %v1823_v51, %s3131_s16 }
 0x254   :  { %975 = vst.msk [vmem:[#allocation2 + $0x90] sm:$0xff] %vm965_vm7, %v4488_v24  ;;  %v1162_v17 = vpop.permute.xlu0 %1161 }
 0x255   :  { %v1373_v3 = vld [vmem:[#allocation2] sm:$0xff]  ;;  %1089 = vst.msk [vmem:[#allocation2 + $0x90] sm:$0xff] %vm1079_vm8, %v1050_v25  ;;  %v857_v48 = vpop.permute.xlu1 %856  ;;  %1854 = vrot.lane.b32.xlu0 %v1818_v13, %s3131_s16  ;;  %v1915_v13 = vld [vmem:[%s5182_s3 + $0x28] sm:$0xff] }
 0x256   :  { %1536 = vmatmul.mubr.f32.vlgmr.msra.gmra.mrb[16].mxu0 %v1373_v3  ;;  %1202 = vst.msk [vmem:[#allocation2 + $0x80] sm:$0xff] %vm1193_vm9, %v1162_v17  ;;  %v1824_v17 = vld [vmem:[%s5179_s0 + $0x50] sm:$0xff] }
 0x257   :  { %2718 = vmatprep.mubr.msk.f32.mxu0 %vm246_vm1, %v1376_v42  ;;  %1316 = vst.msk [vmem:[#allocation2 + $0x80] sm:$0xff] %vm1307_vm10, %v1276_v31 }
 0x258   :  { %895 = vst.msk [vmem:[#allocation2 + $0xa0] sm:$0xff] %vm884_vm6, %v857_v48  ;;  %v1164_v24 = vpop.permute.xlu0 %1163  ;;  %v1825_v48 = vld [vmem:[%s5179_s0 + $0x58] sm:$0xff] }
 0x259   :  { %976 = vst.msk [vmem:[#allocation2 + $0xa0] sm:$0xff] %vm965_vm7, %v938_v0  ;;  %v1052_v38 = vpop.permute.xlu1 %1051  ;;  %1858 = vrot.lane.b32.xlu0 %v1820_v11, %s3131_s16  ;;  %1868 = vrot.lane.b32.xlu1 %v1825_v48, %s3131_s16 }
 0x25a   :  { %1541 = vmatmul.mubr.f32.gmra.mrb[18].mxu0 %v1375_v23  ;;  %1203 = vst.msk [vmem:[#allocation2 + $0x90] sm:$0xff] %vm1193_vm9, %v1164_v24  ;;  %v1826_v23 = vld [vmem:[%s5179_s0 + $0x60] sm:$0xff]  ;;  %v1828_v24 = vld [vmem:[%s5179_s0 + $0x70] sm:$0xff] }
 0x25b   :  { %2719 = vmatprep.mubr.msk.f32.mxu0 %vm246_vm1, %v1378_v1  ;;  %1317 = vst.msk [vmem:[#allocation2 + $0x90] sm:$0xff] %vm1307_vm10, %v4563_v15  ;;  %v1827_v1 = vld [vmem:[%s5179_s0 + $0x68] sm:$0xff] }
 0x25c   :  { %1090 = vst.msk [vmem:[#allocation2 + $0xa0] sm:$0xff] %vm1079_vm8, %v1052_v38  ;;  %v745_v63 = vpop.permute.xlu0 %744 }
 0x25d   :  { %782 = vst.msk [vmem:[#allocation2 + $0xb0] sm:$0xff] %vm770_vm5, %v745_v63  ;;  %v1166_v47 = vpop.permute.xlu1 %1165  ;;  %1872 = vrot.lane.b32.xlu1 %v1827_v1, %s3131_s16  ;;  %v1912_v63 = vld [vmem:[%s5182_s3 + $0x10] sm:$0xff] }
 0x25e   :  { %1546 = vmatmul.mubr.f32.gmra.mrb[20].mxu0 %v1377_v21  ;;  %v1389_v2 = vld [vmem:[#allocation2 + $0x80] sm:$0xff]  ;;  %1204 = vst.msk [vmem:[#allocation2 + $0xa0] sm:$0xff] %vm1193_vm9, %v1166_v47  ;;  %v1913_v47 = vld [vmem:[%s5182_s3 + $0x18] sm:$0xff] }
 0x25f   :  { %1576 = vmatmul.mubr.f32.gmra.mrb[10].mxu1 %v1389_v2  ;;  %1318 = vst.msk [vmem:[#allocation2 + $0xa0] sm:$0xff] %vm1307_vm10, %v4575_v30  ;;  %v1910_v21 = vld [vmem:[%s5182_s3] sm:$0xff]  ;;  %v3006_v2 = vpack.c.bf16 %v1913_v47, %v1912_v63 }
 0x260   :  { %2726 = vmatprep.mubr.msk.f32.mxu1 %vm246_vm1, %v1392_v5  ;;  %v859_v28 = vpop.permute.xlu0 %858  ;;  %v3002_v39 = vpack.c.bf16 %v1911_v61, %v1910_v21  ;;  %v1914_v5 = vld [vmem:[%s5182_s3 + $0x20] sm:$0xff] }
 0x261   :  { %896 = vst.msk [vmem:[#allocation2 + $0xb0] sm:$0xff] %vm884_vm6, %v859_v28  ;;  %v747_v34 = vpop.permute.xlu1 %746  ;;  %1876 = vrot.lane.b32.xlu1 %v1829_v37, %s3131_s16 }
 0x262   :  { %v1391_v35 = vld [vmem:[#allocation2 + $0x90] sm:$0xff]  ;;  %977 = vst.msk [vmem:[#allocation2 + $0xb0] sm:$0xff] %vm965_vm7, %v4501_v26  ;;  %3003 = vmatprep.subr.bf16.mxu0 %v3002_v39 }
 0x263   :  { %783 = vst.msk [vmem:[#allocation2 + $0xc0] sm:$0xff] %vm770_vm5, %v747_v34  ;;  %1581 = vmatmul.mubr.f32.gmra.mrb[12].mxu1 %v1391_v35  ;;  %3005 = vmatpush3.bf16.msra.mxu0 %v3002_v39  ;;  %v3010_v34 = vpack.c.bf16 %v1915_v13, %v1914_v5 }
 0x264   :  { %2727 = vmatprep.mubr.msk.f32.mxu1 %vm246_vm1, %v1394_v18  ;;  %v1054_v53 = vpop.permute.xlu0 %1053  ;;  %3007 = vmatprep.subr.bf16.mxu0 %v3006_v2 }
 0x265   :  { %1091 = vst.msk [vmem:[#allocation2 + $0xb0] sm:$0xff] %vm1079_vm8, %v1054_v53  ;;  %v861_v16 = vpop.permute.xlu1 %860 }
 0x266   :  { %897 = vst.msk [vmem:[#allocation2 + $0xc0] sm:$0xff] %vm884_vm6, %v861_v16  ;;  %v1393_v26 = vld [vmem:[#allocation2 + $0xa0] sm:$0xff] }
 0x267   :  { %978 = vst.msk [vmem:[#allocation2 + $0xc0] sm:$0xff] %vm965_vm7, %v4565_v29  ;;  %1586 = vmatmul.mubr.f32.gmra.mrb[14].mxu1 %v1393_v26  ;;  %3009 = vmatpush3.bf16.msra.mxu0 %v3006_v2 }
 0x268   :  { %2728 = vmatprep.mubr.msk.f32.mxu1 %vm246_vm1, %v1396_v46  ;;  %v1168_v56 = vpop.permute.xlu0 %1167  ;;  %3011 = vmatprep.subr.bf16.mxu0 %v3010_v34 }
 0x269   :  { %1205 = vst.msk [vmem:[#allocation2 + $0xb0] sm:$0xff] %vm1193_vm9, %v1168_v56  ;;  %v1056_v32 = vpop.permute.xlu1 %1055 }
 0x26a   :  { %1319 = vst.msk [vmem:[#allocation2 + $0xb0] sm:$0xff] %vm1307_vm10, %v4568_v55  ;;  %v1398_v55 = vld [vmem:[#allocation2 + $0xc8] sm:$0xff] }
 0x26b   :  { %1092 = vst.msk [vmem:[#allocation2 + $0xc0] sm:$0xff] %vm1079_vm8, %v1056_v32  ;;  %3013 = vmatpush3.bf16.msra.mxu0 %v3010_v34 }
 0x26c   :  { %v749_v50 = vpop.permute.xlu0 %748  ;;  %3014 = vmatprep.subr.bf16.mxu0 %v3133_v41 }
 0x26d   :  { %784 = vst.msk [vmem:[#allocation2 + $0xd0] sm:$0xff] %vm770_vm5, %v749_v50  ;;  %v1170_v15 = vpop.permute.xlu1 %1169 }
 0x26e   :  { %1206 = vst.msk [vmem:[#allocation2 + $0xc0] sm:$0xff] %vm1193_vm9, %v1170_v15 }
 0x26f   :  { %1320 = vst.msk [vmem:[#allocation2 + $0xc0] sm:$0xff] %vm1307_vm10, %v4579_v43 }
 0x270   :  { %v863_v0 = vpop.permute.xlu0 %862 }
 0x271   :  { %898 = vst.msk [vmem:[#allocation2 + $0xd0] sm:$0xff] %vm884_vm6, %v863_v0  ;;  %v751_v52 = vpop.permute.xlu1 %750  ;;  %v1395_v29 = vld [vmem:[#allocation2 + $0xb0] sm:$0xff] }
 0x272   :  { %979 = vst.msk [vmem:[#allocation2 + $0xd0] sm:$0xff] %vm965_vm7, %v4516_v60  ;;  %1591 = vmatmul.mubr.f32.gmra.mrb[16].mxu1 %v1395_v29 }
 0x273   :  { %785 = vst.msk [vmem:[#allocation2 + $0xe0] sm:$0xff] %vm770_vm5, %v751_v52  ;;  %2729 = vmatprep.mubr.msk.f32.mxu1 %vm246_vm1, %v1398_v55 }
 0x274   :  { %v1058_v12 = vpop.permute.xlu0 %1057 }
 0x275   :  { %1093 = vst.msk [vmem:[#allocation2 + $0xd0] sm:$0xff] %vm1079_vm8, %v1058_v12  ;;  %v865_v31 = vpop.permute.xlu1 %864 }
 0x276   :  { %899 = vst.msk [vmem:[#allocation2 + $0xe0] sm:$0xff] %vm884_vm6, %v865_v31  ;;  %v1397_v30 = vld [vmem:[#allocation2 + $0xc0] sm:$0xff] }
 0x277   :  { %980 = vst.msk [vmem:[#allocation2 + $0xe0] sm:$0xff] %vm965_vm7, %v4570_v27  ;;  %1596 = vmatmul.mubr.f32.gmra.mrb[18].mxu1 %v1397_v30 }
 0x278   :  { %2730 = vmatprep.mubr.msk.f32.mxu1 %vm246_vm1, %v1400_v59  ;;  %v1172_v60 = vpop.permute.xlu0 %1171 }
 0x279   :  { %1207 = vst.msk [vmem:[#allocation2 + $0xd0] sm:$0xff] %vm1193_vm9, %v1172_v60  ;;  %v1060_v62 = vpop.permute.xlu1 %1059 }
 0x27a   :  { %1321 = vst.msk [vmem:[#allocation2 + $0xd0] sm:$0xff] %vm1307_vm10, %v4573_v36  ;;  %v1402_v36 = vld [vmem:[#allocation2 + $0xe8] sm:$0xff] }
 0x27b   :  { %1094 = vst.msk [vmem:[#allocation2 + $0xe0] sm:$0xff] %vm1079_vm8, %v1060_v62 }
 0x27c   :  { %v753_v54 = vpop.permute.xlu0 %752 }
 0x27d   :  { %786 = vst.msk [vmem:[#allocation2 + $0xf0] sm:$0xff] %vm770_vm5, %v753_v54  ;;  %v1174_v43 = vpop.permute.xlu1 %1173 }
 0x27e   :  { %1208 = vst.msk [vmem:[#allocation2 + $0xe0] sm:$0xff] %vm1193_vm9, %v1174_v43 }
 0x27f   :  { %1322 = vst.msk [vmem:[#allocation2 + $0xe0] sm:$0xff] %vm1307_vm10, %v4583_v57 }
 0x280   :  { %v867_v27 = vpop.permute.xlu0 %866 }
 0x281   :  { %900 = vst.msk [vmem:[#allocation2 + $0xf0] sm:$0xff] %vm884_vm6, %v867_v27  ;;  %v1062_v6 = vpop.permute.xlu1 %1061  ;;  %v1399_v45 = vld [vmem:[#allocation2 + $0xd0] sm:$0xff] }
 0x282   :  { %981 = vst.msk [vmem:[#allocation2 + $0xf0] sm:$0xff] %vm965_vm7, %v4531_v40  ;;  %1601 = vmatmul.mubr.f32.gmra.mrb[20].mxu1 %v1399_v45  ;;  %v1822_v40 = vld [vmem:[%s5179_s0 + $0x40] sm:$0xff] }
 0x283   :  { %1095 = vst.msk [vmem:[#allocation2 + $0xf0] sm:$0xff] %vm1079_vm8, %v1062_v6  ;;  %2731 = vmatprep.mubr.msk.f32.mxu1 %vm246_vm1, %v1402_v36  ;;  %1862 = vrot.lane.b32.xlu0 %v1822_v40, %s3131_s16 }
 0x284   :  { %v1176_v22 = vpop.permute.xlu0 %1175 }
 0x285   :  { %1209 = vst.msk [vmem:[#allocation2 + $0xf0] sm:$0xff] %vm1193_vm9, %v1176_v22  ;;  %v1290_v20 = vpop.permute.xlu1 %1289 }
 0x286   :  { %1323 = vst.msk [vmem:[#allocation2 + $0xf0] sm:$0xff] %vm1307_vm10, %v1290_v20  ;;  %v1401_v57 = vld [vmem:[#allocation2 + $0xe0] sm:$0xff] }
 0x287   :  { %1606 = vmatmul.mubr.f32.gmra.mrb[22].mxu1 %v1401_v57  ;;  %1866 = vrot.lane.b32.xlu0 %v1824_v17, %s3131_s16 }
 0x288   :  { %2732 = vmatprep.mubr.msk.f32.mxu1 %vm246_vm1, %v1404_v4 }
 0x28b   :  { %1870 = vrot.lane.b32.xlu0 %v1826_v23, %s3131_s16 }
 0x28d   :  { %v1403_v14 = vld [vmem:[#allocation2 + $0xf0] sm:$0xff] }
 0x28e   :  { %1611 = vmatmul.mubr.f32.gmra.mrb[24].mxu1 %v1403_v14 }
 0x28f   :  { %1874 = vrot.lane.b32.xlu0 %v1828_v24, %s3131_s16 }
 0x2be   :  { %v4708_v10 = vpop.f32.mrb[0].mxu1 }
 0x2bf   :  { %v1554_v25 = vpop.f32.mrb[1].mxu1  ;;  %v1623_v32 = vsel %vm246_vm1, %v4708_v10, 0.0 }
 0x2c2   :  { %v4710_v7 = vpop.f32.mrb[2].mxu1 }
 0x2c3   :  { %v1559_v8 = vpop.f32.mrb[3].mxu1  ;;  %v1625_v52 = vsel %vm246_vm1, %v4710_v7, 0.0 }
 0x2ce   :  { %v4712_v19 = vpop.f32.mrb[4].mxu1 }
 0x2cf   :  { %v1564_v9 = vpop.f32.mrb[5].mxu1  ;;  %v1627_v55 = vsel %vm246_vm1, %v4712_v19, 0.0 }
 0x2d7   :  { %v4714_v3 = vpop.f32.mrb[6].mxu1 }
 0x2d8   :  { %v1569_v42 = vpop.f32.mrb[7].mxu1  ;;  %v1629_v62 = vsel %vm246_vm1, %v4714_v3, 0.0 }
 0x322   :  { %v4740_v58 = vpop.f32.mrb[8].mxu1 }
 0x323   :  { %v1574_v38 = vpop.f32.mrb[9].mxu1  ;;  %v1631_v27 = vsel %vm246_vm1, %v4740_v58, 0.0 }
 0x329   :  { %v1537_v44 = vpop.f32.mrb[16].mxu0 }
 0x32a   :  { %v1539_v28 = vpop.f32.mrb[17].mxu0  ;;  %v1618_v18 = vsel %vm246_vm1, %v1537_v44, 0.0 }
 0x32d   :  { %v1542_v35 = vpop.f32.mrb[18].mxu0 }
 0x32e   :  { %v1619_v11 = vsel %vm246_vm1, %v1542_v35, 0.0  ;;  %v1544_v33 = vpop.f32.mrb[19].mxu0 }
 0x32f   :  { %v1620_v53 = vadd.f32 %v1619_v11, %v1618_v18 }
 0x331   :  { %v1547_v16 = vpop.f32.mrb[20].mxu0 }
 0x332   :  { %v1621_v26 = vsel %vm246_vm1, %v1547_v16, 0.0  ;;  %v1549_v46 = vpop.f32.mrb[21].mxu0  ;;  %v4766_v50 = vpop.f32.mrb[10].mxu1 }
 0x333   :  { %v1622_v56 = vadd.f32 %v1621_v26, %v1620_v53  ;;  %v1579_v0 = vpop.f32.mrb[11].mxu1  ;;  %v1639_v30 = vsel %vm246_vm1, %v4766_v50, 0.0 }
 0x335   :  { %v1624_v15 = vadd.f32 %v1623_v32, %v1622_v56 }
 0x336   :  { %v4772_v12 = vpop.f32.mrb[12].mxu1 }
 0x337   :  { %v1626_v29 = vadd.f32 %v1625_v52, %v1624_v15  ;;  %v1640_v59 = vsel %vm246_vm1, %v4772_v12, 0.0  ;;  %v1584_v60 = vpop.f32.mrb[13].mxu1 }
 0x338   :  { %v1641_v54 = vadd.f32 %v1640_v59, %v1639_v30 }
 0x339   :  { %v1628_v31 = vadd.f32 %v1627_v55, %v1626_v29 }
 0x33a   :  { %v4782_v45 = vpop.f32.mrb[14].mxu1 }
 0x33b   :  { %v1630_v43 = vadd.f32 %v1629_v62, %v1628_v31  ;;  %v1642_v36 = vsel %vm246_vm1, %v4782_v45, 0.0  ;;  %v1589_v22 = vpop.f32.mrb[15].mxu1 }
 0x33c   :  { %v1643_v57 = vadd.f32 %v1642_v36, %v1641_v54 }
 0x33d   :  { %v1632_v6 = vadd.f32 %v1631_v27, %v1630_v43 }
 0x33f   :  { %v1633_v20 = vrot.slane %v1632_v6, 4 }
 0x341   :  { %v1634_v4 = vadd.f32 %v1633_v20, %v1632_v6 }
 0x343   :  { %v1635_v14 = vrot.slane %v1634_v4, 2 }
 0x345   :  { %v1636_v40 = vadd.f32 %v1635_v14, %v1634_v4  ;;  %v4786_v25 = vpop.f32.mrb[16].mxu1 }
 0x346   :  { %v1644_v9 = vsel %vm246_vm1, %v4786_v25, 0.0  ;;  %v1594_v42 = vpop.f32.mrb[17].mxu1 }
 0x347   :  { %v1637_v51 = vrot.slane %v1636_v40, 1  ;;  %v1645_v17 = vadd.f32 %v1644_v9, %v1643_v57 }
 0x349   :  { %v1638_v8 = vadd.f32 %v1637_v51, %v1636_v40 }
 0x34a   :  { %v4799_v38 = vpop.f32.mrb[18].mxu1 }
 0x34b   :  { %v1660_v48 = vmul.f32 0.015625, %v1638_v8  ;;  %v1599_v47 = vpop.f32.mrb[19].mxu1  ;;  %v1646_v28 = vsel %vm246_vm1, %v4799_v38, 0.0 }
 0x34d   :  { %v4790_v23 = vsub.f32 %v1537_v44, %v1660_v48  ;;  %v4792_v1 = vsub.f32 %v1542_v35, %v1660_v48  ;;  %v4794_v24 = vsub.f32 %v1547_v16, %v1660_v48  ;;  %v4797_v37 = vsub.f32 %v4708_v10, %v1660_v48 }
 0x34e   :  { %v4802_v21 = vsub.f32 %v4710_v7, %v1660_v48  ;;  %v4805_v61 = vsub.f32 %v4712_v19, %v1660_v48  ;;  %v4808_v39 = vsub.f32 %v4714_v3, %v1660_v48  ;;  %v4811_v63 = vsub.f32 %v4740_v58, %v1660_v48 }
 0x34f   :  { %v1678_v2 = vmul.f32 %v4790_v23, %v4790_v23  ;;  %v1679_v10 = vmul.f32 %v4792_v1, %v4792_v1  ;;  %v1680_v7 = vmul.f32 %v4794_v24, %v4794_v24  ;;  %v1681_v19 = vmul.f32 %v4797_v37, %v4797_v37 }
 0x350   :  { %v1682_v58 = vmul.f32 %v4802_v21, %v4802_v21  ;;  %v1647_v35 = vadd.f32 %v1646_v28, %v1645_v17  ;;  %v1683_v18 = vmul.f32 %v4805_v61, %v4805_v61  ;;  %v1684_v53 = vmul.f32 %v4808_v39, %v4808_v39 }
 0x351   :  { %v1694_v5 = vsel %vm246_vm1, %v1678_v2, 0.0  ;;  %v1695_v3 = vsel %vm246_vm1, %v1679_v10, 0.0  ;;  %v1697_v44 = vsel %vm246_vm1, %v1680_v7, 0.0  ;;  %v1699_v11 = vsel %vm246_vm1, %v1681_v19, 0.0 }
 0x352   :  { %v1696_v13 = vadd.f32 %v1695_v3, %v1694_v5  ;;  %v1701_v16 = vsel %vm246_vm1, %v1682_v58, 0.0  ;;  %v1685_v56 = vmul.f32 %v4811_v63, %v4811_v63  ;;  %v1703_v32 = vsel %vm246_vm1, %v1683_v18, 0.0  ;;  %v4874_v18 = vld [vmem:[%s5184_s5 + $0x2] ss:$0 sm:$0xff] }
 0x353   :  { %v1705_v55 = vsel %vm246_vm1, %v1684_v53, 0.0 }
 0x354   :  { %v1698_v34 = vadd.f32 %v1697_v44, %v1696_v13  ;;  %v1707_v30 = vsel %vm246_vm1, %v1685_v56, 0.0 }
 0x355   :  { %v1602_v46 = vpop.f32.mrb[20].mxu1 }
 0x356   :  { %v1700_v33 = vadd.f32 %v1699_v11, %v1698_v34  ;;  %v1648_v15 = vsel %vm246_vm1, %v1602_v46, 0.0  ;;  %v1604_v0 = vpop.f32.mrb[21].mxu1 }
 0x357   :  { %v1649_v29 = vadd.f32 %v1648_v15, %v1647_v35 }
 0x358   :  { %v1702_v26 = vadd.f32 %v1701_v16, %v1700_v33 }
 0x35a   :  { %v1704_v52 = vadd.f32 %v1703_v32, %v1702_v26  ;;  %v1607_v59 = vpop.f32.mrb[22].mxu1 }
 0x35b   :  { %v1650_v62 = vsel %vm246_vm1, %v1607_v59, 0.0  ;;  %v1609_v54 = vpop.f32.mrb[23].mxu1 }
 0x35c   :  { %v1706_v31 = vadd.f32 %v1705_v55, %v1704_v52  ;;  %v1651_v43 = vadd.f32 %v1650_v62, %v1649_v29  ;;  %v4892_v52 = vld [vmem:[%s5184_s5 + $0x3] ss:$0 sm:$0xff]  ;;  %v1849_v55 = vpop.permute.xlu1 %1848 }
 0x35e   :  { %v1708_v60 = vadd.f32 %v1707_v30, %v1706_v31 }
 0x360   :  { %v1709_v27 = vrot.slane %v1708_v60, 4 }
 0x361   :  { %v1612_v22 = vpop.f32.mrb[24].mxu1 }
 0x362   :  { %v1710_v6 = vadd.f32 %v1709_v27, %v1708_v60  ;;  %v1652_v20 = vsel %vm246_vm1, %v1612_v22, 0.0  ;;  %v1614_v57 = vpop.f32.mrb[25].mxu1 }
 0x363   :  { %v1653_v14 = vadd.f32 %v1652_v20, %v1651_v43 }
 0x364   :  { %v1711_v36 = vrot.slane %v1710_v6, 2 }
 0x365   :  { %v1654_v51 = vrot.slane %v1653_v14, 4 }
 0x366   :  { %v1712_v4 = vadd.f32 %v1711_v36, %v1710_v6 }
 0x367   :  { %v1655_v9 = vadd.f32 %v1654_v51, %v1653_v14 }
 0x368   :  { %v1713_v40 = vrot.slane %v1712_v4, 1 }
 0x369   :  { %v1656_v17 = vrot.slane %v1655_v9, 2 }
 0x36a   :  { %v1714_v8 = vadd.f32 %v1713_v40, %v1712_v4 }
 0x36b   :  { %v1657_v47 = vadd.f32 %v1656_v17, %v1655_v9  ;;  %v1853_v9 = vpop.permute.xlu1 %1852 }
 0x36c   :  { %v1736_v42 = vmul.f32 0.015625, %v1714_v8 }
 0x36d   :  { %v1658_v2 = vrot.slane %v1657_v47, 1 }
 0x36e   :  { %v1738_v48 = vadd.f32 1e-05, %v1736_v42 }
 0x36f   :  { %v1659_v10 = vadd.f32 %v1658_v2, %v1657_v47 }
 0x370   :  { %3098 = vrsqrt.f32 %v1738_v48 }
 0x371   :  { %v1661_v7 = vmul.f32 0.015625, %v1659_v10 }
 0x373   :  { %v4843_v19 = vsub.f32 %v4766_v50, %v1661_v7  ;;  %v4846_v5 = vsub.f32 %v4772_v12, %v1661_v7  ;;  %v4849_v3 = vsub.f32 %v4782_v45, %v1661_v7  ;;  %v4852_v13 = vsub.f32 %v4786_v25, %v1661_v7 }
 0x374   :  { %v4855_v58 = vsub.f32 %v4799_v38, %v1661_v7  ;;  %v4857_v44 = vsub.f32 %v1602_v46, %v1661_v7  ;;  %v4859_v28 = vsub.f32 %v1607_v59, %v1661_v7  ;;  %v4861_v34 = vsub.f32 %v1612_v22, %v1661_v7  ;;  %v1847_v38 = vpop.permute.xlu0 %1846 }
 0x375   :  { %v1686_v50 = vmul.f32 %v4843_v19, %v4843_v19  ;;  %v1687_v12 = vmul.f32 %v4846_v5, %v4846_v5  ;;  %v1688_v45 = vmul.f32 %v4849_v3, %v4849_v3  ;;  %v1689_v25 = vmul.f32 %v4852_v13, %v4852_v13 }
 0x376   :  { %v1690_v11 = vmul.f32 %v4855_v58, %v4855_v58  ;;  %v1691_v33 = vmul.f32 %v4857_v44, %v4857_v44  ;;  %v1692_v46 = vmul.f32 %v4859_v28, %v4859_v28  ;;  %v1693_v56 = vmul.f32 %v4861_v34, %v4861_v34 }
 0x377   :  { %v1715_v53 = vsel %vm246_vm1, %v1686_v50, 0.0  ;;  %v1716_v16 = vsel %vm246_vm1, %v1687_v12, 0.0  ;;  %v1718_v15 = vsel %vm246_vm1, %v1688_v45, 0.0  ;;  %v1720_v0 = vsel %vm246_vm1, %v1689_v25, 0.0 }
 0x378   :  { %v1717_v32 = vadd.f32 %v1716_v16, %v1715_v53  ;;  %v1726_v48 = vsel %vm246_vm1, %v1692_v46, 0.0  ;;  %v1728_v25 = vsel %vm246_vm1, %v1693_v56, 0.0 }
 0x37a   :  { %v3099_v35 = vpop.eup %3098  ;;  %v1719_v30 = vadd.f32 %v1718_v15, %v1717_v32 }
 0x37b   :  { %v1744_v26 = vmul.f32 %v3099_v35, %v4794_v24  ;;  %v1742_v29 = vmul.f32 %v3099_v35, %v4790_v23  ;;  %v1743_v24 = vmul.f32 %v3099_v35, %v4792_v1  ;;  %v1745_v59 = vmul.f32 %v3099_v35, %v4797_v37  ;;  %v1851_v1 = vpop.permute.xlu0 %1850 }
 0x37c   :  { %v1746_v60 = vmul.f32 %v3099_v35, %v4802_v21  ;;  %v1747_v43 = vmul.f32 %v3099_v35, %v4805_v61  ;;  %v1748_v27 = vmul.f32 %v3099_v35, %v4808_v39  ;;  %v1721_v6 = vadd.f32 %v1720_v0, %v1719_v30 }
 0x37d   :  { %v1764_v31 = vmul.f32 %v4874_v18, %v1744_v26  ;;  %v1762_v62 = vmul.f32 %v4874_v18, %v1742_v29  ;;  %v1763_v54 = vmul.f32 %v4874_v18, %v1743_v24  ;;  %v1765_v36 = vmul.f32 %v4874_v18, %v1745_v59  ;;  %v1857_v26 = vpop.permute.xlu1 %1856 }
 0x37e   :  { %v1766_v22 = vmul.f32 %v4874_v18, %v1746_v60  ;;  %v1722_v37 = vsel %vm246_vm1, %v1690_v11, 0.0  ;;  %v1724_v21 = vsel %vm246_vm1, %v1691_v33, 0.0  ;;  %v1767_v39 = vmul.f32 %v4874_v18, %v1747_v43 }
 0x37f   :  { %v1784_v23 = vadd.f32 %v4892_v52, %v1764_v31  ;;  %v1782_v20 = vadd.f32 %v4892_v52, %v1762_v62  ;;  %v1783_v57 = vadd.f32 %v4892_v52, %v1763_v54  ;;  %v1723_v4 = vadd.f32 %v1722_v37, %v1721_v6  ;;  %v1855_v50 = vpop.permute.xlu0 %1854 }
 0x380   :  { %v1785_v61 = vadd.f32 %v4892_v52, %v1765_v36  ;;  %v1768_v14 = vmul.f32 %v4874_v18, %v1748_v27  ;;  %v1786_v42 = vadd.f32 %v4892_v52, %v1766_v22  ;;  %v1787_v12 = vadd.f32 %v4892_v52, %v1767_v39 }
 0x381   :  { %v1798_v40 = vmax.f32 %v1782_v20, 0.0  ;;  %v1799_v51 = vmax.f32 %v1783_v57, 0.0  ;;  %v1800_v8 = vmax.f32 %v1784_v23, 0.0  ;;  %v1725_v17 = vadd.f32 %v1724_v21, %v1723_v4  ;;  %v1861_v59 = vpop.permute.xlu1 %1860 }
 0x382   :  { %v1801_v7 = vmax.f32 %v1785_v61, 0.0  ;;  %v1749_v45 = vmul.f32 %v3099_v35, %v4811_v63  ;;  %v1802_v33 = vmax.f32 %v1786_v42, 0.0  ;;  %v1788_v53 = vadd.f32 %v4892_v52, %v1768_v14 }
 0x383   :  { %v1894_v47 = vsel %vm246_vm1, %v1798_v40, %v1847_v38  ;;  %v1895_v2 = vsel %vm246_vm1, %v1799_v51, %v1849_v55  ;;  %v1727_v10 = vadd.f32 %v1726_v48, %v1725_v17  ;;  %v1896_v11 = vsel %vm246_vm1, %v1800_v8, %v1851_v1  ;;  %v1859_v29 = vpop.permute.xlu0 %1858 }
 0x384   :  { %2873 = vmatprep.mubr.msk.f32.mxu0 %vm1916_vm11, %v1894_v47  ;;  %v1769_v16 = vmul.f32 %v4874_v18, %v1749_v45  ;;  %v1897_v63 = vsel %vm246_vm1, %v1801_v7, %v1853_v9  ;;  %v1803_v35 = vmax.f32 %v1787_v12, 0.0  ;;  %v1898_v56 = vsel %vm246_vm1, %v1802_v33, %v1855_v50 }
 0x385   :  { %2874 = vmatmul.mubr.msk.f32.vlgmr.msra.gmra.mrb[22].mxu0 %vm1916_vm11, %v1895_v2  ;;  %v1729_v38 = vadd.f32 %v1728_v25, %v1727_v10  ;;  %v1804_v15 = vmax.f32 %v1788_v53, 0.0  ;;  %v1865_v37 = vpop.permute.xlu1 %1864 }
 0x386   :  { %2876 = vmatprep.mubr.msk.f32.mxu0 %vm1916_vm11, %v1896_v11  ;;  %v1789_v32 = vadd.f32 %v4892_v52, %v1769_v16  ;;  %v1899_v55 = vsel %vm246_vm1, %v1803_v35, %v1857_v26 }
 0x387   :  { %v1730_v46 = vrot.slane %v1729_v38, 4  ;;  %v1900_v30 = vsel %vm246_vm1, %v1804_v15, %v1859_v29  ;;  %v1863_v23 = vpop.permute.xlu0 %1862  ;;  %v2137_v29 = vld [vmem:[%s5183_s4 + $0x8] sm:$0xff] }
 0x388   :  { %v1805_v31 = vmax.f32 %v1789_v32, 0.0 }
 0x389   :  { %2877 = vmatmul.mubr.msk.f32.gmra.mrb[24].mxu0 %vm1916_vm11, %v1897_v63  ;;  %v1731_v0 = vadd.f32 %v1730_v46, %v1729_v38  ;;  %v1869_v48 = vpop.permute.xlu1 %1868 }
 0x38a   :  { %2879 = vmatprep.mubr.msk.f32.mxu0 %vm1916_vm11, %v1898_v56  ;;  %v1901_v54 = vsel %vm246_vm1, %v1805_v31, %v1861_v59  ;;  %v2139_v31 = vld [vmem:[%s5183_s4 + $0x18] sm:$0xff]  ;;  %v2140_v59 = vld [vmem:[%s5183_s4 + $0x20] sm:$0xff] }
 0x38b   :  { %v1732_v24 = vrot.slane %v1731_v0, 2 }
 0x38d   :  { %2880 = vmatmul.mubr.msk.f32.gmra.mrb[26].mxu0 %vm1916_vm11, %v1899_v55  ;;  %v1733_v60 = vadd.f32 %v1732_v24, %v1731_v0  ;;  %v1873_v53 = vpop.permute.xlu1 %1872  ;;  %v2136_v0 = vld [vmem:[%s5183_s4] sm:$0xff]  ;;  %v2138_v55 = vld [vmem:[%s5183_s4 + $0x10] sm:$0xff] }
 0x38e   :  { %2882 = vmatprep.mubr.msk.f32.mxu0 %vm1916_vm11, %v1900_v30  ;;  %v3015_v24 = vpack.c.bf16 %v2137_v29, %v2136_v0  ;;  %v3018_v30 = vpack.c.bf16 %v2139_v31, %v2138_v55 }
 0x38f   :  { %v1734_v62 = vrot.slane %v1733_v60, 1 }
 0x390   :  { %3016 = vmatpush3.bf16.msra.mxu0 %v3015_v24  ;;  %3040 = vmatpush3.bf16.msra.mxu1 %v3015_v24 }
 0x391   :  { %2883 = vmatmul.mubr.msk.f32.gmra.mrb[28].mxu0 %vm1916_vm11, %v1901_v54  ;;  %v1735_v43 = vadd.f32 %v1734_v62, %v1733_v60  ;;  %v1877_v15 = vpop.permute.xlu1 %1876  ;;  %3017 = vmatprep.subr.bf16.mxu0 %v3133_v41  ;;  %v2141_v60 = vld [vmem:[%s5183_s4 + $0x28] sm:$0xff]  ;;  %v2142_v54 = vld [vmem:[%s5183_s4 + $0x30] sm:$0xff] }
 0x392   :  { %3041 = vmatprep.subr.bf16.mxu1 %v3133_v41  ;;  %v3021_v62 = vpack.c.bf16 %v2141_v60, %v2140_v59 }
 0x393   :  { %v1737_v27 = vmul.f32 0.015625, %v1735_v43  ;;  %v2143_v43 = vld [vmem:[%s5183_s4 + $0x38] sm:$0xff] }
 0x394   :  { %3019 = vmatpush3.bf16.msra.mxu0 %v3018_v30  ;;  %3043 = vmatpush3.bf16.msra.mxu1 %v3018_v30  ;;  %v3140_v30 = vmov 1966171168  }
 0x395   :  { %v1739_v6 = vadd.f32 1e-05, %v1737_v27  ;;  %3020 = vmatprep.subr.bf16.mxu0 %v3133_v41  ;;  %3044 = vmatprep.subr.bf16.mxu1 %v3133_v41  ;;  %v3024_v27 = vpack.c.bf16 %v2143_v43, %v2142_v54  ;;  %v2229_v59 = vunpack.c.l.s4 %v3140_v30 }
 0x397   :  { %3100 = vrsqrt.f32 %v1739_v6  ;;  %v2144_v6 = vld [vmem:[%s5183_s4 + $0x40] sm:$0xff]  ;;  %v2230_v60 = vunpack.c.0.s8 %v2229_v59 }
 0x398   :  { %3022 = vmatpush3.bf16.msra.mxu0 %v3021_v62  ;;  %3046 = vmatpush3.bf16.msra.mxu1 %v3021_v62 }
 0x399   :  { %3023 = vmatprep.subr.bf16.mxu0 %v3133_v41  ;;  %3047 = vmatprep.subr.bf16.mxu1 %v3133_v41  ;;  %v5041_v62 = vsub.s32 %v2230_v60, %v3401_v49 }
 0x39c   :  { %3025 = vmatpush3.bf16.msra.mxu0 %v3024_v27  ;;  %3049 = vmatpush3.bf16.msra.mxu1 %v3024_v27  ;;  %v5045_v27 = vsub.s32 0, %v3401_v49 }
 0x39d   :  { %3026 = vmatprep.subr.bf16.mxu0 %v3133_v41  ;;  %3050 = vmatprep.subr.bf16.mxu1 %v3133_v41 }
 0x3a1   :  { %v3101_v1 = vpop.eup %3100 }
 0x3a2   :  { %v1757_v36 = vmul.f32 %v3101_v1, %v4861_v34  ;;  %v1750_v22 = vmul.f32 %v3101_v1, %v4843_v19  ;;  %v1751_v21 = vmul.f32 %v3101_v1, %v4846_v5  ;;  %v1752_v20 = vmul.f32 %v3101_v1, %v4849_v3  ;;  %v1867_v19 = vpop.permute.xlu0 %1866 }
 0x3a3   :  { %v1753_v57 = vmul.f32 %v3101_v1, %v4852_v13  ;;  %v1754_v4 = vmul.f32 %v3101_v1, %v4855_v58  ;;  %v1755_v61 = vmul.f32 %v3101_v1, %v4857_v44  ;;  %v1756_v39 = vmul.f32 %v3101_v1, %v4859_v28  ;;  %v2146_v1 = vld [vmem:[%s5183_s4 + $0x50] sm:$0xff] }
 0x3a4   :  { %v1770_v14 = vmul.f32 %v4874_v18, %v1750_v22  ;;  %v1771_v40 = vmul.f32 %v4874_v18, %v1751_v21  ;;  %v1772_v34 = vmul.f32 %v4874_v18, %v1752_v20  ;;  %v1777_v7 = vmul.f32 %v4874_v18, %v1757_v36  ;;  %v2147_v22 = vld [vmem:[%s5183_s4 + $0x58] sm:$0xff]  ;;  %v2148_v20 = vld [vmem:[%s5183_s4 + $0x60] sm:$0xff] }
 0x3a5   :  { %v1773_v51 = vmul.f32 %v4874_v18, %v1753_v57  ;;  %v1774_v5 = vmul.f32 %v4874_v18, %v1754_v4  ;;  %v1775_v28 = vmul.f32 %v4874_v18, %v1755_v61  ;;  %v1776_v8 = vmul.f32 %v4874_v18, %v1756_v39  ;;  %v2149_v57 = vld [vmem:[%s5183_s4 + $0x68] sm:$0xff]  ;;  %v2150_v61 = vld [vmem:[%s5183_s4 + $0x70] sm:$0xff]  ;;  %v2151_v39 = vld [vmem:[%s5183_s4 + $0x78] sm:$0xff] }
 0x3a6   :  { %v1790_v3 = vadd.f32 %v4892_v52, %v1770_v14  ;;  %v1791_v13 = vadd.f32 %v4892_v52, %v1771_v40  ;;  %v1792_v58 = vadd.f32 %v4892_v52, %v1772_v34  ;;  %v1871_v12 = vpop.permute.xlu0 %1870  ;;  %v1797_v18 = vadd.f32 %v4892_v52, %v1777_v7 }
 0x3a7   :  { %v1793_v44 = vadd.f32 %v4892_v52, %v1773_v51  ;;  %v1794_v47 = vadd.f32 %v4892_v52, %v1774_v5  ;;  %v1795_v45 = vadd.f32 %v4892_v52, %v1775_v28  ;;  %v1796_v33 = vadd.f32 %v4892_v52, %v1776_v8 }
 0x3a8   :  { %v1806_v9 = vmax.f32 %v1790_v3, 0.0  ;;  %v1807_v42 = vmax.f32 %v1791_v13, 0.0  ;;  %v1808_v17 = vmax.f32 %v1792_v58, 0.0  ;;  %v1813_v32 = vmax.f32 %v1797_v18, 0.0 }
 0x3a9   :  { %v1809_v50 = vmax.f32 %v1793_v44, 0.0  ;;  %v1810_v11 = vmax.f32 %v1794_v47, 0.0  ;;  %v1811_v16 = vmax.f32 %v1795_v45, 0.0  ;;  %v1812_v46 = vmax.f32 %v1796_v33, 0.0 }
 0x3aa   :  { %v1902_v2 = vsel %vm246_vm1, %v1806_v9, %v1863_v23  ;;  %v1903_v10 = vsel %vm246_vm1, %v1807_v42, %v1865_v37  ;;  %v1904_v25 = vsel %vm246_vm1, %v1808_v17, %v1867_v19  ;;  %v1875_v63 = vpop.permute.xlu0 %1874  ;;  %v1909_v52 = vsel %vm246_vm1, %v1813_v32, %v1877_v15  ;;  %v2145_v23 = vld [vmem:[%s5183_s4 + $0x48] sm:$0xff] }
 0x3ab   :  { %2885 = vmatprep.mubr.msk.f32.mxu0 %vm1916_vm11, %v1902_v2  ;;  %v1905_v38 = vsel %vm246_vm1, %v1809_v50, %v1869_v48  ;;  %v1906_v26 = vsel %vm246_vm1, %v1810_v11, %v1871_v12  ;;  %v1907_v35 = vsel %vm246_vm1, %v1811_v16, %v1873_v53  ;;  %v1908_v56 = vsel %vm246_vm1, %v1812_v46, %v1875_v63 }
 0x3ac   :  { %2886 = vmatmul.mubr.msk.f32.gmra.mrb[30].mxu0 %vm1916_vm11, %v1903_v10  ;;  %v3027_v36 = vpack.c.bf16 %v2145_v23, %v2144_v6  ;;  %v3139_v37 = vmov 0.0   ;;  %v3030_v21 = vpack.c.bf16 %v2147_v22, %v2146_v1  ;;  %v3033_v4 = vpack.c.bf16 %v2149_v57, %v2148_v20 }
 0x3ad   :  { %2888 = vmatprep.mubr.msk.f32.mxu0 %vm1916_vm11, %v1904_v25  ;;  %2964 = vmatprep.mubr.msk.f32.mxu1 %vm3138_vm12, %v3139_v37  ;;  %v3036_v14 = vpack.c.bf16 %v2151_v39, %v2150_v61 }
 0x3ae   :  { %3028 = vmatpush3.bf16.msra.mxu0 %v3027_v36  ;;  %3052 = vmatpush3.bf16.msra.mxu1 %v3027_v36 }
 0x3af   :  { %3029 = vmatprep.subr.bf16.mxu0 %v3133_v41  ;;  %3053 = vmatprep.subr.bf16.mxu1 %v3133_v41 }
 0x3b0   :  { %2889 = vmatmul.mubr.msk.f32.gmra.mrb[32].mxu0 %vm1916_vm11, %v1905_v38 }
 0x3b1   :  { %2891 = vmatprep.mubr.msk.f32.mxu0 %vm1916_vm11, %v1906_v26 }
 0x3b2   :  { %3031 = vmatpush3.bf16.msra.mxu0 %v3030_v21  ;;  %3055 = vmatpush3.bf16.msra.mxu1 %v3030_v21 }
 0x3b3   :  { %3032 = vmatprep.subr.bf16.mxu0 %v3133_v41  ;;  %3056 = vmatprep.subr.bf16.mxu1 %v3133_v41 }
 0x3b4   :  { %2892 = vmatmul.mubr.msk.f32.gmra.mrb[34].mxu0 %vm1916_vm11, %v1907_v35 }
 0x3b5   :  { %2894 = vmatprep.mubr.msk.f32.mxu0 %vm1916_vm11, %v1908_v56 }
 0x3b6   :  { %3034 = vmatpush3.bf16.msra.mxu0 %v3033_v4  ;;  %3058 = vmatpush3.bf16.msra.mxu1 %v3033_v4 }
 0x3b7   :  { %3035 = vmatprep.subr.bf16.mxu0 %v3133_v41  ;;  %3059 = vmatprep.subr.bf16.mxu1 %v3133_v41 }
 0x3b8   :  { %2895 = vmatmul.mubr.msk.f32.gmra.mrb[36].mxu0 %vm1916_vm11, %v1909_v52 }
 0x3b9   :  { %2929 = vmatprep.mubr.msk.f32.mxu0 %vm3138_vm12, %v3139_v37 }
 0x3ba   :  { %3037 = vmatpush3.bf16.msra.mxu0 %v3036_v14  ;;  %3061 = vmatpush3.bf16.msra.mxu1 %v3036_v14 }
 0x458   :  { %v2875_v40 = vpop.f32.mrb[22].mxu0 }
 0x459   :  { %v2031_v34 = vpop.f32.mrb[23].mxu0 }
 0x45a   :  { %v2110_v19 = vadd.f32 %v2875_v40, %v2031_v34 }
 0x45c   :  { %v2878_v51 = vpop.f32.mrb[24].mxu0 }
 0x45d   :  { %v2041_v5 = vpop.f32.mrb[25].mxu0 }
 0x45e   :  { %v2111_v3 = vadd.f32 %v2110_v19, %v2041_v5 }
 0x460   :  { %v2881_v13 = vpop.f32.mrb[26].mxu0  ;;  %v2112_v58 = vadd.f32 %v2878_v51, %v2111_v3 }
 0x461   :  { %v2051_v44 = vpop.f32.mrb[27].mxu0 }
 0x462   :  { %v2113_v28 = vadd.f32 %v2112_v58, %v2051_v44 }
 0x464   :  { %v2884_v8 = vpop.f32.mrb[28].mxu0  ;;  %v2114_v9 = vadd.f32 %v2881_v13, %v2113_v28 }
 0x465   :  { %v2061_v42 = vpop.f32.mrb[29].mxu0 }
 0x466   :  { %v2115_v17 = vadd.f32 %v2114_v9, %v2061_v42 }
 0x468   :  { %v2116_v48 = vadd.f32 %v2884_v8, %v2115_v17 }
 0x46a   :  { %v2117_v12 = vrot.slane %v2116_v48, 4 }
 0x46c   :  { %v2118_v53 = vadd.f32 %v2117_v12, %v2116_v48 }
 0x46e   :  { %v2119_v46 = vrot.slane %v2118_v53, 2 }
 0x470   :  { %v2120_v32 = vadd.f32 %v2119_v46, %v2118_v53 }
 0x472   :  { %v2121_v52 = vrot.slane %v2120_v32, 1 }
 0x474   :  { %v2122_v24 = vadd.f32 %v2121_v52, %v2120_v32 }
 0x47f   :  { %v2887_v47 = vpop.f32.mrb[30].mxu0 }
 0x480   :  { %v2071_v2 = vpop.f32.mrb[31].mxu0 }
 0x481   :  { %v2123_v41 = vadd.f32 %v2887_v47, %v2071_v2 }
 0x483   :  { %v2890_v10 = vpop.f32.mrb[32].mxu0 }
 0x484   :  { %v2081_v7 = vpop.f32.mrb[33].mxu0 }
 0x485   :  { %v2124_v50 = vadd.f32 %v2123_v41, %v2081_v7 }
 0x487   :  { %v2893_v45 = vpop.f32.mrb[34].mxu0  ;;  %v2125_v25 = vadd.f32 %v2890_v10, %v2124_v50 }
 0x488   :  { %v2091_v11 = vpop.f32.mrb[35].mxu0 }
 0x489   :  { %v2126_v33 = vadd.f32 %v2125_v25, %v2091_v11 }
 0x48b   :  { %v2896_v38 = vpop.f32.mrb[36].mxu0  ;;  %v2127_v16 = vadd.f32 %v2893_v45, %v2126_v33 }
 0x48c   :  { %v2101_v18 = vpop.f32.mrb[37].mxu0 }
 0x48d   :  { %v2128_v26 = vadd.f32 %v2127_v16, %v2101_v18 }
 0x48f   :  { %v2129_v63 = vadd.f32 %v2896_v38, %v2128_v26 }
 0x491   :  { %v2130_v35 = vrot.slane %v2129_v63, 4 }
 0x493   :  { %v2131_v56 = vadd.f32 %v2130_v35, %v2129_v63 }
 0x495   :  { %v2132_v15 = vrot.slane %v2131_v56, 2 }
 0x497   :  { %v2133_v0 = vadd.f32 %v2132_v15, %v2131_v56 }
 0x499   :  { %v2134_v29 = vrot.slane %v2133_v0, 1 }
 0x49b   :  { %v2135_v55 = vadd.f32 %v2134_v29, %v2133_v0 }
 0x49d   :  { %v2155_v31 = vsel %vm2154_vm13, %v2135_v55, %v2122_v24 }
 0x49e   :  { %2930 = vmatmul.mubr.f32.vlgmr.msra.gmra.mrb[38].mxu0 %v2155_v31 }
 0x571   :  { %v2223_v54 = vpop.f32.mrb[38].mxu0 }
 0x572   :  { %v2234_v43 = vrot.slane %v2223_v54, %v5041_v62  ;;  %v2931_v6 = vpop.f32.mrb[39].mxu0 }
 0x574   :  { %v2235_v23 = vcombine.high %v2234_v43, %v2234_v43  ;;  %v2242_v1 = vrot.slane %v2234_v43, %v5041_v62 }
 0x576   :  { %v2249_v36 = vrot.slane %v2235_v23, %v5041_v62  ;;  %v2253_v22 = vrot.slane %v2242_v1, %v5045_v27 }
 0x578   :  { %v2257_v37 = vrot.slane %v2249_v36, %v5045_v27  ;;  %v5051_v21 = vsub.f32 %v2031_v34, %v2253_v22  ;;  %v5053_v20 = vsub.f32 %v2875_v40, %v2253_v22  ;;  %v5055_v57 = vsub.f32 %v2041_v5, %v2253_v22 }
 0x579   :  { %v5057_v4 = vsub.f32 %v2878_v51, %v2253_v22  ;;  %v5059_v49 = vsub.f32 %v2051_v44, %v2253_v22  ;;  %v5061_v61 = vsub.f32 %v2881_v13, %v2253_v22  ;;  %v5063_v39 = vsub.f32 %v2061_v42, %v2253_v22 }
 0x57a   :  { %v5065_v14 = vsub.f32 %v2884_v8, %v2253_v22  ;;  %v5067_v19 = vsub.f32 %v2071_v2, %v2257_v37  ;;  %v5069_v3 = vsub.f32 %v2887_v47, %v2257_v37  ;;  %v5071_v34 = vsub.f32 %v2081_v7, %v2257_v37 }
 0x57b   :  { %v5073_v40 = vsub.f32 %v2890_v10, %v2257_v37  ;;  %v5075_v5 = vsub.f32 %v2091_v11, %v2257_v37  ;;  %v5077_v51 = vsub.f32 %v2893_v45, %v2257_v37  ;;  %v5079_v58 = vsub.f32 %v2101_v18, %v2257_v37 }
 0x57c   :  { %v5081_v13 = vsub.f32 %v2896_v38, %v2257_v37  ;;  %v2276_v44 = vmul.f32 %v5051_v21, %v5051_v21  ;;  %v2277_v28 = vmul.f32 %v5053_v20, %v5053_v20  ;;  %v2284_v8 = vmul.f32 %v5067_v19, %v5067_v19 }
 0x57d   :  { %v2285_v9 = vmul.f32 %v5069_v3, %v5069_v3  ;;  %v2278_v42 = vmul.f32 %v5055_v57, %v5055_v57  ;;  %v2286_v17 = vmul.f32 %v5071_v34, %v5071_v34  ;;  %v2279_v2 = vmul.f32 %v5057_v4, %v5057_v4 }
 0x57e   :  { %v2292_v48 = vadd.f32 %v2277_v28, %v2276_v44  ;;  %v2287_v41 = vmul.f32 %v5073_v40, %v5073_v40  ;;  %v2280_v50 = vmul.f32 %v5059_v49, %v5059_v49  ;;  %v2288_v12 = vmul.f32 %v5075_v5, %v5075_v5 }
 0x57f   :  { %v2305_v47 = vadd.f32 %v2285_v9, %v2284_v8  ;;  %v2281_v11 = vmul.f32 %v5061_v61, %v5061_v61  ;;  %v2289_v33 = vmul.f32 %v5077_v51, %v5077_v51  ;;  %v2282_v16 = vmul.f32 %v5063_v39, %v5063_v39 }
 0x580   :  { %v2293_v10 = vadd.f32 %v2292_v48, %v2278_v42  ;;  %v2290_v18 = vmul.f32 %v5079_v58, %v5079_v58  ;;  %v2283_v63 = vmul.f32 %v5065_v14, %v5065_v14  ;;  %v2291_v35 = vmul.f32 %v5081_v13, %v5081_v13 }
 0x581   :  { %v2306_v7 = vadd.f32 %v2305_v47, %v2286_v17  ;;  %v2751_v47 = vld [vmem:[%s5185_s6] ss:$0 sm:$0xff] }
 0x582   :  { %v2294_v45 = vadd.f32 %v2293_v10, %v2279_v2 }
 0x583   :  { %v2307_v25 = vadd.f32 %v2306_v7, %v2287_v41 }
 0x584   :  { %v2295_v53 = vadd.f32 %v2294_v45, %v2280_v50 }
 0x585   :  { %v2308_v38 = vadd.f32 %v2307_v25, %v2288_v12 }
 0x586   :  { %v2296_v26 = vadd.f32 %v2295_v53, %v2281_v11 }
 0x587   :  { %v2309_v46 = vadd.f32 %v2308_v38, %v2289_v33 }
 0x588   :  { %v2297_v32 = vadd.f32 %v2296_v26, %v2282_v16 }
 0x589   :  { %v2310_v56 = vadd.f32 %v2309_v46, %v2290_v18 }
 0x58a   :  { %v2298_v15 = vadd.f32 %v2297_v32, %v2283_v63 }
 0x58b   :  { %v2311_v52 = vadd.f32 %v2310_v56, %v2291_v35 }
 0x58c   :  { %v2299_v0 = vrot.slane %v2298_v15, 4 }
 0x58d   :  { %v2312_v29 = vrot.slane %v2311_v52, 4 }
 0x58e   :  { %v2300_v24 = vadd.f32 %v2299_v0, %v2298_v15 }
 0x58f   :  { %v2313_v55 = vadd.f32 %v2312_v29, %v2311_v52 }
 0x590   :  { %v2301_v31 = vrot.slane %v2300_v24, 2 }
 0x591   :  { %v2314_v30 = vrot.slane %v2313_v55, 2 }
 0x592   :  { %v2302_v59 = vadd.f32 %v2301_v31, %v2300_v24 }
 0x593   :  { %v2315_v60 = vadd.f32 %v2314_v30, %v2313_v55 }
 0x594   :  { %v2303_v54 = vrot.slane %v2302_v59, 1 }
 0x595   :  { %v2316_v43 = vrot.slane %v2315_v60, 1 }
 0x596   :  { %v2304_v6 = vadd.f32 %v2303_v54, %v2302_v59 }
 0x597   :  { %v2317_v23 = vadd.f32 %v2316_v43, %v2315_v60 }
 0x599   :  { %v2320_v1 = vsel %vm2154_vm13, %v2317_v23, %v2304_v6 }
 0x59a   :  { %2965 = vmatmul.mubr.f32.vlgmr.msra.gmra.mrb[26].mxu1 %v2320_v1 }
 0x66d   :  { %v2388_v36 = vpop.f32.mrb[26].mxu1 }
 0x66e   :  { %v2399_v22 = vrot.slane %v2388_v36, %v5041_v62  ;;  %v2966_v37 = vpop.f32.mrb[27].mxu1 }
 0x670   :  { %v2400_v44 = vcombine.high %v2399_v22, %v2399_v22  ;;  %v2407_v28 = vrot.slane %v2399_v22, %v5041_v62 }
 0x672   :  { %v2417_v8 = vadd.f32 1e-05, %v2407_v28  ;;  %v2414_v9 = vrot.slane %v2400_v44, %v5041_v62  ;;  %v2752_v62 = vld [vmem:[%s5185_s6 + $0x1] ss:$0 sm:$0xff]  ;;  %s3141_s6 = smov [#allocation3]  }
 0x674   :  { %3102 = vrsqrt.f32 %v2417_v8  ;;  %v2418_v42 = vadd.f32 1e-05, %v2414_v9 }
 0x676   :  { %3104 = vrsqrt.f32 %v2418_v42 }
 0x67e   :  { %v3103_v17 = vpop.eup %3102 }
 0x67f   :  { %v2426_v48 = vrot.slane %v3103_v17, %v5045_v27 }
 0x680   :  { %v3105_v11 = vpop.eup %3104 }
 0x681   :  { %v2434_v2 = vmul.f32 %v2426_v48, %v5053_v20  ;;  %v2433_v41 = vmul.f32 %v2426_v48, %v5051_v21  ;;  %v2436_v10 = vmul.f32 %v2426_v48, %v5057_v4  ;;  %v2435_v7 = vmul.f32 %v2426_v48, %v5055_v57 }
 0x682   :  { %v2438_v45 = vmul.f32 %v2426_v48, %v5061_v61  ;;  %v2437_v25 = vmul.f32 %v2426_v48, %v5059_v49  ;;  %v2430_v21 = vrot.slane %v3105_v11, %v5045_v27  ;;  %v2440_v4 = vmul.f32 %v2426_v48, %v5065_v14 }
 0x683   :  { %v2455_v50 = vmul.f32 %v2751_v47, %v2434_v2  ;;  %v2454_v12 = vmul.f32 %v2751_v47, %v2433_v41  ;;  %v2457_v20 = vmul.f32 %v2751_v47, %v2436_v10  ;;  %v2456_v38 = vmul.f32 %v2751_v47, %v2435_v7 }
 0x684   :  { %v2439_v57 = vmul.f32 %v2426_v48, %v5063_v39  ;;  %v2459_v61 = vmul.f32 %v2751_v47, %v2438_v45  ;;  %v2458_v26 = vmul.f32 %v2751_v47, %v2437_v25  ;;  %v2461_v49 = vmul.f32 %v2751_v47, %v2440_v4 }
 0x685   :  { %v2476_v33 = vadd.f32 %v2752_v62, %v2455_v50  ;;  %v2475_v53 = vadd.f32 %v2752_v62, %v2454_v12  ;;  %v2478_v16 = vadd.f32 %v2752_v62, %v2457_v20  ;;  %v2477_v18 = vadd.f32 %v2752_v62, %v2456_v38 }
 0x686   :  { %v2460_v46 = vmul.f32 %v2751_v47, %v2439_v57  ;;  %v2480_v63 = vadd.f32 %v2752_v62, %v2459_v61  ;;  %v2479_v35 = vadd.f32 %v2752_v62, %v2458_v26  ;;  %v2442_v32 = vmul.f32 %v2430_v21, %v5069_v3 }
 0x687   :  { %2493 = vrot.lane.b32.xlu1 %v2476_v33, %s3130_s25  ;;  %2491 = vrot.lane.b32.xlu0 %v2475_v53, %s3130_s25  ;;  %v2441_v27 = vmul.f32 %v2430_v21, %v5067_v19  ;;  %v2482_v39 = vadd.f32 %v2752_v62, %v2461_v49  ;;  %v2444_v52 = vmul.f32 %v2430_v21, %v5073_v40 }
 0x688   :  { %v2481_v14 = vadd.f32 %v2752_v62, %v2460_v46  ;;  %v2463_v56 = vmul.f32 %v2751_v47, %v2442_v32  ;;  %v2443_v0 = vmul.f32 %v2430_v21, %v5071_v34  ;;  %v2446_v3 = vmul.f32 %v2430_v21, %v5077_v51 }
 0x689   :  { %v2462_v15 = vmul.f32 %v2751_v47, %v2441_v27  ;;  %v2445_v19 = vmul.f32 %v2430_v21, %v5075_v5  ;;  %v2465_v55 = vmul.f32 %v2751_v47, %v2444_v52  ;;  %v2448_v40 = vmul.f32 %v2430_v21, %v5081_v13 }
 0x68a   :  { %v2484_v29 = vadd.f32 %v2752_v62, %v2463_v56  ;;  %v2464_v31 = vmul.f32 %v2751_v47, %v2443_v0  ;;  %v2447_v34 = vmul.f32 %v2430_v21, %v5079_v58  ;;  %v2467_v60 = vmul.f32 %v2751_v47, %v2446_v3 }
 0x68b   :  { %2497 = vrot.lane.b32.xlu1 %v2478_v16, %s3130_s25  ;;  %2495 = vrot.lane.b32.xlu0 %v2477_v18, %s3130_s25  ;;  %v2483_v24 = vadd.f32 %v2752_v62, %v2462_v15  ;;  %v2486_v30 = vadd.f32 %v2752_v62, %v2465_v55  ;;  %v2466_v54 = vmul.f32 %v2751_v47, %v2445_v19 }
 0x68c   :  { %v2485_v59 = vadd.f32 %v2752_v62, %v2464_v31  ;;  %v2488_v5 = vadd.f32 %v2752_v62, %v2467_v60  ;;  %v2469_v43 = vmul.f32 %v2751_v47, %v2448_v40  ;;  %v2468_v6 = vmul.f32 %v2751_v47, %v2447_v34 }
 0x68d   :  { %v2487_v51 = vadd.f32 %v2752_v62, %v2466_v54 }
 0x68e   :  { %v5157_v23 = vadd.f32 %v2752_v62, %v2469_v43  ;;  %v5159_v13 = vadd.f32 %v2752_v62, %v2468_v6 }
 0x68f   :  { %2501 = vrot.lane.b32.xlu1 %v2480_v63, %s3130_s25  ;;  %2499 = vrot.lane.b32.xlu0 %v2479_v35, %s3130_s25 }
 0x693   :  { %2505 = vrot.lane.b32.xlu1 %v2482_v39, %s3130_s25  ;;  %2503 = vrot.lane.b32.xlu0 %v2481_v14, %s3130_s25 }
 0x697   :  { %2509 = vrot.lane.b32.xlu1 %v2484_v29, %s3130_s25  ;;  %2507 = vrot.lane.b32.xlu0 %v2483_v24, %s3130_s25 }
 0x69b   :  { %2513 = vrot.lane.b32.xlu1 %v2486_v30, %s3130_s25  ;;  %2511 = vrot.lane.b32.xlu0 %v2485_v59, %s3130_s25 }
 0x69f   :  { %2517 = vrot.lane.b32.xlu1 %v2488_v5, %s3130_s25  ;;  %2515 = vrot.lane.b32.xlu0 %v2487_v51, %s3130_s25 }
 0x6a3   :  { %2521 = vrot.lane.b32.xlu1 %v5157_v23, %s3130_s25  ;;  %2519 = vrot.lane.b32.xlu0 %v5159_v13, %s3130_s25  ;;  %s2576_s25 = sshll.u32 %s3141_s6, 4  ;;  %s2577_s25 = int_to_ptr.vmem [resolvable:$true] %s2576_s25 }
 0x6a4   :  { %s3106_s13 = scalar_lea.vmem %s2577_s25, 2048  ;;  %p3111_p1 = scmp.lt.s32.totalorder %s2577_s25, %s2577_s25 }
 0x6a5   :  { %p3107_p0 = scmp.ne.s32.totalorder %s2577_s25, %s3106_s13  ;;  %p3112_p2 = scmp.lt.s32.totalorder %s3106_s13, %s3106_s13 }
 0x6a7   :  { %p3113_p3 = por %p3112_p2, %p3111_p1 }
 0x6a9   :  { %p3114_p4 = pnand %p3113_p3, %p3107_p0 }
 0x6f9   :  { %v2494_v58 = vpop.permute.xlu1 %2493  ;;  %v2492_v1 = vpop.permute.xlu0 %2491 }
 0x6fa   :  { %v2524_v36 = vadd.f32 %v2494_v58, %v2476_v33  ;;  %v2523_v22 = vadd.f32 %v2492_v1, %v2475_v53 }
 0x6fc   :  { %v2540_v37 = vmax.f32 %v2524_v36, 0.0  ;;  %v2539_v44 = vmax.f32 %v2523_v22, 0.0 }
 0x6fd   :  { %v2498_v28 = vpop.permute.xlu1 %2497  ;;  %v2496_v8 = vpop.permute.xlu0 %2495 }
 0x6fe   :  { %2556 = vst [vmem:[#allocation3 + $0x8] sm:$0xff] %v2540_v37  ;;  %2555 = vst [vmem:[#allocation3] sm:$0xff] %v2539_v44  ;;  %v2526_v9 = vadd.f32 %v2498_v28, %v2478_v16  ;;  %v2525_v42 = vadd.f32 %v2496_v8, %v2477_v18 }
 0x700   :  { %v2542_v17 = vmax.f32 %v2526_v9, 0.0  ;;  %v2541_v48 = vmax.f32 %v2525_v42, 0.0 }
 0x701   :  { %v2502_v47 = vpop.permute.xlu1 %2501  ;;  %v2500_v2 = vpop.permute.xlu0 %2499 }
 0x702   :  { %2558 = vst [vmem:[#allocation3 + $0x18] sm:$0xff] %v2542_v17  ;;  %2557 = vst [vmem:[#allocation3 + $0x10] sm:$0xff] %v2541_v48  ;;  %v2528_v41 = vadd.f32 %v2502_v47, %v2480_v63  ;;  %v2527_v10 = vadd.f32 %v2500_v2, %v2479_v35 }
 0x704   :  { %v2544_v62 = vmax.f32 %v2528_v41, 0.0  ;;  %v2543_v7 = vmax.f32 %v2527_v10, 0.0 }
 0x705   :  { %v2506_v50 = vpop.permute.xlu1 %2505  ;;  %v2504_v12 = vpop.permute.xlu0 %2503 }
 0x706   :  { %2560 = vst [vmem:[#allocation3 + $0x28] sm:$0xff] %v2544_v62  ;;  %2559 = vst [vmem:[#allocation3 + $0x20] sm:$0xff] %v2543_v7  ;;  %v2530_v45 = vadd.f32 %v2506_v50, %v2482_v39  ;;  %v2529_v25 = vadd.f32 %v2504_v12, %v2481_v14 }
 0x708   :  { %v2546_v11 = vmax.f32 %v2530_v45, 0.0  ;;  %v2545_v33 = vmax.f32 %v2529_v25, 0.0 }
 0x709   :  { %v2510_v53 = vpop.permute.xlu1 %2509  ;;  %v2508_v20 = vpop.permute.xlu0 %2507 }
 0x70a   :  { %2562 = vst [vmem:[#allocation3 + $0x38] sm:$0xff] %v2546_v11  ;;  %2561 = vst [vmem:[#allocation3 + $0x30] sm:$0xff] %v2545_v33  ;;  %v2532_v38 = vadd.f32 %v2510_v53, %v2484_v29  ;;  %v2531_v21 = vadd.f32 %v2508_v20, %v2483_v24 }
 0x70c   :  { %v2548_v4 = vmax.f32 %v2532_v38, 0.0  ;;  %v2547_v57 = vmax.f32 %v2531_v21, 0.0 }
 0x70d   :  { %v2514_v16 = vpop.permute.xlu1 %2513  ;;  %v2512_v18 = vpop.permute.xlu0 %2511 }
 0x70e   :  { %2564 = vst [vmem:[#allocation3 + $0x48] sm:$0xff] %v2548_v4  ;;  %2563 = vst [vmem:[#allocation3 + $0x40] sm:$0xff] %v2547_v57  ;;  %v2534_v61 = vadd.f32 %v2514_v16, %v2486_v30  ;;  %v2533_v26 = vadd.f32 %v2512_v18, %v2485_v59 }
 0x710   :  { %v2550_v49 = vmax.f32 %v2534_v61, 0.0  ;;  %v2549_v46 = vmax.f32 %v2533_v26, 0.0 }
 0x711   :  { %v2518_v63 = vpop.permute.xlu1 %2517  ;;  %v2516_v35 = vpop.permute.xlu0 %2515 }
 0x712   :  { %2566 = vst [vmem:[#allocation3 + $0x58] sm:$0xff] %v2550_v49  ;;  %2565 = vst [vmem:[#allocation3 + $0x50] sm:$0xff] %v2549_v46  ;;  %v2536_v32 = vadd.f32 %v2518_v63, %v2488_v5  ;;  %v2535_v27 = vadd.f32 %v2516_v35, %v2487_v51 }
 0x714   :  { %v2552_v39 = vmax.f32 %v2536_v32, 0.0  ;;  %v2551_v14 = vmax.f32 %v2535_v27, 0.0 }
 0x715   :  { %v2522_v56 = vpop.permute.xlu1 %2521  ;;  %v2520_v15 = vpop.permute.xlu0 %2519 }
 0x716   :  { %2568 = vst [vmem:[#allocation3 + $0x68] sm:$0xff] %v2552_v39  ;;  %2567 = vst [vmem:[#allocation3 + $0x60] sm:$0xff] %v2551_v14  ;;  %v2538_v52 = vadd.f32 %v2522_v56, %v5157_v23  ;;  %v2537_v0 = vadd.f32 %v2520_v15, %v5159_v13 }
 0x718   :  { %v2554_v3 = vmax.f32 %v2538_v52, 0.0  ;;  %v2553_v19 = vmax.f32 %v2537_v0, 0.0 }
 0x71a   :  { %2570 = vst [vmem:[#allocation3 + $0x78] sm:$0xff] %v2554_v3  ;;  %2569 = vst [vmem:[#allocation3 + $0x70] sm:$0xff] %v2553_v19 }
 0x71b   :  { %3117 = shalt.err (!%p3114_p4)
}
 0x71c   :  { %s3118_s17 = scalar_lea.hbm %s5187_s8, 2048 }
 0x71d   :  { %p3119_p5 = scmp.ne.s32.totalorder %s5187_s8, %s3118_s17  ;;  %p3122_p6 = scmp.lt.u32.totalorder %s3118_s17, %s5187_s8 }
 0x71f   :  { %p3124_p7 = pnand %p3122_p6, %p3119_p5 }
 0x721   :  { %3127 = shalt.err (!%p3124_p7)
}
 0x722   :  { %s3142_s22 = smov 128   ;;  %s3143_s0 = smov 8  }
 0x723   :  { %2582 = dma.vmem_to_hbm [thread:$0]  %s2577_s25, 2048, %s5187_s8, [#allocation4], %s3142_s22, %s3142_s22, %s3143_s0  }
 0x724   :  { %3128 = dma.done.wait [#allocation4], 2048  }
 0x725   :  { %3129 = vsyncadd [#allocation4], 4294965248 }
 0x726   :  { %2586 = vsyncpa [#allocation4], 1 }

</bundles_post_ra>
